<compile_context>
chip_gen: v7x
topology: tpu7x:2x2x1
jax: 0.10.0
libtpu: 0.0.40
codegen_flags: <defaults>
</compile_context>

<pallas_src>
import functools

import jax
import jax.numpy as jnp
from jax import lax
from jax.experimental import pallas as pl
from jax.experimental.pallas import tpu as pltpu

KSIZE = 5  # conv kernel size of both conv layers


# ----------------------------------------------------------------------------
# Fused kernel: one grid step == one batch tile of B images, layout (C*H, B*W).
# Every intermediate stays in VMEM / vregs.
# ----------------------------------------------------------------------------
def _fused_cnn_kernel(xs1_ref, l1c_ref, b1_ref, s2_ref, cp1_ref, l2c_ref, b2_ref,
                      cp2_ref, wfcb_ref, blk_ref, bfc_ref, out_ref,
                      scr1_ref, scr2_ref):
    cdt = l1c_ref.dtype  # MXU compute dtype (bf16 on the perf path, f32 on the exact path)

    def mx(a, b):
        return jnp.dot(a.astype(cdt), b.astype(cdt),
                       preferred_element_type=jnp.float32)

    n_rp1 = l1c_ref.shape[0] // 2   # C1 * Hp1  (rows after row-pool 1)
    n_rp2 = l2c_ref.shape[0] // 2   # C2 * Hp2  (rows after row-pool 2)

    # ---- conv1: ONE wide-K MXU matmul (K = 5*H) against the host-prestacked, column-shifted
    #      input; bias + ReLU on the VPU in f32 ----
    a1 = jnp.maximum(mx(l1c_ref[...], xs1_ref[0]) + b1_ref[...], 0.0)      # (C1*H1, B*W)

    # ---- pool1, rows: sublane-strided reads from VMEM scratch + VPU max (no selector matmul) ----
    scr1_ref[...] = a1
    t1 = jnp.maximum(scr1_ref[pl.ds(0, n_rp1, stride=2), :],
                     scr1_ref[pl.ds(1, n_rp1, stride=2), :])               # (C1*Hp1, B*W)

    # ---- pool1, columns: exact 0/1 even/odd selectors (block-diagonal over the batch tile) ----
    a2 = jnp.maximum(mx(t1, cp1_ref[0]), mx(t1, cp1_ref[1]))               # (C1*Hp1, B*W)

    # ---- conv2: build the K-stacked, column-shifted activation (5 exact 0/1 shift matmuls,
    #      short static unroll), then ONE wide-K MXU matmul (K = 5*C1*Hp1) ----
    xs2 = jnp.concatenate([mx(a2, s2_ref[dx]) for dx in range(KSIZE)], axis=0)
    a3 = jnp.maximum(mx(l2c_ref[...], xs2) + b2_ref[...], 0.0)             # (C2*H2, B*W)

    # ---- pool2: same strided-row max + column selectors ----
    scr2_ref[...] = a3
    t2 = jnp.maximum(scr2_ref[pl.ds(0, n_rp2, stride=2), :],
                     scr2_ref[pl.ds(1, n_rp2, stride=2), :])               # (C2*Hp2, B*W)
    a4 = jnp.maximum(mx(t2, cp2_ref[0]), mx(t2, cp2_ref[1]))               # (C2*Hp2, B*W)

    # ---- fc: VPU multiply + sublane (XLU) reduce per logit, then one tiny lane-block-sum
    #      matmul folds the per-image lane blocks; bias add; single (2, B) store per step ----
    s0 = jnp.sum(wfcb_ref[0] * a4, axis=0, keepdims=True)                  # (1, B*W)
    s1 = jnp.sum(wfcb_ref[1] * a4, axis=0, keepdims=True)                  # (1, B*W)
    s = jnp.concatenate([s0, s1], axis=0)                                  # (2, B*W)
    out_ref[0] = jnp.dot(s, blk_ref[...],
                         preferred_element_type=jnp.float32) + bfc_ref[...]   # (2, B)


# ----------------------------------------------------------------------------
# One-time host-side weight / layout preparation.
# ----------------------------------------------------------------------------
def _conv_left_cat(w, h_in, h_out):
    """Banded left operator, dx-concatenated along K.

    Returns (Cout*h_out, KSIZE*Cin*h_in) with
      L[co*h_out + i, dx*Cin*h_in + c*h_in + r] = w[co, c, r - i, dx]   (0 <= r-i < KSIZE).
    """
    c_out, c_in = w.shape[0], w.shape[1]
    i = jnp.arange(h_out)
    r = jnp.arange(h_in)
    dy = r[None, :] - i[:, None]                                  # (h_out, h_in)
    valid = (dy >= 0) & (dy < KSIZE)
    g = w[:, :, jnp.clip(dy, 0, KSIZE - 1), :]                    # (Cout, Cin, h_out, h_in, K)
    g = jnp.where(valid[None, None, :, :, None], g, 0.0)
    g = jnp.transpose(g, (0, 2, 4, 1, 3))                         # (Cout, h_out, K, Cin, h_in)
    return g.reshape(c_out * h_out, KSIZE * c_in * h_in)


def _shift_sel(batch_tile, w, w_out, dtype):
    """(KSIZE, B*W, B*W): S[dx][b*W + j + dx, b*W + j] = 1 for j < w_out (else column is 0)."""
    s = jnp.arange(batch_tile * w)[:, None]
    d = jnp.arange(batch_tile * w)[None, :]
    mats = [((s // w) == (d // w)) & ((d % w) < w_out) & ((s % w) == (d % w) + dx)
            for dx in range(KSIZE)]
    return jnp.stack(mats).astype(dtype)


def _pool_col_sel(batch_tile, w, w_pool, dtype):
    """(2, B*W, B*W): [e][b*W + 2q + e, b*W + q] = 1 for q < w_pool (else column is 0)."""
    s = jnp.arange(batch_tile * w)[:, None]
    d = jnp.arange(batch_tile * w)[None, :]
    mats = [((s // w) == (d // w)) & ((d % w) < w_pool) & ((s % w) == 2 * (d % w) + e)
            for e in (0, 1)]
    return jnp.stack(mats).astype(dtype)


def prepare_operands(params, height, width, batch_tile, compute_dtype=jnp.bfloat16):
    """Pre-bake banded conv operators, shift/pool selectors and lane-broadcast fc weights."""
    f32 = jnp.float32
    w1, b1 = params["w1"], params["b1"]
    w2, b2 = params["w2"], params["b2"]
    wfc, bfc = params["wfc"], params["bfc"]
    c1, c2 = w1.shape[0], w2.shape[0]
    B, W = batch_tile, width

    h_c1, w_c1 = height - KSIZE + 1, width - KSIZE + 1
    h_p1, w_p1 = h_c1 // 2, w_c1 // 2
    h_c2, w_c2 = h_p1 - KSIZE + 1, w_p1 - KSIZE + 1
    h_p2, w_p2 = h_c2 // 2, w_c2 // 2
    # row-pool parity trick (global stride-2 sublane reads) needs even conv output heights
    assert h_c1 % 2 == 0 and h_c2 % 2 == 0, "choose H so both conv output heights are even"

    wfc3 = wfc.astype(f32).reshape(2, c2 * h_p2, w_p2)            # PyTorch (C,H,W) flatten order
    wfc_blk = jnp.concatenate(
        [wfc3, jnp.zeros((2, c2 * h_p2, W - w_p2), f32)], axis=-1)        # zero-pad garbage lanes
    wfcb = jnp.tile(wfc_blk, (1, 1, B))                                   # (2, C2*Hp2, B*W)

    col = jnp.arange(B * W)
    blk = jnp.stack([((col // W) == b) & ((col % W) < w_p2) for b in range(B)],
                    axis=1).astype(f32)                                   # (B*W, B)

    return dict(
        L1cat=_conv_left_cat(w1, height, h_c1).astype(compute_dtype),     # (C1*H1, 5*H)
        b1s=jnp.repeat(b1.astype(f32), h_c1).reshape(c1 * h_c1, 1),
        S2=_shift_sel(B, W, w_c2, compute_dtype),                         # (5, B*W, B*W)
        Cp1=_pool_col_sel(B, W, w_p1, compute_dtype),                     # (2, B*W, B*W)
        L2cat=_conv_left_cat(w2, h_p1, h_c2).astype(compute_dtype),       # (C2*H2, 5*C1*Hp1)
        b2s=jnp.repeat(b2.astype(f32), h_c2).reshape(c2 * h_c2, 1),
        Cp2=_pool_col_sel(B, W, w_p2, compute_dtype),                     # (2, B*W, B*W)
        wfcb=wfcb,
        blk=blk,
        bfc=bfc.astype(f32).reshape(2, 1),
    )


# ----------------------------------------------------------------------------
# Per-forward input layout plumbing (weight-independent, done in the XLA wrapper):
# stack the 5 column taps of the input along rows and fold the batch tile onto lanes.
# ----------------------------------------------------------------------------
def _stack_input(x, batch_tile, w_out):
    n, h, w = x.shape
    g = n // batch_tile
    shifted = []
    for dx in range(KSIZE):
        sl = x[:, :, dx:dx + w_out]                               # (N, H, w_out)
        shifted.append(jnp.pad(sl, ((0, 0), (0, 0), (0, w - w_out))))
    xs = jnp.stack(shifted, axis=1)                               # (N, 5, H, W)
    xs = xs.reshape(g, batch_tile, KSIZE, h, w)
    xs = jnp.transpose(xs, (0, 2, 3, 1, 4))                       # (G, 5, H, B, W)
    return xs.reshape(g, KSIZE * h, batch_tile * w)


def _flops_per_step(height, width, batch_tile, c1, c2):
    h1 = height - KSIZE + 1
    hp1 = h1 // 2
    h2 = hp1 - KSIZE + 1
    hp2 = h2 // 2
    bw = batch_tile * width
    mm = [(c1 * h1, KSIZE * height, bw)]                          # conv1 wide-K
    mm += [(c1 * hp1, bw, bw)] * 2                                # pool1 column selectors
    mm += [(c1 * hp1, bw, bw)] * KSIZE                            # conv2 column-tap shifts
    mm += [(c2 * h2, KSIZE * c1 * hp1, bw)]                       # conv2 wide-K
    mm += [(c2 * hp2, bw, bw)] * 2                                # pool2 column selectors
    mm += [(2, bw, batch_tile)]                                   # fc lane-block sum
    fl = sum(2 * m * k * n for m, k, n in mm)
    fl += 2 * 2 * c2 * hp2 * bw                                   # fc VPU multiply + reduce
    return fl


# ----------------------------------------------------------------------------
# Forward wrapper
# ----------------------------------------------------------------------------
@functools.partial(jax.jit, static_argnames=("batch_tile",))
def simple_cnn_forward(x_nchw, ops, batch_tile=4):
    n, _, height, width = x_nchw.shape
    B = batch_tile
    h_c1, w_c1 = height - KSIZE + 1, width - KSIZE + 1
    h_c2 = h_c1 // 2 - KSIZE + 1
    c1 = ops["b1s"].shape[0] // h_c1
    c2 = ops["b2s"].shape[0] // h_c2

    x = x_nchw[:, 0, :, :]                                        # Cin == 1 -> (N, H, W)
    g = -(-n // B)
    if g * B != n:                                                # pad batch to a full tile
        x = jnp.concatenate(
            [x, jnp.zeros((g * B - n, height, width), x.dtype)], axis=0)

    xs1 = _stack_input(x, B, w_c1).astype(ops["L1cat"].dtype)     # (G, 5*H, B*W)

    operand_names = ("L1cat", "b1s", "S2", "Cp1", "L2cat", "b2s", "Cp2",
                     "wfcb", "blk", "bfc")
    consts = [ops[k] for k in operand_names]

    def const_spec(a):
        zero = (0,) * a.ndim
        return pl.BlockSpec(a.shape, lambda i, _z=zero: _z)

    in_specs = [pl.BlockSpec((1, KSIZE * height, B * width), lambda i: (i, 0, 0))]
    in_specs += [const_spec(a) for a in consts]

    flops = int(g * _flops_per_step(height, width, B, c1, c2))
    bytes_accessed = int(xs1.size * xs1.dtype.itemsize
                         + sum(a.size * a.dtype.itemsize for a in consts)
                         + g * 2 * B * 4)

    out = pl.pallas_call(
        _fused_cnn_kernel,
        out_shape=jax.ShapeDtypeStruct((g, 2, B), jnp.float32),
        grid=(g,),
        in_specs=in_specs,
        out_specs=pl.BlockSpec((1, 2, B), lambda i: (i, 0, 0)),
        scratch_shapes=[pltpu.VMEM((c1 * h_c1, B * width), jnp.float32),
                        pltpu.VMEM((c2 * h_c2, B * width), jnp.float32)],
        compiler_params=pltpu.CompilerParams(
            dimension_semantics=("parallel",),
            vmem_limit_bytes=32 * 1024 * 1024,
        ),
        cost_estimate=pl.CostEstimate(
            flops=flops, transcendentals=0, bytes_accessed=bytes_accessed),
    )(xs1, *consts)

    return jnp.transpose(out, (0, 2, 1)).reshape(g * B, 2)[:n]


# ----------------------------------------------------------------------------
# Pure-JAX reference (true module semantics, high precision)
# ----------------------------------------------------------------------------
def reference_forward(x_nchw, params):
    hp = lax.Precision.HIGHEST

    def conv(x, w, b):
        y = lax.conv_general_dilated(
            x, w, window_strides=(1, 1), padding="VALID",
            dimension_numbers=("NCHW", "OIHW", "NCHW"), precision=hp)
        return jnp.maximum(y + b[None, :, None, None], 0.0)

    def pool(x):
        return lax.reduce_window(x, -jnp.inf, lax.max,
                                 (1, 1, 2, 2), (1, 1, 2, 2), "VALID")

    x = pool(conv(x_nchw, params["w1"], params["b1"]))
    x = pool(conv(x, params["w2"], params["b2"]))
    xf = x.reshape(x.shape[0], -1)
    return jnp.dot(xf, params["wfc"].T, precision=hp) + params["bfc"]


# ----------------------------------------------------------------------------
if __name__ == "__main__":
    key = jax.random.PRNGKey(0)
    kx, k1, k2, k3, k4, k5, k6 = jax.random.split(key, 7)

    # Small shapes: batch 8, 1 input channel, 36x32 spatial.
    # B=4 images per grid step -> B*W = 128 lanes (full lane tile); grid = 2 parallel steps.
    N, H, W, B = 8, 36, 32, 4
    x = jax.random.normal(kx, (N, 1, H, W), dtype=jnp.float32)

    hp2 = ((H - KSIZE + 1) // 2 - KSIZE + 1) // 2
    wp2 = ((W - KSIZE + 1) // 2 - KSIZE + 1) // 2
    flat = 16 * hp2 * wp2   # = 480 at 36x32 (nominal module would be 16*397*397)
    params = {
        "w1": 0.1 * jax.random.normal(k1, (6, 1, 5, 5), dtype=jnp.float32),
        "b1": 0.1 * jax.random.normal(k2, (6,), dtype=jnp.float32),
        "w2": 0.1 * jax.random.normal(k3, (16, 6, 5, 5), dtype=jnp.float32),
        "b2": 0.1 * jax.random.normal(k4, (16,), dtype=jnp.float32),
        "wfc": 0.1 * jax.random.normal(k5, (2, flat), dtype=jnp.float32),
        "bfc": 0.1 * jax.random.normal(k6, (2,), dtype=jnp.float32),
    }

    ref = jax.block_until_ready(reference_forward(x, params))

    # Exact path (f32 MXU operands) -- tight reference check.
    ops_f32 = prepare_operands(params, H, W, B, compute_dtype=jnp.float32)
    out_f32 = jax.block_until_ready(simple_cnn_forward(x, ops_f32, batch_tile=B))
    assert out_f32.shape == (N, 2), out_f32.shape
    assert jnp.allclose(out_f32, ref, rtol=1e-3, atol=1e-3), (out_f32, ref)

    # Perf path (bf16 MXU operands, f32 accumulation) -- looser check (bf16 mantissa loss).
    ops_bf16 = prepare_operands(params, H, W, B, compute_dtype=jnp.bfloat16)
    out_bf16 = jax.block_until_ready(simple_cnn_forward(x, ops_bf16, batch_tile=B))
    assert jnp.allclose(out_bf16, ref, rtol=5e-2, atol=5e-2), (out_bf16, ref)

    print("KERNEL_OK")
</pallas_src>

<mosaic_0001>
module attributes {stable_mosaic.version = 11 : i64} {
  func.func @_fused_cnn_kernel(%arg0: i32, %arg1: memref<1x180x128xf32, #tpu.memory_space<vmem>>, %arg2: memref<192x180xf32, #tpu.memory_space<vmem>>, %arg3: memref<192x1xf32, #tpu.memory_space<vmem>>, %arg4: memref<5x128x128xf32, #tpu.memory_space<vmem>>, %arg5: memref<2x128x128xf32, #tpu.memory_space<vmem>>, %arg6: memref<192x480xf32, #tpu.memory_space<vmem>>, %arg7: memref<192x1xf32, #tpu.memory_space<vmem>>, %arg8: memref<2x128x128xf32, #tpu.memory_space<vmem>>, %arg9: memref<2x96x128xf32, #tpu.memory_space<vmem>>, %arg10: memref<128x4xf32, #tpu.memory_space<vmem>>, %arg11: memref<2x1xf32, #tpu.memory_space<vmem>>, %arg12: memref<1x2x4xf32, #tpu.memory_space<vmem>>, %arg13: memref<192x128xf32, #tpu.memory_space<vmem>>, %arg14: memref<192x128xf32, #tpu.memory_space<vmem>>) attributes {dimension_semantics = [#tpu.dimension_semantics<parallel>], iteration_bounds = array<i64: 2>, scalar_prefetch = 0 : i64, scratch_operands = 2 : i64, tpu.core_type = #tpu.core_type<tc>, window_params = [{transform_indices = @transform_0, window_bounds = array<i64: 1, 180, 128>}, {pipeline_mode = #tpu.pipeline_mode<synchronous>, transform_indices = @transform_1, window_bounds = array<i64: 192, 180>}, {pipeline_mode = #tpu.pipeline_mode<synchronous>, transform_indices = @transform_2, window_bounds = array<i64: 192, 1>}, {pipeline_mode = #tpu.pipeline_mode<synchronous>, transform_indices = @transform_3, window_bounds = array<i64: 5, 128, 128>}, {pipeline_mode = #tpu.pipeline_mode<synchronous>, transform_indices = @transform_4, window_bounds = array<i64: 2, 128, 128>}, {pipeline_mode = #tpu.pipeline_mode<synchronous>, transform_indices = @transform_5, window_bounds = array<i64: 192, 480>}, {pipeline_mode = #tpu.pipeline_mode<synchronous>, transform_indices = @transform_6, window_bounds = array<i64: 192, 1>}, {pipeline_mode = #tpu.pipeline_mode<synchronous>, transform_indices = @transform_7, window_bounds = array<i64: 2, 128, 128>}, {pipeline_mode = #tpu.pipeline_mode<synchronous>, transform_indices = @transform_8, window_bounds = array<i64: 2, 96, 128>}, {pipeline_mode = #tpu.pipeline_mode<synchronous>, transform_indices = @transform_9, window_bounds = array<i64: 128, 4>}, {pipeline_mode = #tpu.pipeline_mode<synchronous>, transform_indices = @transform_10, window_bounds = array<i64: 2, 1>}, {transform_indices = @transform_11, window_bounds = array<i64: 1, 2, 4>}]} {
    %c0 = arith.constant 0 : index
    %c0_0 = arith.constant 0 : index
    %0 = vector.load %arg2[%c0, %c0_0] : memref<192x180xf32, #tpu.memory_space<vmem>>, vector<192x180xf32>
    %c0_1 = arith.constant 0 : index
    %c0_2 = arith.constant 0 : index
    %c0_3 = arith.constant 0 : index
    %1 = vector.load %arg1[%c0_1, %c0_2, %c0_3] : memref<1x180x128xf32, #tpu.memory_space<vmem>>, vector<1x180x128xf32>
    %2 = vector.shape_cast %1 : vector<1x180x128xf32> to vector<180x128xf32>
    %cst = arith.constant dense<0.000000e+00> : vector<192x128xf32>
    %3 = tpu.matmul %0, %2, %cst {dimension_numbers = #tpu.dot_dimension_numbers<[1], [0], [0], [1], [0, 0, 1, 1], [], []>} : vector<192x180xf32>, vector<180x128xf32>, vector<192x128xf32> -> vector<192x128xf32>
    %c0_4 = arith.constant 0 : index
    %c0_5 = arith.constant 0 : index
    %4 = vector.load %arg3[%c0_4, %c0_5] : memref<192x1xf32, #tpu.memory_space<vmem>>, vector<192x1xf32>
    %5 = vector.broadcast %4 : vector<192x1xf32> to vector<192x128xf32>
    %6 = arith.addf %3, %5 : vector<192x128xf32>
    %cst_6 = arith.constant 0.000000e+00 : f32
    %7 = vector.broadcast %cst_6 : f32 to vector<192x128xf32>
    %8 = arith.maximumf %6, %7 : vector<192x128xf32>
    %c0_7 = arith.constant 0 : index
    %c0_8 = arith.constant 0 : index
    %9 = vector.load %arg13[%c0_7, %c0_8] : memref<192x128xf32, #tpu.memory_space<vmem>>, vector<192x128xf32>
    tpu.vector_store %arg13[%c0_7, %c0_8], %8 {strides = array<i32>} : memref<192x128xf32, #tpu.memory_space<vmem>>, vector<192x128xf32>,
    %c0_9 = arith.constant 0 : index
    %c0_10 = arith.constant 0 : index
    %10 = tpu.strided_load %arg13[%c0_9, %c0_10] {strides = array<i32: 2, 1>} : memref<192x128xf32, #tpu.memory_space<vmem>>, vector<96x128xf32>
    %c1 = arith.constant 1 : index
    %c0_11 = arith.constant 0 : index
    %11 = tpu.strided_load %arg13[%c1, %c0_11] {strides = array<i32: 2, 1>} : memref<192x128xf32, #tpu.memory_space<vmem>>, vector<96x128xf32>
    %12 = arith.maximumf %10, %11 : vector<96x128xf32>
    %c0_12 = arith.constant 0 : index
    %c0_13 = arith.constant 0 : index
    %c0_14 = arith.constant 0 : index
    %13 = vector.load %arg5[%c0_12, %c0_13, %c0_14] : memref<2x128x128xf32, #tpu.memory_space<vmem>>, vector<1x128x128xf32>
    %14 = vector.shape_cast %13 : vector<1x128x128xf32> to vector<128x128xf32>
    %cst_15 = arith.constant dense<0.000000e+00> : vector<96x128xf32>
    %15 = tpu.matmul %12, %14, %cst_15 {dimension_numbers = #tpu.dot_dimension_numbers<[1], [0], [0], [1], [0, 0, 1, 1], [], []>} : vector<96x128xf32>, vector<128x128xf32>, vector<96x128xf32> -> vector<96x128xf32>
    %c1_16 = arith.constant 1 : index
    %c0_17 = arith.constant 0 : index
    %c0_18 = arith.constant 0 : index
    %16 = vector.load %arg5[%c1_16, %c0_17, %c0_18] : memref<2x128x128xf32, #tpu.memory_space<vmem>>, vector<1x128x128xf32>
    %17 = vector.shape_cast %16 : vector<1x128x128xf32> to vector<128x128xf32>
    %cst_19 = arith.constant dense<0.000000e+00> : vector<96x128xf32>
    %18 = tpu.matmul %12, %17, %cst_19 {dimension_numbers = #tpu.dot_dimension_numbers<[1], [0], [0], [1], [0, 0, 1, 1], [], []>} : vector<96x128xf32>, vector<128x128xf32>, vector<96x128xf32> -> vector<96x128xf32>
    %19 = arith.maximumf %15, %18 : vector<96x128xf32>
    %c0_20 = arith.constant 0 : index
    %c0_21 = arith.constant 0 : index
    %c0_22 = arith.constant 0 : index
    %20 = vector.load %arg4[%c0_20, %c0_21, %c0_22] : memref<5x128x128xf32, #tpu.memory_space<vmem>>, vector<1x128x128xf32>
    %21 = vector.shape_cast %20 : vector<1x128x128xf32> to vector<128x128xf32>
    %cst_23 = arith.constant dense<0.000000e+00> : vector<96x128xf32>
    %22 = tpu.matmul %19, %21, %cst_23 {dimension_numbers = #tpu.dot_dimension_numbers<[1], [0], [0], [1], [0, 0, 1, 1], [], []>} : vector<96x128xf32>, vector<128x128xf32>, vector<96x128xf32> -> vector<96x128xf32>
    %c1_24 = arith.constant 1 : index
    %c0_25 = arith.constant 0 : index
    %c0_26 = arith.constant 0 : index
    %23 = vector.load %arg4[%c1_24, %c0_25, %c0_26] : memref<5x128x128xf32, #tpu.memory_space<vmem>>, vector<1x128x128xf32>
    %24 = vector.shape_cast %23 : vector<1x128x128xf32> to vector<128x128xf32>
    %cst_27 = arith.constant dense<0.000000e+00> : vector<96x128xf32>
    %25 = tpu.matmul %19, %24, %cst_27 {dimension_numbers = #tpu.dot_dimension_numbers<[1], [0], [0], [1], [0, 0, 1, 1], [], []>} : vector<96x128xf32>, vector<128x128xf32>, vector<96x128xf32> -> vector<96x128xf32>
    %c2 = arith.constant 2 : index
    %c0_28 = arith.constant 0 : index
    %c0_29 = arith.constant 0 : index
    %26 = vector.load %arg4[%c2, %c0_28, %c0_29] : memref<5x128x128xf32, #tpu.memory_space<vmem>>, vector<1x128x128xf32>
    %27 = vector.shape_cast %26 : vector<1x128x128xf32> to vector<128x128xf32>
    %cst_30 = arith.constant dense<0.000000e+00> : vector<96x128xf32>
    %28 = tpu.matmul %19, %27, %cst_30 {dimension_numbers = #tpu.dot_dimension_numbers<[1], [0], [0], [1], [0, 0, 1, 1], [], []>} : vector<96x128xf32>, vector<128x128xf32>, vector<96x128xf32> -> vector<96x128xf32>
    %c3 = arith.constant 3 : index
    %c0_31 = arith.constant 0 : index
    %c0_32 = arith.constant 0 : index
    %29 = vector.load %arg4[%c3, %c0_31, %c0_32] : memref<5x128x128xf32, #tpu.memory_space<vmem>>, vector<1x128x128xf32>
    %30 = vector.shape_cast %29 : vector<1x128x128xf32> to vector<128x128xf32>
    %cst_33 = arith.constant dense<0.000000e+00> : vector<96x128xf32>
    %31 = tpu.matmul %19, %30, %cst_33 {dimension_numbers = #tpu.dot_dimension_numbers<[1], [0], [0], [1], [0, 0, 1, 1], [], []>} : vector<96x128xf32>, vector<128x128xf32>, vector<96x128xf32> -> vector<96x128xf32>
    %c4 = arith.constant 4 : index
    %c0_34 = arith.constant 0 : index
    %c0_35 = arith.constant 0 : index
    %32 = vector.load %arg4[%c4, %c0_34, %c0_35] : memref<5x128x128xf32, #tpu.memory_space<vmem>>, vector<1x128x128xf32>
    %33 = vector.shape_cast %32 : vector<1x128x128xf32> to vector<128x128xf32>
    %cst_36 = arith.constant dense<0.000000e+00> : vector<96x128xf32>
    %34 = tpu.matmul %19, %33, %cst_36 {dimension_numbers = #tpu.dot_dimension_numbers<[1], [0], [0], [1], [0, 0, 1, 1], [], []>} : vector<96x128xf32>, vector<128x128xf32>, vector<96x128xf32> -> vector<96x128xf32>
    %35 = tpu.concatenate %22, %25, %28, %31, %34 in 0 : vector<96x128xf32>, vector<96x128xf32>, vector<96x128xf32>, vector<96x128xf32>, vector<96x128xf32> -> vector<480x128xf32>
    %c0_37 = arith.constant 0 : index
    %c0_38 = arith.constant 0 : index
    %36 = vector.load %arg6[%c0_37, %c0_38] : memref<192x480xf32, #tpu.memory_space<vmem>>, vector<192x480xf32>
    %cst_39 = arith.constant dense<0.000000e+00> : vector<192x128xf32>
    %37 = tpu.matmul %36, %35, %cst_39 {dimension_numbers = #tpu.dot_dimension_numbers<[1], [0], [0], [1], [0, 0, 1, 1], [], []>} : vector<192x480xf32>, vector<480x128xf32>, vector<192x128xf32> -> vector<192x128xf32>
    %c0_40 = arith.constant 0 : index
    %c0_41 = arith.constant 0 : index
    %38 = vector.load %arg7[%c0_40, %c0_41] : memref<192x1xf32, #tpu.memory_space<vmem>>, vector<192x1xf32>
    %39 = vector.broadcast %38 : vector<192x1xf32> to vector<192x128xf32>
    %40 = arith.addf %37, %39 : vector<192x128xf32>
    %cst_42 = arith.constant 0.000000e+00 : f32
    %41 = vector.broadcast %cst_42 : f32 to vector<192x128xf32>
    %42 = arith.maximumf %40, %41 : vector<192x128xf32>
    %c0_43 = arith.constant 0 : index
    %c0_44 = arith.constant 0 : index
    %43 = vector.load %arg14[%c0_43, %c0_44] : memref<192x128xf32, #tpu.memory_space<vmem>>, vector<192x128xf32>
    tpu.vector_store %arg14[%c0_43, %c0_44], %42 {strides = array<i32>} : memref<192x128xf32, #tpu.memory_space<vmem>>, vector<192x128xf32>,
    %c0_45 = arith.constant 0 : index
    %c0_46 = arith.constant 0 : index
    %44 = tpu.strided_load %arg14[%c0_45, %c0_46] {strides = array<i32: 2, 1>} : memref<192x128xf32, #tpu.memory_space<vmem>>, vector<96x128xf32>
    %c1_47 = arith.constant 1 : index
    %c0_48 = arith.constant 0 : index
    %45 = tpu.strided_load %arg14[%c1_47, %c0_48] {strides = array<i32: 2, 1>} : memref<192x128xf32, #tpu.memory_space<vmem>>, vector<96x128xf32>
    %46 = arith.maximumf %44, %45 : vector<96x128xf32>
    %c0_49 = arith.constant 0 : index
    %c0_50 = arith.constant 0 : index
    %c0_51 = arith.constant 0 : index
    %47 = vector.load %arg8[%c0_49, %c0_50, %c0_51] : memref<2x128x128xf32, #tpu.memory_space<vmem>>, vector<1x128x128xf32>
    %48 = vector.shape_cast %47 : vector<1x128x128xf32> to vector<128x128xf32>
    %cst_52 = arith.constant dense<0.000000e+00> : vector<96x128xf32>
    %49 = tpu.matmul %46, %48, %cst_52 {dimension_numbers = #tpu.dot_dimension_numbers<[1], [0], [0], [1], [0, 0, 1, 1], [], []>} : vector<96x128xf32>, vector<128x128xf32>, vector<96x128xf32> -> vector<96x128xf32>
    %c1_53 = arith.constant 1 : index
    %c0_54 = arith.constant 0 : index
    %c0_55 = arith.constant 0 : index
    %50 = vector.load %arg8[%c1_53, %c0_54, %c0_55] : memref<2x128x128xf32, #tpu.memory_space<vmem>>, vector<1x128x128xf32>
    %51 = vector.shape_cast %50 : vector<1x128x128xf32> to vector<128x128xf32>
    %cst_56 = arith.constant dense<0.000000e+00> : vector<96x128xf32>
    %52 = tpu.matmul %46, %51, %cst_56 {dimension_numbers = #tpu.dot_dimension_numbers<[1], [0], [0], [1], [0, 0, 1, 1], [], []>} : vector<96x128xf32>, vector<128x128xf32>, vector<96x128xf32> -> vector<96x128xf32>
    %53 = arith.maximumf %49, %52 : vector<96x128xf32>
    %c0_57 = arith.constant 0 : index
    %c0_58 = arith.constant 0 : index
    %c0_59 = arith.constant 0 : index
    %54 = vector.load %arg9[%c0_57, %c0_58, %c0_59] : memref<2x96x128xf32, #tpu.memory_space<vmem>>, vector<1x96x128xf32>
    %55 = vector.shape_cast %54 : vector<1x96x128xf32> to vector<96x128xf32>
    %56 = arith.mulf %55, %53 : vector<96x128xf32>
    %cst_60 = arith.constant dense<0.000000e+00> : vector<128xf32>
    %57 = vector.multi_reduction <add>, %56, %cst_60 [0] : vector<96x128xf32> to vector<128xf32>
    %58 = vector.shape_cast %57 : vector<128xf32> to vector<1x128xf32>
    %c1_61 = arith.constant 1 : index
    %c0_62 = arith.constant 0 : index
    %c0_63 = arith.constant 0 : index
    %59 = vector.load %arg9[%c1_61, %c0_62, %c0_63] : memref<2x96x128xf32, #tpu.memory_space<vmem>>, vector<1x96x128xf32>
    %60 = vector.shape_cast %59 : vector<1x96x128xf32> to vector<96x128xf32>
    %61 = arith.mulf %60, %53 : vector<96x128xf32>
    %cst_64 = arith.constant dense<0.000000e+00> : vector<128xf32>
    %62 = vector.multi_reduction <add>, %61, %cst_64 [0] : vector<96x128xf32> to vector<128xf32>
    %63 = vector.shape_cast %62 : vector<128xf32> to vector<1x128xf32>
    %64 = tpu.concatenate %58, %63 in 0 : vector<1x128xf32>, vector<1x128xf32> -> vector<2x128xf32>
    %c0_65 = arith.constant 0 : index
    %c0_66 = arith.constant 0 : index
    %65 = vector.load %arg10[%c0_65, %c0_66] : memref<128x4xf32, #tpu.memory_space<vmem>>, vector<128x4xf32>
    %cst_67 = arith.constant dense<0.000000e+00> : vector<2x4xf32>
    %66 = tpu.matmul %64, %65, %cst_67 {dimension_numbers = #tpu.dot_dimension_numbers<[1], [0], [0], [1], [0, 0, 1, 1], [], []>} : vector<2x128xf32>, vector<128x4xf32>, vector<2x4xf32> -> vector<2x4xf32>
    %c0_68 = arith.constant 0 : index
    %c0_69 = arith.constant 0 : index
    %67 = vector.load %arg11[%c0_68, %c0_69] : memref<2x1xf32, #tpu.memory_space<vmem>>, vector<2x1xf32>
    %68 = vector.broadcast %67 : vector<2x1xf32> to vector<2x4xf32>
    %69 = arith.addf %66, %68 : vector<2x4xf32>
    %c0_70 = arith.constant 0 : index
    %c0_71 = arith.constant 0 : index
    %c0_72 = arith.constant 0 : index
    %70 = vector.load %arg12[%c0_70, %c0_71, %c0_72] : memref<1x2x4xf32, #tpu.memory_space<vmem>>, vector<1x2x4xf32>
    %71 = vector.shape_cast %70 : vector<1x2x4xf32> to vector<2x4xf32>
    %72 = vector.shape_cast %69 : vector<2x4xf32> to vector<1x2x4xf32>
    tpu.vector_store %arg12[%c0_70, %c0_71, %c0_72], %72 {strides = array<i32>} : memref<1x2x4xf32, #tpu.memory_space<vmem>>, vector<1x2x4xf32>,
    return
  }
  func.func @transform_0(%arg0: i32) -> (i32, i32, i32) {
    %c0_i32 = arith.constant 0 : i32
    %c0_i32_0 = arith.constant 0 : i32
    %c0_i32_1 = arith.constant 0 : i32
    return %arg0, %c0_i32, %c0_i32_0 : i32, i32, i32
  }
  func.func @transform_1(%arg0: i32) -> (i32, i32) {
    %c0_i32 = arith.constant 0 : i32
    %c0_i32_0 = arith.constant 0 : i32
    %c0_i32_1 = arith.constant 0 : i32
    return %c0_i32, %c0_i32_0 : i32, i32
  }
  func.func @transform_2(%arg0: i32) -> (i32, i32) {
    %c0_i32 = arith.constant 0 : i32
    %c0_i32_0 = arith.constant 0 : i32
    %c0_i32_1 = arith.constant 0 : i32
    return %c0_i32, %c0_i32_0 : i32, i32
  }
  func.func @transform_3(%arg0: i32) -> (i32, i32, i32) {
    %c0_i32 = arith.constant 0 : i32
    %c0_i32_0 = arith.constant 0 : i32
    %c0_i32_1 = arith.constant 0 : i32
    %c0_i32_2 = arith.constant 0 : i32
    return %c0_i32, %c0_i32_0, %c0_i32_1 : i32, i32, i32
  }
  func.func @transform_4(%arg0: i32) -> (i32, i32, i32) {
    %c0_i32 = arith.constant 0 : i32
    %c0_i32_0 = arith.constant 0 : i32
    %c0_i32_1 = arith.constant 0 : i32
    %c0_i32_2 = arith.constant 0 : i32
    return %c0_i32, %c0_i32_0, %c0_i32_1 : i32, i32, i32
  }
  func.func @transform_5(%arg0: i32) -> (i32, i32) {
    %c0_i32 = arith.constant 0 : i32
    %c0_i32_0 = arith.constant 0 : i32
    %c0_i32_1 = arith.constant 0 : i32
    return %c0_i32, %c0_i32_0 : i32, i32
  }
  func.func @transform_6(%arg0: i32) -> (i32, i32) {
    %c0_i32 = arith.constant 0 : i32
    %c0_i32_0 = arith.constant 0 : i32
    %c0_i32_1 = arith.constant 0 : i32
    return %c0_i32, %c0_i32_0 : i32, i32
  }
  func.func @transform_7(%arg0: i32) -> (i32, i32, i32) {
    %c0_i32 = arith.constant 0 : i32
    %c0_i32_0 = arith.constant 0 : i32
    %c0_i32_1 = arith.constant 0 : i32
    %c0_i32_2 = arith.constant 0 : i32
    return %c0_i32, %c0_i32_0, %c0_i32_1 : i32, i32, i32
  }
  func.func @transform_8(%arg0: i32) -> (i32, i32, i32) {
    %c0_i32 = arith.constant 0 : i32
    %c0_i32_0 = arith.constant 0 : i32
    %c0_i32_1 = arith.constant 0 : i32
    %c0_i32_2 = arith.constant 0 : i32
    return %c0_i32, %c0_i32_0, %c0_i32_1 : i32, i32, i32
  }
  func.func @transform_9(%arg0: i32) -> (i32, i32) {
    %c0_i32 = arith.constant 0 : i32
    %c0_i32_0 = arith.constant 0 : i32
    %c0_i32_1 = arith.constant 0 : i32
    return %c0_i32, %c0_i32_0 : i32, i32
  }
  func.func @transform_10(%arg0: i32) -> (i32, i32) {
    %c0_i32 = arith.constant 0 : i32
    %c0_i32_0 = arith.constant 0 : i32
    %c0_i32_1 = arith.constant 0 : i32
    return %c0_i32, %c0_i32_0 : i32, i32
  }
  func.func @transform_11(%arg0: i32) -> (i32, i32, i32) {
    %c0_i32 = arith.constant 0 : i32
    %c0_i32_0 = arith.constant 0 : i32
    %c0_i32_1 = arith.constant 0 : i32
    return %arg0, %c0_i32, %c0_i32_0 : i32, i32, i32
  }
}

</mosaic_0001>

<bundles_post_ra>
// kernel: simple_cnn_forward.1
= control target key start
LH: loop header
LB: loop body
LE: loop exit
PB: predicated region body
PF: predicated region fallthrough
CT: control target
= control target key end

     0   :  { %s4818_s17 = smov 0   ;;  %s6365_s0 = inlined_call_operand.vmem [shape: f32[2,180,128], index: 0, kind: input, shape index: {}]   ;;  %s6366_s1 = inlined_call_operand.vmem [shape: f32[192,180], index: 1, kind: input, shape index: {}]   ;;  %s6367_s2 = inlined_call_operand.vmem [shape: f32[192,1], index: 2, kind: input, shape index: {}]   ;;  %s6368_s3 = inlined_call_operand.vmem [shape: f32[5,128,128], index: 3, kind: input, shape index: {}]   ;;  %s6369_s4 = inlined_call_operand.vmem [shape: f32[2,128,128], index: 4, kind: input, shape index: {}]   ;;  %s6370_s5 = inlined_call_operand.vmem [shape: f32[192,480], index: 5, kind: input, shape index: {}]   ;;  %s6371_s6 = inlined_call_operand.vmem [shape: f32[192,1], index: 6, kind: input, shape index: {}]   ;;  %s6372_s7 = inlined_call_operand.vmem [shape: f32[2,128,128], index: 7, kind: input, shape index: {}]   ;;  %s6373_s8 = inlined_call_operand.vmem [shape: f32[2,96,128], index: 8, kind: input, shape index: {}]   ;;  %s6374_s9 = inlined_call_operand.vmem [shape: f32[128,4], index: 9, kind: input, shape index: {}]   ;;  %s6375_s10 = inlined_call_operand.vmem [shape: f32[2,1], index: 10, kind: input, shape index: {}]   ;;  %s6376_s11 = inlined_call_operand.vmem [shape: f32[2,2,4], index: 11, kind: output, shape index: {}]  }
   0x1 LB: > { %s3290_s18 = sadd.s32 4294967295, %s4752_s17   ;;  %p3294_p0 = scmp.ge.s32.totalorder %s4752_s17, 1  ;;  %s4752_s17 = sphi %s4818_s17, %s21_s17  }
   0x2   : > { %p337_p1 = scmp.lt.s32.totalorder %s4752_s17, 3 }
   0x4   : > { %p338_p2 = pnand %p3294_p0, %p337_p1 }
   0x5   : > { %p376_p3 = scmp.lt.s32.totalorder (!%p338_p2), %s3290_s18, 1  ;;  %v386_v0 = vld [vmem:[%s6366_s1 + $0x8] sm:$0xff] (!%p338_p2)  ;;  %vm600_vm0 = vcmask (!%p338_p2), 424960   ;;  %v4754_v1 = vmov (!%p338_p2), 0.0|0.0   ;;  %v4755_v2 = vmov (!%p338_p2), 0   ;;  %v456_v12 = vld [vmem:[%s6367_s2] sm:$0xff] (!%p338_p2) }
   0x6   : > { %341 = sbr.rel (%p338_p2) target bundleno = 1720 (0x6b8), region = 64  ;;  %4210 = vmatprep.subr.bf16.mxu0 (!%p338_p2), %v4754_v1  ;;  %3298 = vmatprep.mubr.msk.f32.mxu0 (!%p338_p2), %vm600_vm0, %v386_v0  ;;  %v458_v15 = vld [vmem:[%s6367_s2 + $0x10] sm:$0xff] (!%p338_p2)  ;;  %v457_v16 = vld [vmem:[%s6367_s2 + $0x8] sm:$0xff] (!%p338_p2)  ;;  %v459_v17 = vld [vmem:[%s6367_s2 + $0x18] sm:$0xff] (!%p338_p2)  ;;  %v4756_v56 = vmov (!%p338_p2), 0.0   ;;  %vm673_vm1 = vcmask (!%p338_p2), 1043456  }
   0x7   : > { %4744 = vset.pattern.permute.xlu0 (!%p338_p2), %v4755_v2  ;;  %4745 = vset.pattern.permute.xlu1 (!%p338_p2), %v4755_v2  ;;  %v460_v21 = vld [vmem:[%s6367_s2 + $0x20] sm:$0xff] (!%p338_p2)  ;;  %v461_v22 = vld [vmem:[%s6367_s2 + $0x28] sm:$0xff] (!%p338_p2)  ;;  %v462_v26 = vld [vmem:[%s6367_s2 + $0x30] sm:$0xff] (!%p338_p2)  ;;  %vm2213_vm2 = vcmask (!%p338_p2), 785408   ;;  %vm4757_vm3 = vmmov (!%p338_p2), 0   ;;  %vm3141_vm4 = vcmask (!%p338_p2), 1040384  }
   0x8   : > { %482 = vperm.xlu0 (!%p338_p2), %4744, %v456_v12   ;;  %492 = vperm.xlu1 (!%p338_p2), %4745, %v458_v15   ;;  %v463_v27 = vld [vmem:[%s6367_s2 + $0x38] sm:$0xff] (!%p338_p2)  ;;  %v464_v31 = vld [vmem:[%s6367_s2 + $0x40] sm:$0xff] (!%p338_p2)  ;;  %v465_v32 = vld [vmem:[%s6367_s2 + $0x48] sm:$0xff] (!%p338_p2)  ;;  %vm3235_vm5 = vcmask (!%p338_p2), 25600  }
   0x9   : > { %v466_v36 = vld [vmem:[%s6367_s2 + $0x50] sm:$0xff] (!%p338_p2)  ;;  %v467_v37 = vld [vmem:[%s6367_s2 + $0x58] sm:$0xff] (!%p338_p2)  ;;  %v468_v41 = vld [vmem:[%s6367_s2 + $0x60] sm:$0xff] (!%p338_p2) }
   0xa   : > { %v469_v42 = vld [vmem:[%s6367_s2 + $0x68] sm:$0xff] (!%p338_p2)  ;;  %v470_v46 = vld [vmem:[%s6367_s2 + $0x70] sm:$0xff] (!%p338_p2)  ;;  %v471_v47 = vld [vmem:[%s6367_s2 + $0x78] sm:$0xff] (!%p338_p2) }
   0xb   : > { %v472_v51 = vld [vmem:[%s6367_s2 + $0x80] sm:$0xff] (!%p338_p2)  ;;  %v473_v52 = vld [vmem:[%s6367_s2 + $0x88] sm:$0xff] (!%p338_p2)  ;;  %v474_v54 = vld [vmem:[%s6367_s2 + $0x90] sm:$0xff] (!%p338_p2) }
   0xc   : > { %487 = vperm.xlu0 (!%p338_p2), %4744, %v457_v16   ;;  %497 = vperm.xlu1 (!%p338_p2), %4745, %v459_v17   ;;  %v475_v55 = vld [vmem:[%s6367_s2 + $0x98] sm:$0xff] (!%p338_p2)  ;;  %v385_v58 = vld [vmem:[%s6366_s1] sm:$0xff] (!%p338_p2)  ;;  %v477_v61 = vld [vmem:[%s6367_s2 + $0xa8] sm:$0xff] (!%p338_p2) }
   0xd   : > { %s6378_s18 = smov (!%p376_p3, %s3290_s18), 1  ;;  %v476_v59 = vld [vmem:[%s6367_s2 + $0xa0] sm:$0xff]  ;;  %v388_v60 = vld [vmem:[%s6366_s1 + $0x18] sm:$0xff]  ;;  %v970_v63 = vld [vmem:[%s6369_s4 + $0x8] sm:$0xff] }
   0xe   : > { %s4731_s21 = smul.u32 184, %s6378_s18  ;;  %v969_v62 = vld [vmem:[%s6369_s4] sm:$0xff]  ;;  %v387_v2 = vld [vmem:[%s6366_s1 + $0x10] sm:$0xff]  ;;  %v2070_v12 = vld [vmem:[%s6371_s6 + $0x8] sm:$0xff]  ;;  %s3296_s12 = sshll.u32 %s6378_s18, 1 }
   0xf   : > { %v4243_v0 = vpack.c.bf16 %v970_v63, %v969_v62  ;;  %v394_v15 = vld [vmem:[%s6366_s1 + $0x48] sm:$0xff]  ;;  %v2072_v16 = vld [vmem:[%s6371_s6 + $0x18] sm:$0xff]  ;;  %v393_v17 = vld [vmem:[%s6366_s1 + $0x40] sm:$0xff]  ;;  %s384_s15 = scalar_lea.vmem %s6376_s11, %s3296_s12 }
  0x10   : > { %s4837_s24 = scalar_lea.vmem %s6365_s0, %s4731_s21  ;;  %502 = vperm.xlu0 %4744, %v460_v21   ;;  %507 = vperm.xlu1 %4745, %v461_v22   ;;  %v395_v21 = vld [vmem:[%s6366_s1 + $0x50] sm:$0xff]  ;;  %v418_v62 = vld [vmem:[%s6366_s1 + $0x108] sm:$0xff]  ;;  %v417_v63 = vld [vmem:[%s6366_s1 + $0x100] sm:$0xff] }
  0x11   : > { %v433_v3 = vld [vmem:[%s4837_s24] sm:$0xff]  ;;  %v434_v4 = vld [vmem:[%s4837_s24 + $0x8] sm:$0xff]  ;;  %v435_v5 = vld [vmem:[%s4837_s24 + $0x10] sm:$0xff]  ;;  %4244 = vmatprep.subr.bf16.mxu1 %v4243_v0 }
  0x12   : > { %v4211_v6 = vpack.c.bf16 %v434_v4, %v433_v3  ;;  %v436_v7 = vld [vmem:[%s4837_s24 + $0x18] sm:$0xff]  ;;  %v437_v9 = vld [vmem:[%s4837_s24 + $0x20] sm:$0xff]  ;;  %v438_v10 = vld [vmem:[%s4837_s24 + $0x28] sm:$0xff]  ;;  %4246 = vmatpush3.bf16.msra.mxu1 %v4243_v0 }
  0x13   : > { %v4214_v8 = vpack.c.bf16 %v436_v7, %v435_v5  ;;  %v4217_v11 = vpack.c.bf16 %v438_v10, %v437_v9  ;;  %v439_v13 = vld [vmem:[%s4837_s24 + $0x30] sm:$0xff]  ;;  %v440_v14 = vld [vmem:[%s4837_s24 + $0x38] sm:$0xff]  ;;  %v441_v19 = vld [vmem:[%s4837_s24 + $0x40] sm:$0xff] }
  0x14   : > { %4212 = vmatpush1.bf16.msra.mxu0 %v4211_v6  ;;  %v4220_v18 = vpack.c.bf16 %v440_v14, %v439_v13  ;;  %v442_v20 = vld [vmem:[%s4837_s24 + $0x48] sm:$0xff]  ;;  %v443_v24 = vld [vmem:[%s4837_s24 + $0x50] sm:$0xff]  ;;  %v444_v25 = vld [vmem:[%s4837_s24 + $0x58] sm:$0xff]  ;;  %512 = vperm.xlu0 %4744, %v462_v26  }
  0x15   : > { %4213 = vmatprep.subr.bf16.mxu0 %v4754_v1  ;;  %v4223_v23 = vpack.c.bf16 %v442_v20, %v441_v19  ;;  %v4226_v28 = vpack.c.bf16 %v444_v25, %v443_v24  ;;  %v445_v29 = vld [vmem:[%s4837_s24 + $0x60] sm:$0xff]  ;;  %v446_v30 = vld [vmem:[%s4837_s24 + $0x68] sm:$0xff]  ;;  %517 = vperm.xlu1 %4745, %v463_v27   ;;  %v447_v34 = vld [vmem:[%s4837_s24 + $0x70] sm:$0xff] }
  0x16   : > { %v4229_v33 = vpack.c.bf16 %v446_v30, %v445_v29  ;;  %v448_v35 = vld [vmem:[%s4837_s24 + $0x78] sm:$0xff]  ;;  %v449_v39 = vld [vmem:[%s4837_s24 + $0x80] sm:$0xff]  ;;  %v450_v40 = vld [vmem:[%s4837_s24 + $0x88] sm:$0xff] }
  0x17   : > { %v4232_v38 = vpack.c.bf16 %v448_v35, %v447_v34  ;;  %v4235_v43 = vpack.c.bf16 %v450_v40, %v449_v39  ;;  %v451_v44 = vld [vmem:[%s4837_s24 + $0x90] sm:$0xff]  ;;  %v452_v45 = vld [vmem:[%s4837_s24 + $0x98] sm:$0xff]  ;;  %v453_v49 = vld [vmem:[%s4837_s24 + $0xa0] sm:$0xff] }
  0x18   : > { %4215 = vmatpush1.bf16.msra.mxu0 %v4214_v8  ;;  %522 = vperm.xlu0 %4744, %v464_v31   ;;  %v4238_v48 = vpack.c.bf16 %v452_v45, %v451_v44  ;;  %v454_v50 = vld [vmem:[%s4837_s24 + $0xa8] sm:$0xff]  ;;  %v455_v57 = vld [vmem:[%s4837_s24 + $0xb0] sm:$0xf]  ;;  %v479_v5 = vld [vmem:[%s6367_s2 + $0xb8] sm:$0xff] }
  0x19   : > { %4216 = vmatprep.subr.bf16.mxu0 %v4754_v1  ;;  %527 = vperm.xlu1 %4745, %v465_v32   ;;  %v4241_v53 = vpack.c.bf16 %v454_v50, %v453_v49  ;;  %v478_v3 = vld [vmem:[%s6367_s2 + $0xb0] sm:$0xff]  ;;  %v390_v4 = vld [vmem:[%s6366_s1 + $0x28] sm:$0xff]  ;;  %v972_v7 = vld [vmem:[%s6369_s4 + $0x18] sm:$0xff] }
  0x1a   : > { %v971_v6 = vld [vmem:[%s6369_s4 + $0x10] sm:$0xff]  ;;  %v389_v9 = vld [vmem:[%s6366_s1 + $0x20] sm:$0xff]  ;;  %v396_v19 = vld [vmem:[%s6366_s1 + $0x58] sm:$0xff] }
  0x1b   : > { %v4247_v8 = vpack.c.bf16 %v972_v7, %v971_v6  ;;  %v2069_v10 = vld [vmem:[%s6371_s6] sm:$0xff]  ;;  %v391_v13 = vld [vmem:[%s6366_s1 + $0x30] sm:$0xff]  ;;  %v2074_v20 = vld [vmem:[%s6371_s6 + $0x28] sm:$0xff] }
  0x1c   : > { %4218 = vmatpush1.bf16.msra.mxu0 %v4217_v11  ;;  %532 = vperm.xlu0 %4744, %v466_v36   ;;  %v392_v11 = vld [vmem:[%s6366_s1 + $0x38] sm:$0xff]  ;;  %v2071_v14 = vld [vmem:[%s6371_s6 + $0x10] sm:$0xff]  ;;  %v397_v25 = vld [vmem:[%s6366_s1 + $0x60] sm:$0xff] }
  0x1d   : > { %4219 = vmatprep.subr.bf16.mxu0 %v4754_v1  ;;  %537 = vperm.xlu1 %4745, %v467_v37   ;;  %v2075_v22 = vld [vmem:[%s6371_s6 + $0x30] sm:$0xff]  ;;  %v2076_v24 = vld [vmem:[%s6371_s6 + $0x38] sm:$0xff]  ;;  %v2077_v26 = vld [vmem:[%s6371_s6 + $0x40] sm:$0xff] }
  0x1e   : > { %4248 = vmatprep.subr.bf16.mxu1 %v4247_v8  ;;  %v400_v27 = vld [vmem:[%s6366_s1 + $0x78] sm:$0xff]  ;;  %v399_v29 = vld [vmem:[%s6366_s1 + $0x70] sm:$0xff]  ;;  %v402_v31 = vld [vmem:[%s6366_s1 + $0x88] sm:$0xff] }
  0x1f   : > { %4250 = vmatpush3.bf16.msra.mxu1 %v4247_v8  ;;  %v2079_v30 = vld [vmem:[%s6371_s6 + $0x50] sm:$0xff]  ;;  %v2080_v32 = vld [vmem:[%s6371_s6 + $0x58] sm:$0xff]  ;;  %v2081_v34 = vld [vmem:[%s6371_s6 + $0x60] sm:$0xff] }
  0x20   : > { %4221 = vmatpush1.bf16.msra.mxu0 %v4220_v18  ;;  %542 = vperm.xlu0 %4744, %v468_v41   ;;  %v2073_v18 = vld [vmem:[%s6371_s6 + $0x20] sm:$0xff]  ;;  %v404_v35 = vld [vmem:[%s6366_s1 + $0x98] sm:$0xff]  ;;  %v2082_v36 = vld [vmem:[%s6371_s6 + $0x68] sm:$0xff] }
  0x21   : > { %4222 = vmatprep.subr.bf16.mxu0 %v4754_v1  ;;  %547 = vperm.xlu1 %4745, %v469_v42   ;;  %v403_v37 = vld [vmem:[%s6366_s1 + $0x90] sm:$0xff]  ;;  %v406_v39 = vld [vmem:[%s6366_s1 + $0xa8] sm:$0xff]  ;;  %v2084_v40 = vld [vmem:[%s6371_s6 + $0x78] sm:$0xff] }
  0x22   : > { %v405_v41 = vld [vmem:[%s6366_s1 + $0xa0] sm:$0xff]  ;;  %v2086_v44 = vld [vmem:[%s6371_s6 + $0x88] sm:$0xff]  ;;  %v407_v45 = vld [vmem:[%s6366_s1 + $0xb0] sm:$0xff] }
  0x23   : > { %v2085_v42 = vld [vmem:[%s6371_s6 + $0x80] sm:$0xff]  ;;  %v420_v0 = vld [vmem:[%s6366_s1 + $0x118] sm:$0xff]  ;;  %v423_v6 = vld [vmem:[%s6366_s1 + $0x130] sm:$0xff] }
  0x24   : > { %4224 = vmatpush1.bf16.msra.mxu0 %v4223_v23  ;;  %552 = vperm.xlu0 %4744, %v470_v46   ;;  %v398_v23 = vld [vmem:[%s6366_s1 + $0x68] sm:$0xff]  ;;  %v2087_v46 = vld [vmem:[%s6371_s6 + $0x90] sm:$0xff]  ;;  %v409_v49 = vld [vmem:[%s6366_s1 + $0xc0] sm:$0xff] }
  0x25   : > { %4225 = vmatprep.subr.bf16.mxu0 %v4754_v1  ;;  %557 = vperm.xlu1 %4745, %v471_v47   ;;  %v410_v47 = vld [vmem:[%s6366_s1 + $0xc8] sm:$0xff]  ;;  %v2089_v50 = vld [vmem:[%s6371_s6 + $0xa0] sm:$0xff] }
  0x26   : > { %v426_v7 = vld [vmem:[%s6366_s1 + $0x148] sm:$0xff]  ;;  %v425_v8 = vld [vmem:[%s6366_s1 + $0x140] sm:$0xff] }
  0x28   : > { %4227 = vmatpush1.bf16.msra.mxu0 %v4226_v28  ;;  %562 = vperm.xlu0 %4744, %v472_v51   ;;  %v2078_v28 = vld [vmem:[%s6371_s6 + $0x48] sm:$0xff]  ;;  %v412_v51 = vld [vmem:[%s6366_s1 + $0xd8] sm:$0xff] }
  0x29   : > { %4228 = vmatprep.subr.bf16.mxu0 %v4754_v1  ;;  %567 = vperm.xlu1 %4745, %v473_v52   ;;  %v2090_v52 = vld [vmem:[%s6371_s6 + $0xa8] sm:$0xff] }
  0x2c   : > { %4230 = vmatpush1.bf16.msra.mxu0 %v4229_v33  ;;  %572 = vperm.xlu0 %4744, %v474_v54   ;;  %v401_v33 = vld [vmem:[%s6366_s1 + $0x80] sm:$0xff]  ;;  %v2091_v54 = vld [vmem:[%s6371_s6 + $0xb0] sm:$0xff] }
  0x2d   : > { %4231 = vmatprep.subr.bf16.mxu0 %v4754_v1  ;;  %577 = vperm.xlu1 %4745, %v475_v55   ;;  %v414_v55 = vld [vmem:[%s6366_s1 + $0xe8] sm:$0xff] }
  0x30   : > { %4233 = vmatpush1.bf16.msra.mxu0 %v4232_v38  ;;  %582 = vperm.xlu0 %4744, %v476_v59   ;;  %v2083_v38 = vld [vmem:[%s6371_s6 + $0x70] sm:$0xff]  ;;  %v3159_v59 = vld [vmem:[%s6375_s10] sm:$0x3] }
  0x31   : > { %4234 = vmatprep.subr.bf16.mxu0 %v4754_v1  ;;  %587 = vperm.xlu1 %4745, %v477_v61   ;;  %v415_v61 = vld [vmem:[%s6366_s1 + $0xf0] sm:$0xff] }
  0x34   : > { %4236 = vmatpush1.bf16.msra.mxu0 %v4235_v43  ;;  %592 = vperm.xlu0 %4744, %v478_v3   ;;  %v408_v43 = vld [vmem:[%s6366_s1 + $0xb8] sm:$0xff]  ;;  %v422_v3 = vld [vmem:[%s6366_s1 + $0x128] sm:$0xff] }
  0x35   : > { %4237 = vmatprep.subr.bf16.mxu0 %v4754_v1  ;;  %597 = vperm.xlu1 %4745, %v479_v5   ;;  %v424_v5 = vld [vmem:[%s6366_s1 + $0x138] sm:$0xff] }
  0x38   : > { %4239 = vmatpush1.bf16.msra.mxu0 %v4238_v48  ;;  %2095 = vperm.xlu0 %4744, %v2069_v10   ;;  %v2088_v48 = vld [vmem:[%s6371_s6 + $0x98] sm:$0xff]  ;;  %v427_v10 = vld [vmem:[%s6366_s1 + $0x150] sm:$0xff] }
  0x39   : > { %4240 = vmatprep.subr.bf16.mxu0 %v4754_v1  ;;  %2100 = vperm.xlu1 %4745, %v2070_v12   ;;  %v973_v12 = vld [vmem:[%s6369_s4 + $0x20] sm:$0xff] }
  0x3c   : > { %4242 = vmatpush1.bf16.msra.mxu0 %v4241_v53  ;;  %2105 = vperm.xlu0 %4744, %v2071_v14   ;;  %v411_v53 = vld [vmem:[%s6366_s1 + $0xd0] sm:$0xff] }
  0x3d   : > { %721 = vmatprep.subr.mxu0 %v4756_v56  ;;  %2110 = vperm.xlu1 %4745, %v2072_v16   ;;  %v432_v16 = vld [vmem:[%s6366_s1 + $0x178] sm:$0xff] }
  0x40   : > { %3297 = vmatpush1.msk.msra.mxu0 %vm673_vm1, %v455_v57  ;;  %2115 = vperm.xlu0 %4744, %v2073_v18   ;;  %v2092_v57 = vld [vmem:[%s6371_s6 + $0xb8] sm:$0xff] }
  0x41   : > { %742 = vmatmul.mubr.f32.vlgmr.msra.gmra.mrb[0].mxu0 %v385_v58  ;;  %2120 = vperm.xlu1 %4745, %v2074_v20   ;;  %v413_v58 = vld [vmem:[%s6366_s1 + $0xe0] sm:$0xff]  ;;  %v976_v18 = vld [vmem:[%s6369_s4 + $0x38] sm:$0xff]  ;;  %v431_v20 = vld [vmem:[%s6366_s1 + $0x170] sm:$0xff] }
  0x42   : > { %3299 = vmatprep.mubr.msk.f32.mxu0 %vm600_vm0, %v388_v60  ;;  %v416_v60 = vld [vmem:[%s6366_s1 + $0xf8] sm:$0xff] }
  0x44   : > { %2125 = vperm.xlu0 %4744, %v2075_v22   ;;  %v978_v22 = vld [vmem:[%s6369_s4 + $0x48] sm:$0xff] }
  0x45   : > { %747 = vmatmul.mubr.f32.gmra.mrb[2].mxu0 %v387_v2  ;;  %2130 = vperm.xlu1 %4745, %v2076_v24   ;;  %v419_v2 = vld [vmem:[%s6366_s1 + $0x110] sm:$0xff] }
  0x46   : > { %3300 = vmatprep.mubr.msk.f32.mxu0 %vm600_vm0, %v390_v4  ;;  %v421_v4 = vld [vmem:[%s6366_s1 + $0x120] sm:$0xff]  ;;  %v979_v24 = vld [vmem:[%s6369_s4 + $0x50] sm:$0xff] }
  0x48   : > { %2135 = vperm.xlu0 %4744, %v2077_v26  }
  0x49   : > { %752 = vmatmul.mubr.f32.gmra.mrb[4].mxu0 %v389_v9  ;;  %2140 = vperm.xlu1 %4745, %v2078_v28   ;;  %v428_v9 = vld [vmem:[%s6366_s1 + $0x158] sm:$0xff]  ;;  %v982_v28 = vld [vmem:[%s6369_s4 + $0x68] sm:$0xff] }
  0x4a   : > { %3301 = vmatprep.mubr.msk.f32.mxu0 %vm600_vm0, %v392_v11  ;;  %v430_v11 = vld [vmem:[%s6366_s1 + $0x168] sm:$0xff] }
  0x4c   : > { %2145 = vperm.xlu0 %4744, %v2079_v30   ;;  %v983_v30 = vld [vmem:[%s6369_s4 + $0x70] sm:$0xff] }
  0x4d   : > { %757 = vmatmul.mubr.f32.gmra.mrb[6].mxu0 %v391_v13  ;;  %2150 = vperm.xlu1 %4745, %v2080_v32   ;;  %v974_v13 = vld [vmem:[%s6369_s4 + $0x28] sm:$0xff] }
  0x4e   : > { %3302 = vmatprep.mubr.msk.f32.mxu0 %vm600_vm0, %v394_v15  ;;  %v4251_v14 = vpack.c.bf16 %v974_v13, %v973_v12  ;;  %v429_v15 = vld [vmem:[%s6366_s1 + $0x160] sm:$0xff] }
  0x50   : > { %2155 = vperm.xlu0 %4744, %v2081_v34   ;;  %4252 = vmatprep.subr.bf16.mxu1 %v4251_v14  ;;  %v3323_v34 = vld [vmem:[%s6369_s4 + $0x88] sm:$0xff] }
  0x51   : > { %762 = vmatmul.mubr.f32.gmra.mrb[8].mxu0 %v393_v17  ;;  %2160 = vperm.xlu1 %4745, %v2082_v36   ;;  %v975_v17 = vld [vmem:[%s6369_s4 + $0x30] sm:$0xff] }
  0x52   : > { %3303 = vmatprep.mubr.msk.f32.mxu0 %vm600_vm0, %v396_v19  ;;  %4254 = vmatpush3.bf16.msra.mxu1 %v4251_v14  ;;  %v4255_v19 = vpack.c.bf16 %v976_v18, %v975_v17  ;;  %v3326_v17 = vld [vmem:[%s6369_s4 + $0xa0] sm:$0xff]  ;;  %v3327_v18 = vld [vmem:[%s6369_s4 + $0xa8] sm:$0xff] }
  0x54   : > { %2165 = vperm.xlu0 %4744, %v2083_v38   ;;  %4256 = vmatprep.subr.bf16.mxu1 %v4255_v19 }
  0x55   : > { %767 = vmatmul.mubr.f32.gmra.mrb[10].mxu0 %v395_v21  ;;  %2170 = vperm.xlu1 %4745, %v2084_v40   ;;  %v977_v21 = vld [vmem:[%s6369_s4 + $0x40] sm:$0xff] }
  0x56   : > { %3304 = vmatprep.mubr.msk.f32.mxu0 %vm600_vm0, %v398_v23  ;;  %4258 = vmatpush3.bf16.msra.mxu1 %v4255_v19  ;;  %v4259_v23 = vpack.c.bf16 %v978_v22, %v977_v21 }
  0x58   : > { %2175 = vperm.xlu0 %4744, %v2085_v42   ;;  %4260 = vmatprep.subr.bf16.mxu1 %v4259_v23 }
  0x59   : > { %772 = vmatmul.mubr.f32.gmra.mrb[12].mxu0 %v397_v25  ;;  %2180 = vperm.xlu1 %4745, %v2086_v44   ;;  %v980_v25 = vld [vmem:[%s6369_s4 + $0x58] sm:$0xff] }
  0x5a   : > { %3305 = vmatprep.mubr.msk.f32.mxu0 %vm600_vm0, %v400_v27  ;;  %4262 = vmatpush3.bf16.msra.mxu1 %v4259_v23  ;;  %v4263_v26 = vpack.c.bf16 %v980_v25, %v979_v24  ;;  %v981_v27 = vld [vmem:[%s6369_s4 + $0x60] sm:$0xff]  ;;  %v4283_v24 = vpack.c.bf16 %v3327_v18, %v3326_v17  ;;  %v3328_v25 = vld [vmem:[%s6369_s4 + $0xb0] sm:$0xff] }
  0x5c   : > { %2185 = vperm.xlu0 %4744, %v2087_v46   ;;  %4264 = vmatprep.subr.bf16.mxu1 %v4263_v26 }
  0x5d   : > { %777 = vmatmul.mubr.f32.gmra.mrb[14].mxu0 %v399_v29  ;;  %2190 = vperm.xlu1 %4745, %v2088_v48   ;;  %v4267_v29 = vpack.c.bf16 %v982_v28, %v981_v27 }
  0x5e   : > { %3306 = vmatprep.mubr.msk.f32.mxu0 %vm600_vm0, %v402_v31  ;;  %4266 = vmatpush3.bf16.msra.mxu1 %v4263_v26  ;;  %v984_v31 = vld [vmem:[%s6369_s4 + $0x78] sm:$0xff] }
  0x5f   : > { %4268 = vmatprep.subr.bf16.mxu1 %v4267_v29  ;;  %v4271_v32 = vpack.c.bf16 %v984_v31, %v983_v30  ;;  %v3329_v26 = vld [vmem:[%s6369_s4 + $0xb8] sm:$0xff] }
  0x60   : > { %2195 = vperm.xlu0 %4744, %v2089_v50  }
  0x61   : > { %782 = vmatmul.mubr.f32.gmra.mrb[16].mxu0 %v401_v33  ;;  %2200 = vperm.xlu1 %4745, %v2090_v52   ;;  %v3322_v33 = vld [vmem:[%s6369_s4 + $0x80] sm:$0xff] }
  0x62   : > { %3307 = vmatprep.mubr.msk.f32.mxu0 %vm600_vm0, %v404_v35  ;;  %4270 = vmatpush3.bf16.msra.mxu1 %v4267_v29  ;;  %v4275_v35 = vpack.c.bf16 %v3323_v34, %v3322_v33 }
  0x63   : > { %4272 = vmatprep.subr.bf16.mxu1 %v4271_v32 }
  0x64   : > { %2205 = vperm.xlu0 %4744, %v2091_v54  }
  0x65   : > { %787 = vmatmul.mubr.f32.gmra.mrb[18].mxu0 %v403_v37  ;;  %2210 = vperm.xlu1 %4745, %v2092_v57  }
  0x66   : > { %3308 = vmatprep.mubr.msk.f32.mxu0 %vm600_vm0, %v406_v39  ;;  %4274 = vmatpush3.bf16.msra.mxu1 %v4271_v32 }
  0x67   : > { %4276 = vmatprep.subr.bf16.mxu1 %v4275_v35 }
  0x68   : > { %3162 = vperm.xlu0 %4744, %v3159_v59  }
  0x69   : > { %792 = vmatmul.mubr.f32.gmra.mrb[20].mxu0 %v405_v41 }
  0x6a   : > { %3309 = vmatprep.mubr.msk.f32.mxu0 %vm600_vm0, %v408_v43 }
  0x6d   : > { %797 = vmatmul.mubr.f32.gmra.mrb[22].mxu0 %v407_v45 }
  0x6e   : > { %3310 = vmatprep.mubr.msk.f32.mxu0 %vm600_vm0, %v410_v47 }
  0x71   : > { %802 = vmatmul.mubr.f32.gmra.mrb[24].mxu0 %v409_v49 }
  0x72   : > { %3311 = vmatprep.mubr.msk.f32.mxu0 %vm600_vm0, %v412_v51 }
  0x75   : > { %807 = vmatmul.mubr.f32.gmra.mrb[26].mxu0 %v411_v53 }
  0x76   : > { %3312 = vmatprep.mubr.msk.f32.mxu0 %vm600_vm0, %v414_v55 }
  0x79   : > { %812 = vmatmul.mubr.f32.gmra.mrb[28].mxu0 %v413_v58 }
  0x7a   : > { %3313 = vmatprep.mubr.msk.f32.mxu0 %vm600_vm0, %v416_v60 }
  0x7d   : > { %817 = vmatmul.mubr.f32.gmra.mrb[30].mxu0 %v415_v61 }
  0x7e   : > { %3314 = vmatprep.mubr.msk.f32.mxu0 %vm600_vm0, %v418_v62 }
  0x81   : > { %822 = vmatmul.mubr.f32.gmra.mrb[32].mxu0 %v417_v63 }
  0x82   : > { %3315 = vmatprep.mubr.msk.f32.mxu0 %vm600_vm0, %v420_v0 }
  0x85   : > { %827 = vmatmul.mubr.f32.gmra.mrb[34].mxu0 %v419_v2 }
  0x86   : > { %3316 = vmatprep.mubr.msk.f32.mxu0 %vm600_vm0, %v422_v3 }
  0x87   : > { %v483_v36 = vpop.permute.xlu0 %482  ;;  %v493_v45 = vpop.permute.xlu1 %492 }
  0x89   : > { %832 = vmatmul.mubr.f32.gmra.mrb[36].mxu0 %v421_v4 }
  0x8a   : > { %3317 = vmatprep.mubr.msk.f32.mxu0 %vm600_vm0, %v424_v5 }
  0x8b   : > { %v488_v41 = vpop.permute.xlu0 %487  ;;  %v498_v51 = vpop.permute.xlu1 %497 }
  0x8d   : > { %837 = vmatmul.mubr.f32.gmra.mrb[38].mxu0 %v423_v6  ;;  %v3324_v6 = vld [vmem:[%s6369_s4 + $0x90] sm:$0xff] }
  0x8e   : > { %3318 = vmatprep.mubr.msk.f32.mxu0 %vm600_vm0, %v426_v7  ;;  %v3325_v7 = vld [vmem:[%s6369_s4 + $0x98] sm:$0xff] }
  0x8f   : > { %v503_v57 = vpop.permute.xlu0 %502  ;;  %v508_v2 = vpop.permute.xlu1 %507 }
  0x91   : > { %842 = vmatmul.mubr.f32.gmra.mrb[40].mxu0 %v425_v8 }
  0x92   : > { %3319 = vmatprep.mubr.msk.f32.mxu0 %vm600_vm0, %v428_v9 }
  0x93   : > { %v513_v9 = vpop.permute.xlu0 %512 }
  0x95   : > { %847 = vmatmul.mubr.f32.gmra.mrb[42].mxu0 %v427_v10 }
  0x96   : > { %3320 = vmatprep.mubr.msk.f32.mxu0 %vm600_vm0, %v430_v11 }
  0x97   : > { %v523_v28 = vpop.permute.xlu0 %522 }
  0x99   : > { %852 = vmatmul.mubr.f32.gmra.mrb[44].mxu0 %v429_v15 }
  0x9a   : > { %3321 = vmatprep.mubr.msk.f32.mxu0 %vm600_vm0, %v432_v16  ;;  %v4279_v16 = vpack.c.bf16 %v3325_v7, %v3324_v6 }
  0x9d   : > { %857 = vmatmul.mubr.f32.gmra.mrb[46].mxu0 %v431_v20  ;;  %v518_v20 = vpop.permute.xlu1 %517 }
 0x114   : > { %v743_v37 = vpop.f32.mrb[0].mxu0 }
 0x115   : > { %v744_v38 = vadd.f32 %v743_v37, %v483_v36  ;;  %v745_v39 = vpop.f32.mrb[1].mxu0  ;;  %v3330_v36 = vld [vmem:[%s6369_s4 + $0xc0] sm:$0xff]  ;;  %v3331_v37 = vld [vmem:[%s6369_s4 + $0xc8] sm:$0xff] }
 0x116   : > { %v528_v39 = vpop.permute.xlu1 %527 }
 0x117   : > { %v862_v40 = vmax.f32 %v744_v38, 0.0 }
 0x118   : > { %v748_v42 = vpop.f32.mrb[2].mxu0 }
 0x119   : > { %886 = vst [vmem:[#allocation2] sm:$0xff] %v862_v40  ;;  %v749_v43 = vadd.f32 %v748_v42, %v488_v41  ;;  %v750_v44 = vpop.f32.mrb[3].mxu0 }
 0x11a   : > { %v3332_v44 = vld [vmem:[%s6369_s4 + $0xd0] sm:$0xff] }
 0x11b   : > { %v863_v46 = vmax.f32 %v749_v43, 0.0  ;;  %v4291_v43 = vpack.c.bf16 %v3331_v37, %v3330_v36 }
 0x11c   : > { %v753_v47 = vpop.f32.mrb[4].mxu0 }
 0x11d   : > { %887 = vst [vmem:[#allocation2 + $0x8] sm:$0xff] %v863_v46  ;;  %v754_v48 = vadd.f32 %v753_v47, %v493_v45  ;;  %v755_v49 = vpop.f32.mrb[5].mxu0  ;;  %v3333_v45 = vld [vmem:[%s6369_s4 + $0xd8] sm:$0xff]  ;;  %v533_v47 = vpop.permute.xlu0 %532 }
 0x11f   : > { %v864_v50 = vmax.f32 %v754_v48, 0.0 }
 0x120   : > { %v758_v52 = vpop.f32.mrb[6].mxu0 }
 0x121   : > { %888 = vst [vmem:[#allocation2 + $0x10] sm:$0xff] %v864_v50  ;;  %v759_v53 = vadd.f32 %v758_v52, %v498_v51  ;;  %v760_v54 = vpop.f32.mrb[7].mxu0 }
 0x122   : > { %v4295_v54 = vpack.c.bf16 %v3333_v45, %v3332_v44 }
 0x123   : > { %v865_v55 = vmax.f32 %v759_v53, 0.0 }
 0x124   : > { %v763_v58 = vpop.f32.mrb[8].mxu0  ;;  %v910_v59 = vld [vmem:[#allocation2] ss:$2 sm:$0xff]  ;;  %v934_v60 = vld [vmem:[#allocation2 + $0x1] ss:$2 sm:$0xff] }
 0x125   : > { %889 = vst [vmem:[#allocation2 + $0x18] sm:$0xff] %v865_v55  ;;  %v764_v61 = vadd.f32 %v763_v58, %v503_v57  ;;  %v765_v62 = vpop.f32.mrb[9].mxu0  ;;  %v5238_v63 = vmax.f32 %v910_v59, %v934_v60  ;;  %v3334_v55 = vld [vmem:[%s6369_s4 + $0xe0] sm:$0xff]  ;;  %v3335_v57 = vld [vmem:[%s6369_s4 + $0xe8] sm:$0xff]  ;;  %v538_v59 = vpop.permute.xlu1 %537 }
 0x127   : > { %v866_v0 = vmax.f32 %v764_v61, 0.0  ;;  %3757 = vmatprep.mubr.f32.mxu1 %v5238_v63 }
 0x128   : > { %v768_v3 = vpop.f32.mrb[10].mxu0 }
 0x129   : > { %890 = vst [vmem:[#allocation2 + $0x20] sm:$0xff] %v866_v0  ;;  %v769_v4 = vadd.f32 %v768_v3, %v508_v2  ;;  %v770_v5 = vpop.f32.mrb[11].mxu0  ;;  %v4299_v0 = vpack.c.bf16 %v3335_v57, %v3334_v55  ;;  %v3336_v2 = vld [vmem:[%s6369_s4 + $0xf0] sm:$0xff]  ;;  %v3337_v3 = vld [vmem:[%s6369_s4 + $0xf8] sm:$0xff] }
 0x12a   : > { %v543_v5 = vpop.permute.xlu0 %542 }
 0x12b   : > { %v867_v8 = vmax.f32 %v769_v4, 0.0 }
 0x12c   : > { %v773_v10 = vpop.f32.mrb[12].mxu0  ;;  %v912_v11 = vld [vmem:[#allocation2 + $0x10] ss:$2 sm:$0xff]  ;;  %v936_v12 = vld [vmem:[#allocation2 + $0x11] ss:$2 sm:$0xff] }
 0x12d   : > { %891 = vst [vmem:[#allocation2 + $0x28] sm:$0xff] %v867_v8  ;;  %v774_v13 = vadd.f32 %v773_v10, %v513_v9  ;;  %v775_v14 = vpop.f32.mrb[13].mxu0  ;;  %v5247_v15 = vmax.f32 %v912_v11, %v936_v12  ;;  %v4303_v12 = vpack.c.bf16 %v3337_v3, %v3336_v2 }
 0x12e   : > { %v548_v14 = vpop.permute.xlu1 %547 }
 0x12f   : > { %v868_v19 = vmax.f32 %v774_v13, 0.0  ;;  %3758 = vmatmul.mubr.f32.vlgmr.msra.gmra.mrb[0].mxu1 %v5247_v15 }
 0x130   : > { %v778_v21 = vpop.f32.mrb[14].mxu0  ;;  %4278 = vmatpush3.bf16.msra.mxu1 %v4275_v35  ;;  %v4287_v35 = vpack.c.bf16 %v3329_v26, %v3328_v25 }
 0x131   : > { %892 = vst [vmem:[#allocation2 + $0x30] sm:$0xff] %v868_v19  ;;  %v779_v22 = vadd.f32 %v778_v21, %v518_v20  ;;  %v780_v23 = vpop.f32.mrb[15].mxu0  ;;  %4280 = vmatprep.subr.bf16.mxu1 %v4279_v16  ;;  %v553_v20 = vpop.permute.xlu0 %552 }
 0x133   : > { %v869_v27 = vmax.f32 %v779_v22, 0.0 }
 0x134   : > { %v783_v29 = vpop.f32.mrb[16].mxu0  ;;  %v914_v30 = vld [vmem:[#allocation2 + $0x20] ss:$2 sm:$0xff]  ;;  %v938_v31 = vld [vmem:[#allocation2 + $0x21] ss:$2 sm:$0xff]  ;;  %4282 = vmatpush3.bf16.msra.mxu1 %v4279_v16 }
 0x135   : > { %893 = vst [vmem:[#allocation2 + $0x38] sm:$0xff] %v869_v27  ;;  %v784_v32 = vadd.f32 %v783_v29, %v523_v28  ;;  %v785_v33 = vpop.f32.mrb[17].mxu0  ;;  %v5262_v34 = vmax.f32 %v914_v30, %v938_v31  ;;  %4284 = vmatprep.subr.bf16.mxu1 %v4283_v24  ;;  %v558_v28 = vpop.permute.xlu1 %557 }
 0x136   : > { %v563_v33 = vpop.permute.xlu0 %562 }
 0x137   : > { %v870_v38 = vmax.f32 %v784_v32, 0.0  ;;  %3760 = vmatprep.mubr.f32.mxu1 %v5262_v34 }
 0x138   : > { %v788_v40 = vpop.f32.mrb[18].mxu0  ;;  %4286 = vmatpush3.bf16.msra.mxu1 %v4283_v24 }
 0x139   : > { %894 = vst [vmem:[#allocation2 + $0x40] sm:$0xff] %v870_v38  ;;  %v789_v41 = vadd.f32 %v788_v40, %v528_v39  ;;  %v790_v42 = vpop.f32.mrb[19].mxu0  ;;  %4288 = vmatprep.subr.bf16.mxu1 %v4287_v35 }
 0x13a   : > { %v568_v42 = vpop.permute.xlu1 %567 }
 0x13b   : > { %v871_v46 = vmax.f32 %v789_v41, 0.0 }
 0x13c   : > { %v793_v48 = vpop.f32.mrb[20].mxu0  ;;  %v916_v49 = vld [vmem:[#allocation2 + $0x30] ss:$2 sm:$0xff]  ;;  %v940_v50 = vld [vmem:[#allocation2 + $0x31] ss:$2 sm:$0xff]  ;;  %4290 = vmatpush3.bf16.msra.mxu1 %v4287_v35 }
 0x13d   : > { %895 = vst [vmem:[#allocation2 + $0x48] sm:$0xff] %v871_v46  ;;  %v794_v51 = vadd.f32 %v793_v48, %v533_v47  ;;  %v795_v52 = vpop.f32.mrb[21].mxu0  ;;  %v5277_v53 = vmax.f32 %v916_v49, %v940_v50  ;;  %4292 = vmatprep.subr.bf16.mxu1 %v4291_v43  ;;  %v573_v47 = vpop.permute.xlu0 %572 }
 0x13e   : > { %v578_v57 = vpop.permute.xlu1 %577 }
 0x13f   : > { %v872_v58 = vmax.f32 %v794_v51, 0.0  ;;  %3761 = vmatmul.mubr.f32.gmra.mrb[2].mxu1 %v5277_v53 }
 0x140   : > { %v798_v60 = vpop.f32.mrb[22].mxu0  ;;  %4294 = vmatpush3.bf16.msra.mxu1 %v4291_v43 }
 0x141   : > { %896 = vst [vmem:[#allocation2 + $0x50] sm:$0xff] %v872_v58  ;;  %v799_v61 = vadd.f32 %v798_v60, %v538_v59  ;;  %v800_v62 = vpop.f32.mrb[23].mxu0  ;;  %4296 = vmatprep.subr.bf16.mxu1 %v4295_v54 }
 0x142   : > { %v583_v62 = vpop.permute.xlu0 %582 }
 0x143   : > { %v873_v4 = vmax.f32 %v799_v61, 0.0 }
 0x144   : > { %v803_v6 = vpop.f32.mrb[24].mxu0  ;;  %v918_v7 = vld [vmem:[#allocation2 + $0x40] ss:$2 sm:$0xff]  ;;  %v942_v8 = vld [vmem:[#allocation2 + $0x41] ss:$2 sm:$0xff]  ;;  %4298 = vmatpush3.bf16.msra.mxu1 %v4295_v54 }
 0x145   : > { %897 = vst [vmem:[#allocation2 + $0x58] sm:$0xff] %v873_v4  ;;  %v804_v9 = vadd.f32 %v803_v6, %v543_v5  ;;  %v805_v10 = vpop.f32.mrb[25].mxu0  ;;  %v5292_v11 = vmax.f32 %v918_v7, %v942_v8  ;;  %4300 = vmatprep.subr.bf16.mxu1 %v4299_v0  ;;  %v588_v8 = vpop.permute.xlu1 %587 }
 0x147   : > { %v874_v13 = vmax.f32 %v804_v9, 0.0  ;;  %3763 = vmatprep.mubr.f32.mxu1 %v5292_v11 }
 0x148   : > { %v808_v16 = vpop.f32.mrb[26].mxu0  ;;  %4302 = vmatpush3.bf16.msra.mxu1 %v4299_v0 }
 0x149   : > { %898 = vst [vmem:[#allocation2 + $0x60] sm:$0xff] %v874_v13  ;;  %v809_v17 = vadd.f32 %v808_v16, %v548_v14  ;;  %v810_v18 = vpop.f32.mrb[27].mxu0  ;;  %4304 = vmatprep.subr.bf16.mxu1 %v4303_v12  ;;  %v593_v14 = vpop.permute.xlu0 %592 }
 0x14b   : > { %v875_v19 = vmax.f32 %v809_v17, 0.0 }
 0x14c   : > { %v813_v21 = vpop.f32.mrb[28].mxu0  ;;  %v920_v22 = vld [vmem:[#allocation2 + $0x50] ss:$2 sm:$0xff]  ;;  %v944_v23 = vld [vmem:[#allocation2 + $0x51] ss:$2 sm:$0xff]  ;;  %4306 = vmatpush3.bf16.msra.mxu1 %v4303_v12 }
 0x14d   : > { %899 = vst [vmem:[#allocation2 + $0x68] sm:$0xff] %v875_v19  ;;  %v814_v24 = vadd.f32 %v813_v21, %v553_v20  ;;  %v815_v25 = vpop.f32.mrb[29].mxu0  ;;  %v5295_v26 = vmax.f32 %v920_v22, %v944_v23  ;;  %v598_v23 = vpop.permute.xlu1 %597 }
 0x14f   : > { %v876_v27 = vmax.f32 %v814_v24, 0.0  ;;  %3764 = vmatmul.mubr.f32.gmra.mrb[4].mxu1 %v5295_v26 }
 0x150   : > { %v818_v29 = vpop.f32.mrb[30].mxu0 }
 0x151   : > { %900 = vst [vmem:[#allocation2 + $0x70] sm:$0xff] %v876_v27  ;;  %v819_v30 = vadd.f32 %v818_v29, %v558_v28  ;;  %v820_v31 = vpop.f32.mrb[31].mxu0 }
 0x153   : > { %v877_v32 = vmax.f32 %v819_v30, 0.0 }
 0x154   : > { %v823_v35 = vpop.f32.mrb[32].mxu0  ;;  %v922_v36 = vld [vmem:[#allocation2 + $0x60] ss:$2 sm:$0xff]  ;;  %v946_v37 = vld [vmem:[#allocation2 + $0x61] ss:$2 sm:$0xff] }
 0x155   : > { %901 = vst [vmem:[#allocation2 + $0x78] sm:$0xff] %v877_v32  ;;  %v824_v38 = vadd.f32 %v823_v35, %v563_v33  ;;  %v825_v39 = vpop.f32.mrb[33].mxu0  ;;  %v5298_v40 = vmax.f32 %v922_v36, %v946_v37  ;;  %v1267_v37 = vld [vmem:[%s6368_s3 + $0x18] sm:$0xff] }
 0x156   : > { %v3357_v39 = vld [vmem:[%s6368_s3 + $0x118] sm:$0xff] }
 0x157   : > { %v878_v41 = vmax.f32 %v824_v38, 0.0  ;;  %3766 = vmatprep.mubr.f32.mxu1 %v5298_v40  ;;  %v3356_v38 = vld [vmem:[%s6368_s3 + $0x110] sm:$0xff] }
 0x158   : > { %v828_v43 = vpop.f32.mrb[34].mxu0 }
 0x159   : > { %902 = vst [vmem:[#allocation2 + $0x80] sm:$0xff] %v878_v41  ;;  %v829_v44 = vadd.f32 %v828_v43, %v568_v42  ;;  %v830_v45 = vpop.f32.mrb[35].mxu0  ;;  %v4375_v41 = vpack.c.bf16 %v3357_v39, %v3356_v38  ;;  %v1268_v42 = vld [vmem:[%s6368_s3 + $0x20] sm:$0xff]  ;;  %v1269_v43 = vld [vmem:[%s6368_s3 + $0x28] sm:$0xff]  ;;  %v3389_v38 = vld [vmem:[%s6368_s3 + $0x218] sm:$0xff] }
 0x15a   : > { %v4315_v45 = vpack.c.bf16 %v1269_v43, %v1268_v42 }
 0x15b   : > { %v879_v46 = vmax.f32 %v829_v44, 0.0  ;;  %v3358_v44 = vld [vmem:[%s6368_s3 + $0x120] sm:$0xff] }
 0x15c   : > { %v833_v48 = vpop.f32.mrb[36].mxu0  ;;  %v924_v49 = vld [vmem:[#allocation2 + $0x70] ss:$2 sm:$0xff]  ;;  %v948_v50 = vld [vmem:[#allocation2 + $0x71] ss:$2 sm:$0xff] }
 0x15d   : > { %903 = vst [vmem:[#allocation2 + $0x88] sm:$0xff] %v879_v46  ;;  %v834_v51 = vadd.f32 %v833_v48, %v573_v47  ;;  %v835_v52 = vpop.f32.mrb[37].mxu0  ;;  %v964_v54 = vmax.f32 %v924_v49, %v948_v50  ;;  %v3359_v46 = vld [vmem:[%s6368_s3 + $0x128] sm:$0xff]  ;;  %v1270_v48 = vld [vmem:[%s6368_s3 + $0x30] sm:$0xff]  ;;  %v1271_v49 = vld [vmem:[%s6368_s3 + $0x38] sm:$0xff] }
 0x15e   : > { %v4379_v47 = vpack.c.bf16 %v3359_v46, %v3358_v44  ;;  %v3360_v50 = vld [vmem:[%s6368_s3 + $0x130] sm:$0xff]  ;;  %v3361_v52 = vld [vmem:[%s6368_s3 + $0x138] sm:$0xff]  ;;  %v3342_v44 = vld [vmem:[%s6368_s3 + $0xa0] sm:$0xff] }
 0x15f   : > { %v880_v55 = vmax.f32 %v834_v51, 0.0  ;;  %3767 = vmatmul.mubr.f32.gmra.mrb[6].mxu1 %v964_v54  ;;  %v4319_v51 = vpack.c.bf16 %v1271_v49, %v1270_v48  ;;  %v3343_v46 = vld [vmem:[%s6368_s3 + $0xa8] sm:$0xff] }
 0x160   : > { %v838_v58 = vpop.f32.mrb[38].mxu0  ;;  %v3391_v48 = vld [vmem:[%s6368_s3 + $0x228] sm:$0xff] }
 0x161   : > { %904 = vst [vmem:[#allocation2 + $0x90] sm:$0xff] %v880_v55  ;;  %v839_v59 = vadd.f32 %v838_v58, %v578_v57  ;;  %v840_v60 = vpop.f32.mrb[39].mxu0  ;;  %v1273_v55 = vld [vmem:[%s6368_s3 + $0x48] sm:$0xff]  ;;  %v4383_v57 = vpack.c.bf16 %v3361_v52, %v3360_v50  ;;  %v4347_v52 = vpack.c.bf16 %v3343_v46, %v3342_v44  ;;  %v3373_v44 = vld [vmem:[%s6368_s3 + $0x198] sm:$0xff]  ;;  %v3374_v46 = vld [vmem:[%s6368_s3 + $0x1a0] sm:$0xff] }
 0x162   : > { %v3363_v60 = vld [vmem:[%s6368_s3 + $0x148] sm:$0xff] }
 0x163   : > { %v881_v61 = vmax.f32 %v839_v59, 0.0  ;;  %v3362_v59 = vld [vmem:[%s6368_s3 + $0x140] sm:$0xff] }
 0x164   : > { %v843_v0 = vpop.f32.mrb[40].mxu0  ;;  %v926_v2 = vld [vmem:[#allocation2 + $0x80] ss:$2 sm:$0xff]  ;;  %v950_v3 = vld [vmem:[#allocation2 + $0x81] ss:$2 sm:$0xff] }
 0x165   : > { %905 = vst [vmem:[#allocation2 + $0x98] sm:$0xff] %v881_v61  ;;  %v844_v4 = vadd.f32 %v843_v0, %v583_v62  ;;  %v845_v5 = vpop.f32.mrb[41].mxu0  ;;  %v965_v6 = vmax.f32 %v926_v2, %v950_v3  ;;  %v1274_v61 = vld [vmem:[%s6368_s3 + $0x50] sm:$0xff]  ;;  %v4387_v62 = vpack.c.bf16 %v3363_v60, %v3362_v59  ;;  %v1275_v0 = vld [vmem:[%s6368_s3 + $0x58] sm:$0xff] }
 0x166   : > { %v3364_v2 = vld [vmem:[%s6368_s3 + $0x150] sm:$0xff]  ;;  %v3365_v3 = vld [vmem:[%s6368_s3 + $0x158] sm:$0xff] }
 0x167   : > { %v882_v7 = vmax.f32 %v844_v4, 0.0  ;;  %3769 = vmatprep.mubr.f32.mxu1 %v965_v6  ;;  %v4327_v4 = vpack.c.bf16 %v1275_v0, %v1274_v61  ;;  %v4391_v5 = vpack.c.bf16 %v3365_v3, %v3364_v2  ;;  %v3392_v59 = vld [vmem:[%s6368_s3 + $0x230] sm:$0xff]  ;;  %v3393_v60 = vld [vmem:[%s6368_s3 + $0x238] sm:$0xff] }
 0x168   : > { %v848_v9 = vpop.f32.mrb[42].mxu0  ;;  %v4447_v3 = vpack.c.bf16 %v3393_v60, %v3392_v59  ;;  %v3380_v59 = vld [vmem:[%s6368_s3 + $0x1d0] sm:$0xff]  ;;  %v3381_v60 = vld [vmem:[%s6368_s3 + $0x1d8] sm:$0xff] }
 0x169   : > { %906 = vst [vmem:[#allocation2 + $0xa0] sm:$0xff] %v882_v7  ;;  %v849_v10 = vadd.f32 %v848_v9, %v588_v8  ;;  %v850_v12 = vpop.f32.mrb[43].mxu0  ;;  %v1277_v7 = vld [vmem:[%s6368_s3 + $0x68] sm:$0xff]  ;;  %v3366_v8 = vld [vmem:[%s6368_s3 + $0x160] sm:$0xff] }
 0x16b   : > { %v883_v13 = vmax.f32 %v849_v10, 0.0  ;;  %v3367_v10 = vld [vmem:[%s6368_s3 + $0x168] sm:$0xff] }
 0x16c   : > { %v853_v16 = vpop.f32.mrb[44].mxu0  ;;  %v928_v17 = vld [vmem:[#allocation2 + $0x90] ss:$2 sm:$0xff]  ;;  %v952_v18 = vld [vmem:[#allocation2 + $0x91] ss:$2 sm:$0xff]  ;;  %v4395_v12 = vpack.c.bf16 %v3367_v10, %v3366_v8  ;;  %v3395_v8 = vld [vmem:[%s6368_s3 + $0x248] sm:$0xff] }
 0x16d   : > { %907 = vst [vmem:[#allocation2 + $0xa8] sm:$0xff] %v883_v13  ;;  %v854_v19 = vadd.f32 %v853_v16, %v593_v14  ;;  %v855_v20 = vpop.f32.mrb[45].mxu0  ;;  %v966_v21 = vmax.f32 %v928_v17, %v952_v18  ;;  %v1278_v13 = vld [vmem:[%s6368_s3 + $0x70] sm:$0xff]  ;;  %v1279_v14 = vld [vmem:[%s6368_s3 + $0x78] sm:$0xff] }
 0x16e   : > { %v3368_v16 = vld [vmem:[%s6368_s3 + $0x170] sm:$0xff]  ;;  %v4335_v17 = vpack.c.bf16 %v1279_v14, %v1278_v13  ;;  %v3369_v18 = vld [vmem:[%s6368_s3 + $0x178] sm:$0xff]  ;;  %v3338_v20 = vld [vmem:[%s6368_s3 + $0x80] sm:$0xff] }
 0x16f   : > { %v884_v22 = vmax.f32 %v854_v19, 0.0  ;;  %3770 = vmatmul.mubr.f32.gmra.mrb[8].mxu1 %v966_v21  ;;  %v4399_v19 = vpack.c.bf16 %v3369_v18, %v3368_v16  ;;  %v3348_v16 = vld [vmem:[%s6368_s3 + $0xd0] sm:$0xff]  ;;  %v3349_v18 = vld [vmem:[%s6368_s3 + $0xd8] sm:$0xff] }
 0x170   : > { %v858_v24 = vpop.f32.mrb[46].mxu0 }
 0x171   : > { %908 = vst [vmem:[#allocation2 + $0xb0] sm:$0xff] %v884_v22  ;;  %v859_v25 = vadd.f32 %v858_v24, %v598_v23  ;;  %v860_v27 = vpop.f32.mrb[47].mxu0  ;;  %v3386_v22 = vld [vmem:[%s6368_s3 + $0x200] sm:$0xff]  ;;  %v3387_v24 = vld [vmem:[%s6368_s3 + $0x208] sm:$0xff] }
 0x173   : > { %v885_v28 = vmax.f32 %v859_v25, 0.0  ;;  %v4435_v25 = vpack.c.bf16 %v3387_v24, %v3386_v22  ;;  %v4359_v24 = vpack.c.bf16 %v3349_v18, %v3348_v16 }
 0x174   : > { %v930_v29 = vld [vmem:[#allocation2 + $0xa0] ss:$2 sm:$0xff]  ;;  %v954_v30 = vld [vmem:[#allocation2 + $0xa1] ss:$2 sm:$0xff] }
 0x175   : > { %909 = vst [vmem:[#allocation2 + $0xb8] sm:$0xff] %v885_v28  ;;  %v967_v31 = vmax.f32 %v930_v29, %v954_v30 }
 0x177   : > { %3772 = vmatprep.mubr.f32.mxu1 %v967_v31 }
 0x17c   : > { %v932_v32 = vld [vmem:[#allocation2 + $0xb0] ss:$2 sm:$0xff]  ;;  %v956_v33 = vld [vmem:[#allocation2 + $0xb1] ss:$2 sm:$0xff] }
 0x17d   : > { %v968_v35 = vmax.f32 %v932_v32, %v956_v33 }
 0x17f   : > { %3773 = vmatmul.mubr.f32.gmra.mrb[10].mxu1 %v968_v35 }
 0x180   : > { %3807 = vmatprep.mubr.f32.mxu1 %v5238_v63  ;;  %v3354_v63 = vld [vmem:[%s6368_s3 + $0x100] sm:$0xff] }
 0x183   : > { %3808 = vmatmul.mubr.f32.vlgmr.msra.gmra.mrb[12].mxu1 %v5247_v15  ;;  %v3355_v15 = vld [vmem:[%s6368_s3 + $0x108] sm:$0xff] }
 0x184   : > { %3810 = vmatprep.mubr.f32.mxu1 %v5262_v34  ;;  %v4371_v34 = vpack.c.bf16 %v3355_v15, %v3354_v63 }
 0x186   : > { %4372 = vmatprep.subr.bf16.mxu0 %v4371_v34 }
 0x187   : > { %3811 = vmatmul.mubr.f32.gmra.mrb[14].mxu1 %v5277_v53  ;;  %v1264_v53 = vld [vmem:[%s6368_s3] sm:$0xff]  ;;  %4374 = vmatpush3.bf16.msra.mxu0 %v4371_v34 }
 0x188   : > { %3813 = vmatprep.mubr.f32.mxu1 %v5292_v11  ;;  %v1265_v11 = vld [vmem:[%s6368_s3 + $0x8] sm:$0xff]  ;;  %4376 = vmatprep.subr.bf16.mxu0 %v4375_v41 }
 0x189   : > { %v4307_v36 = vpack.c.bf16 %v1265_v11, %v1264_v53  ;;  %v3340_v11 = vld [vmem:[%s6368_s3 + $0x90] sm:$0xff] }
 0x18b   : > { %3814 = vmatmul.mubr.f32.gmra.mrb[16].mxu1 %v5295_v26  ;;  %v1266_v26 = vld [vmem:[%s6368_s3 + $0x10] sm:$0xff]  ;;  %4308 = vmatprep.subr.bf16.mxu1 %v4307_v36 }
 0x18c   : > { %3816 = vmatprep.mubr.f32.mxu1 %v5298_v40  ;;  %v4311_v40 = vpack.c.bf16 %v1267_v37, %v1266_v26  ;;  %4310 = vmatpush3.bf16.msra.mxu1 %v4307_v36  ;;  %v3341_v36 = vld [vmem:[%s6368_s3 + $0x98] sm:$0xff]  ;;  %v3388_v37 = vld [vmem:[%s6368_s3 + $0x210] sm:$0xff] }
 0x18d   : > { %4378 = vmatpush3.bf16.msra.mxu0 %v4375_v41  ;;  %v4343_v42 = vpack.c.bf16 %v3341_v36, %v3340_v11  ;;  %v4439_v43 = vpack.c.bf16 %v3389_v38, %v3388_v37  ;;  %v3353_v11 = vld [vmem:[%s6368_s3 + $0xf8] sm:$0xff]  ;;  %v3370_v38 = vld [vmem:[%s6368_s3 + $0x180] sm:$0xff] }
 0x18e   : > { %4312 = vmatprep.subr.bf16.mxu1 %v4311_v40  ;;  %4380 = vmatprep.subr.bf16.mxu0 %v4379_v47 }
 0x18f   : > { %3817 = vmatmul.mubr.f32.gmra.mrb[18].mxu1 %v964_v54  ;;  %v1272_v54 = vld [vmem:[%s6368_s3 + $0x40] sm:$0xff] }
 0x190   : > { %3819 = vmatprep.mubr.f32.mxu1 %v965_v6  ;;  %4314 = vmatpush3.bf16.msra.mxu1 %v4311_v40  ;;  %v4323_v58 = vpack.c.bf16 %v1273_v55, %v1272_v54  ;;  %v1276_v6 = vld [vmem:[%s6368_s3 + $0x60] sm:$0xff]  ;;  %v3344_v55 = vld [vmem:[%s6368_s3 + $0xb0] sm:$0xff] }
 0x191   : > { %4316 = vmatprep.subr.bf16.mxu1 %v4315_v45  ;;  %4382 = vmatpush3.bf16.msra.mxu0 %v4379_v47  ;;  %v4331_v9 = vpack.c.bf16 %v1277_v7, %v1276_v6  ;;  %v3390_v47 = vld [vmem:[%s6368_s3 + $0x220] sm:$0xff]  ;;  %v3347_v6 = vld [vmem:[%s6368_s3 + $0xc8] sm:$0xff] }
 0x192   : > { %4384 = vmatprep.subr.bf16.mxu0 %v4383_v57  ;;  %v4443_v54 = vpack.c.bf16 %v3391_v48, %v3390_v47  ;;  %v3394_v7 = vld [vmem:[%s6368_s3 + $0x240] sm:$0xff]  ;;  %v3375_v47 = vld [vmem:[%s6368_s3 + $0x1a8] sm:$0xff] }
 0x193   : > { %3820 = vmatmul.mubr.f32.gmra.mrb[20].mxu1 %v966_v21  ;;  %v3339_v21 = vld [vmem:[%s6368_s3 + $0x88] sm:$0xff]  ;;  %v4451_v14 = vpack.c.bf16 %v3395_v8, %v3394_v7  ;;  %v4411_v48 = vpack.c.bf16 %v3375_v47, %v3374_v46 }
 0x194   : > { %3822 = vmatprep.mubr.f32.mxu1 %v967_v31  ;;  %4318 = vmatpush3.bf16.msra.mxu1 %v4315_v45  ;;  %v4339_v23 = vpack.c.bf16 %v3339_v21, %v3338_v20  ;;  %v3397_v20 = vld [vmem:[%s6368_s3 + $0x258] sm:$0xff] }
 0x195   : > { %4320 = vmatprep.subr.bf16.mxu1 %v4319_v51  ;;  %4386 = vmatpush3.bf16.msra.mxu0 %v4383_v57 }
 0x196   : > { %4388 = vmatprep.subr.bf16.mxu0 %v4387_v62 }
 0x197   : > { %3823 = vmatmul.mubr.f32.gmra.mrb[22].mxu1 %v968_v35 }
 0x198   : > { %4322 = vmatpush3.bf16.msra.mxu1 %v4319_v51 }
 0x199   : > { %4324 = vmatprep.subr.bf16.mxu1 %v4323_v58  ;;  %4390 = vmatpush3.bf16.msra.mxu0 %v4387_v62 }
 0x19a   : > { %4392 = vmatprep.subr.bf16.mxu0 %v4391_v5 }
 0x19c   : > { %4326 = vmatpush3.bf16.msra.mxu1 %v4323_v58  ;;  %v3345_v58 = vld [vmem:[%s6368_s3 + $0xb8] sm:$0xff] }
 0x19d   : > { %4328 = vmatprep.subr.bf16.mxu1 %v4327_v4  ;;  %4394 = vmatpush3.bf16.msra.mxu0 %v4391_v5  ;;  %v4351_v2 = vpack.c.bf16 %v3345_v58, %v3344_v55  ;;  %v3378_v55 = vld [vmem:[%s6368_s3 + $0x1c0] sm:$0xff] }
 0x19e   : > { %4396 = vmatprep.subr.bf16.mxu0 %v4395_v12 }
 0x1a0   : > { %4330 = vmatpush3.bf16.msra.mxu1 %v4327_v4  ;;  %v3346_v4 = vld [vmem:[%s6368_s3 + $0xc0] sm:$0xff] }
 0x1a1   : > { %4332 = vmatprep.subr.bf16.mxu1 %v4331_v9  ;;  %4398 = vmatpush3.bf16.msra.mxu0 %v4395_v12  ;;  %v4355_v13 = vpack.c.bf16 %v3347_v6, %v3346_v4  ;;  %v3385_v6 = vld [vmem:[%s6368_s3 + $0x1f8] sm:$0xff] }
 0x1a2   : > { %4400 = vmatprep.subr.bf16.mxu0 %v4399_v19 }
 0x1a4   : > { %4334 = vmatpush3.bf16.msra.mxu1 %v4331_v9 }
 0x1a5   : > { %4336 = vmatprep.subr.bf16.mxu1 %v4335_v17  ;;  %4402 = vmatpush3.bf16.msra.mxu0 %v4399_v19  ;;  %v3396_v19 = vld [vmem:[%s6368_s3 + $0x250] sm:$0xff] }
 0x1a6   : > { %4436 = vmatprep.subr.bf16.mxu0 %v4435_v25 }
 0x1a8   : > { %4338 = vmatpush3.bf16.msra.mxu1 %v4335_v17 }
 0x1a9   : > { %4340 = vmatprep.subr.bf16.mxu1 %v4339_v23 }
 0x202   : > { %v3759_v27 = vpop.f32.mrb[0].mxu1 }
 0x203   : > { %v1051_v28 = vpop.f32.mrb[1].mxu1 }
 0x212   : > { %v3762_v29 = vpop.f32.mrb[2].mxu1 }
 0x213   : > { %v1061_v30 = vpop.f32.mrb[3].mxu1 }
 0x222   : > { %v3765_v31 = vpop.f32.mrb[4].mxu1 }
 0x223   : > { %v1071_v32 = vpop.f32.mrb[5].mxu1 }
 0x232   : > { %v3768_v33 = vpop.f32.mrb[6].mxu1 }
 0x233   : > { %v1081_v35 = vpop.f32.mrb[7].mxu1 }
 0x242   : > { %v5416_v63 = vpop.f32.mrb[8].mxu1 }
 0x243   : > { %v5418_v15 = vpop.f32.mrb[9].mxu1 }
 0x252   : > { %v5420_v34 = vpop.f32.mrb[10].mxu1 }
 0x253   : > { %v5422_v53 = vpop.f32.mrb[11].mxu1 }
 0x256   : > { %v3809_v26 = vpop.f32.mrb[12].mxu1 }
 0x257   : > { %v5436_v39 = vmax.f32 %v3759_v27, %v3809_v26  ;;  %v1193_v40 = vpop.f32.mrb[13].mxu1  ;;  %v3401_v26 = vld [vmem:[%s6368_s3 + $0x278] sm:$0xff] }
 0x258   : > { %v5438_v41 = vmax.f32 %v1051_v28, %v1193_v40  ;;  %v3350_v28 = vld [vmem:[%s6368_s3 + $0xe0] sm:$0xff]  ;;  %v3371_v40 = vld [vmem:[%s6368_s3 + $0x188] sm:$0xff] }
 0x25a   : > { %v3812_v45 = vpop.f32.mrb[14].mxu1  ;;  %3857 = vmatprep.mubr.f32.mxu1 %v5438_v41  ;;  %3957 = vmatprep.mubr.f32.mxu0 %v5438_v41 }
 0x25b   : > { %v5454_v49 = vmax.f32 %v3762_v29, %v3812_v45  ;;  %v1203_v50 = vpop.f32.mrb[15].mxu1  ;;  %3858 = vmatmul.mubr.f32.vlgmr.msra.gmra.mrb[24].mxu1 %v5436_v39  ;;  %3958 = vmatmul.mubr.f32.vlgmr.msra.gmra.mrb[48].mxu0 %v5436_v39 }
 0x25c   : > { %v5458_v51 = vmax.f32 %v1061_v30, %v1203_v50  ;;  %4342 = vmatpush3.bf16.msra.mxu1 %v4339_v23  ;;  %4438 = vmatpush3.bf16.msra.mxu0 %v4435_v25  ;;  %v4455_v25 = vpack.c.bf16 %v3397_v20, %v3396_v19  ;;  %v3376_v50 = vld [vmem:[%s6368_s3 + $0x1b0] sm:$0xff] }
 0x25d   : > { %4344 = vmatprep.subr.bf16.mxu1 %v4343_v42  ;;  %4440 = vmatprep.subr.bf16.mxu0 %v4439_v43 }
 0x25e   : > { %v3815_v57 = vpop.f32.mrb[16].mxu1  ;;  %3860 = vmatprep.mubr.f32.mxu1 %v5458_v51  ;;  %3960 = vmatprep.mubr.f32.mxu0 %v5458_v51 }
 0x25f   : > { %v5474_v61 = vmax.f32 %v3765_v31, %v3815_v57  ;;  %v1213_v62 = vpop.f32.mrb[17].mxu1  ;;  %3861 = vmatmul.mubr.f32.gmra.mrb[26].mxu1 %v5454_v49  ;;  %3961 = vmatmul.mubr.f32.gmra.mrb[50].mxu0 %v5454_v49  ;;  %v3351_v31 = vld [vmem:[%s6368_s3 + $0xe8] sm:$0xff] }
 0x260   : > { %v5478_v0 = vmax.f32 %v1071_v32, %v1213_v62  ;;  %4346 = vmatpush3.bf16.msra.mxu1 %v4343_v42  ;;  %4442 = vmatpush3.bf16.msra.mxu0 %v4439_v43  ;;  %v3398_v32 = vld [vmem:[%s6368_s3 + $0x260] sm:$0xff]  ;;  %v4403_v42 = vpack.c.bf16 %v3371_v40, %v3370_v38  ;;  %v3372_v43 = vld [vmem:[%s6368_s3 + $0x190] sm:$0xff]  ;;  %v3379_v57 = vld [vmem:[%s6368_s3 + $0x1c8] sm:$0xff]  ;;  %v4423_v62 = vpack.c.bf16 %v3381_v60, %v3380_v59 }
 0x261   : > { %4348 = vmatprep.subr.bf16.mxu1 %v4347_v52  ;;  %4444 = vmatprep.subr.bf16.mxu0 %v4443_v54  ;;  %v4407_v45 = vpack.c.bf16 %v3373_v44, %v3372_v43  ;;  %v4419_v58 = vpack.c.bf16 %v3379_v57, %v3378_v55 }
 0x262   : > { %v3818_v5 = vpop.f32.mrb[18].mxu1  ;;  %3863 = vmatprep.mubr.f32.mxu1 %v5478_v0  ;;  %3963 = vmatprep.mubr.f32.mxu0 %v5478_v0 }
 0x263   : > { %v5494_v9 = vmax.f32 %v3768_v33, %v3818_v5  ;;  %v1223_v10 = vpop.f32.mrb[19].mxu1  ;;  %3864 = vmatmul.mubr.f32.gmra.mrb[28].mxu1 %v5474_v61  ;;  %3964 = vmatmul.mubr.f32.gmra.mrb[52].mxu0 %v5474_v61  ;;  %v3399_v33 = vld [vmem:[%s6368_s3 + $0x268] sm:$0xff]  ;;  %v3384_v5 = vld [vmem:[%s6368_s3 + $0x1f0] sm:$0xff] }
 0x264   : > { %v5498_v12 = vmax.f32 %v1081_v35, %v1223_v10  ;;  %4350 = vmatpush3.bf16.msra.mxu1 %v4347_v52  ;;  %4446 = vmatpush3.bf16.msra.mxu0 %v4443_v54  ;;  %v3377_v52 = vld [vmem:[%s6368_s3 + $0x1b8] sm:$0xff]  ;;  %v4431_v7 = vpack.c.bf16 %v3385_v6, %v3384_v5 }
 0x265   : > { %4352 = vmatprep.subr.bf16.mxu1 %v4351_v2  ;;  %4448 = vmatprep.subr.bf16.mxu0 %v4447_v3  ;;  %v4415_v54 = vpack.c.bf16 %v3377_v52, %v3376_v50 }
 0x266   : > { %v3821_v17 = vpop.f32.mrb[20].mxu1  ;;  %3866 = vmatprep.mubr.f32.mxu1 %v5498_v12  ;;  %3966 = vmatprep.mubr.f32.mxu0 %v5498_v12 }
 0x267   : > { %v5515_v21 = vmax.f32 %v5416_v63, %v3821_v17  ;;  %v1233_v22 = vpop.f32.mrb[21].mxu1  ;;  %3867 = vmatmul.mubr.f32.gmra.mrb[30].mxu1 %v5494_v9  ;;  %3967 = vmatmul.mubr.f32.gmra.mrb[54].mxu0 %v5494_v9  ;;  %v3352_v63 = vld [vmem:[%s6368_s3 + $0xf0] sm:$0xff] }
 0x268   : > { %v5520_v23 = vmax.f32 %v5418_v15, %v1233_v22  ;;  %4354 = vmatpush3.bf16.msra.mxu1 %v4351_v2  ;;  %4450 = vmatpush3.bf16.msra.mxu0 %v4447_v3  ;;  %v4363_v15 = vpack.c.bf16 %v3351_v31, %v3350_v28  ;;  %v4367_v36 = vpack.c.bf16 %v3353_v11, %v3352_v63  ;;  %v3382_v2 = vld [vmem:[%s6368_s3 + $0x1e0] sm:$0xff]  ;;  %v3383_v3 = vld [vmem:[%s6368_s3 + $0x1e8] sm:$0xff] }
 0x269   : > { %4356 = vmatprep.subr.bf16.mxu1 %v4355_v13  ;;  %4452 = vmatprep.subr.bf16.mxu0 %v4451_v14  ;;  %v4427_v4 = vpack.c.bf16 %v3383_v3, %v3382_v2 }
 0x26a   : > { %v3824_v27 = vpop.f32.mrb[22].mxu1  ;;  %3869 = vmatprep.mubr.f32.mxu1 %v5520_v23  ;;  %3969 = vmatprep.mubr.f32.mxu0 %v5520_v23 }
 0x26b   : > { %v5528_v29 = vmax.f32 %v5420_v34, %v3824_v27  ;;  %v1243_v30 = vpop.f32.mrb[23].mxu1  ;;  %3870 = vmatmul.mubr.f32.gmra.mrb[32].mxu1 %v5515_v21  ;;  %3970 = vmatmul.mubr.f32.gmra.mrb[56].mxu0 %v5515_v21  ;;  %v4459_v34 = vpack.c.bf16 %v3399_v33, %v3398_v32 }
 0x26c   : > { %v5542_v35 = vmax.f32 %v5422_v53, %v1243_v30  ;;  %4358 = vmatpush3.bf16.msra.mxu1 %v4355_v13  ;;  %4454 = vmatpush3.bf16.msra.mxu0 %v4451_v14  ;;  %v3400_v53 = vld [vmem:[%s6368_s3 + $0x270] sm:$0xff] }
 0x26d   : > { %4360 = vmatprep.subr.bf16.mxu1 %v4359_v24  ;;  %4456 = vmatprep.subr.bf16.mxu0 %v4455_v25  ;;  %v4463_v37 = vpack.c.bf16 %v3401_v26, %v3400_v53 }
 0x26e   : > { %3872 = vmatprep.mubr.f32.mxu1 %v5542_v35  ;;  %3972 = vmatprep.mubr.f32.mxu0 %v5542_v35 }
 0x26f   : > { %3873 = vmatmul.mubr.f32.gmra.mrb[34].mxu1 %v5528_v29  ;;  %3973 = vmatmul.mubr.f32.gmra.mrb[58].mxu0 %v5528_v29 }
 0x270   : > { %4362 = vmatpush3.bf16.msra.mxu1 %v4359_v24  ;;  %4458 = vmatpush3.bf16.msra.mxu0 %v4455_v25 }
 0x271   : > { %3907 = vmatprep.mubr.f32.mxu1 %v5438_v41  ;;  %4057 = vmatprep.mubr.f32.mxu0 %v5438_v41 }
 0x272   : > { %4364 = vmatprep.subr.bf16.mxu1 %v4363_v15  ;;  %4460 = vmatprep.subr.bf16.mxu0 %v4459_v34 }
 0x274   : > { %4366 = vmatpush3.bf16.msra.mxu1 %v4363_v15  ;;  %4462 = vmatpush3.bf16.msra.mxu0 %v4459_v34 }
 0x275   : > { %4368 = vmatprep.subr.bf16.mxu1 %v4367_v36  ;;  %4464 = vmatprep.subr.bf16.mxu0 %v4463_v37 }
 0x278   : > { %4370 = vmatpush3.bf16.msra.mxu1 %v4367_v36  ;;  %4466 = vmatpush3.bf16.msra.mxu0 %v4463_v37 }
 0x279   : > { %4404 = vmatprep.subr.bf16.mxu1 %v4403_v42  ;;  %4515 = vmatprep.subr.bf16.mxu0 %v4754_v1 }
 0x27b   : > { %3908 = vmatmul.mubr.f32.vlgmr.msra.gmra.mrb[36].mxu1 %v5436_v39  ;;  %4058 = vmatmul.mubr.f32.vlgmr.msra.gmra.mrb[60].mxu0 %v5436_v39 }
 0x27c   : > { %3910 = vmatprep.mubr.f32.mxu1 %v5458_v51  ;;  %4406 = vmatpush3.bf16.msra.mxu1 %v4403_v42 }
 0x27d   : > { %4060 = vmatprep.mubr.f32.mxu0 %v5458_v51  ;;  %4408 = vmatprep.subr.bf16.mxu1 %v4407_v45 }
 0x27f   : > { %3911 = vmatmul.mubr.f32.gmra.mrb[38].mxu1 %v5454_v49  ;;  %4061 = vmatmul.mubr.f32.gmra.mrb[62].mxu0 %v5454_v49 }
 0x280   : > { %3913 = vmatprep.mubr.f32.mxu1 %v5478_v0  ;;  %4410 = vmatpush3.bf16.msra.mxu1 %v4407_v45 }
 0x281   : > { %4063 = vmatprep.mubr.f32.mxu0 %v5478_v0  ;;  %4412 = vmatprep.subr.bf16.mxu1 %v4411_v48 }
 0x283   : > { %3914 = vmatmul.mubr.f32.gmra.mrb[40].mxu1 %v5474_v61  ;;  %4064 = vmatmul.mubr.f32.gmra.mrb[64].mxu0 %v5474_v61 }
 0x284   : > { %3916 = vmatprep.mubr.f32.mxu1 %v5498_v12  ;;  %4414 = vmatpush3.bf16.msra.mxu1 %v4411_v48 }
 0x285   : > { %4066 = vmatprep.mubr.f32.mxu0 %v5498_v12  ;;  %4416 = vmatprep.subr.bf16.mxu1 %v4415_v54 }
 0x287   : > { %3917 = vmatmul.mubr.f32.gmra.mrb[42].mxu1 %v5494_v9  ;;  %4067 = vmatmul.mubr.f32.gmra.mrb[66].mxu0 %v5494_v9 }
 0x288   : > { %3919 = vmatprep.mubr.f32.mxu1 %v5520_v23  ;;  %4418 = vmatpush3.bf16.msra.mxu1 %v4415_v54 }
 0x289   : > { %4069 = vmatprep.mubr.f32.mxu0 %v5520_v23  ;;  %4420 = vmatprep.subr.bf16.mxu1 %v4419_v58 }
 0x28b   : > { %3920 = vmatmul.mubr.f32.gmra.mrb[44].mxu1 %v5515_v21  ;;  %4070 = vmatmul.mubr.f32.gmra.mrb[68].mxu0 %v5515_v21 }
 0x28c   : > { %3922 = vmatprep.mubr.f32.mxu1 %v5542_v35  ;;  %4422 = vmatpush3.bf16.msra.mxu1 %v4419_v58 }
 0x28d   : > { %4072 = vmatprep.mubr.f32.mxu0 %v5542_v35  ;;  %4424 = vmatprep.subr.bf16.mxu1 %v4423_v62 }
 0x28f   : > { %3923 = vmatmul.mubr.f32.gmra.mrb[46].mxu1 %v5528_v29  ;;  %4073 = vmatmul.mubr.f32.gmra.mrb[70].mxu0 %v5528_v29 }
 0x290   : > { %4426 = vmatpush3.bf16.msra.mxu1 %v4423_v62  ;;  %4007 = vmatprep.mubr.f32.mxu1 %v5438_v41  ;;  %v1976_v41 = vld [vmem:[%s6370_s5 + $0x18] sm:$0xff] }
 0x291   : > { %4428 = vmatprep.subr.bf16.mxu1 %v4427_v4  ;;  %3402 = vmatprep.mubr.msk.f32.mxu0 %vm2213_vm2, %v1976_v41 }
 0x294   : > { %4430 = vmatpush3.bf16.msra.mxu1 %v4427_v4 }
 0x295   : > { %4432 = vmatprep.subr.bf16.mxu1 %v4431_v7 }
 0x298   : > { %4434 = vmatpush3.bf16.msra.mxu1 %v4431_v7 }
 0x299   : > { %4467 = vmatprep.subr.bf16.mxu1 %v4754_v1 }
 0x29b   : > { %4008 = vmatmul.mubr.f32.vlgmr.msra.gmra.mrb[48].mxu1 %v5436_v39  ;;  %v1974_v39 = vld [vmem:[%s6370_s5 + $0x8] sm:$0xff] }
 0x29c   : > { %4010 = vmatprep.mubr.f32.mxu1 %v5458_v51 }
 0x29f   : > { %4011 = vmatmul.mubr.f32.gmra.mrb[50].mxu1 %v5454_v49 }
 0x2a0   : > { %4013 = vmatprep.mubr.f32.mxu1 %v5478_v0 }
 0x2a3   : > { %4014 = vmatmul.mubr.f32.gmra.mrb[52].mxu1 %v5474_v61 }
 0x2a4   : > { %4016 = vmatprep.mubr.f32.mxu1 %v5498_v12 }
 0x2a7   : > { %4017 = vmatmul.mubr.f32.gmra.mrb[54].mxu1 %v5494_v9 }
 0x2a8   : > { %4019 = vmatprep.mubr.f32.mxu1 %v5520_v23 }
 0x2ab   : > { %4020 = vmatmul.mubr.f32.gmra.mrb[56].mxu1 %v5515_v21 }
 0x2ac   : > { %4022 = vmatprep.mubr.f32.mxu1 %v5542_v35 }
 0x2af   : > { %4023 = vmatmul.mubr.f32.gmra.mrb[58].mxu1 %v5528_v29 }
 0x2b0   : > { %2350 = vmatprep.mubr.f32.mxu1 %v1974_v39 }
 0x32e   : > { %v3859_v49 = vpop.f32.mrb[24].mxu1  ;;  %v5653_v51 = vpop.f32.mrb[48].mxu0 }
 0x32f   : > { %v1346_v61 = vpop.f32.mrb[25].mxu1  ;;  %v5655_v0 = vpop.f32.mrb[49].mxu0 }
 0x330   : > { %v4468_v8 = vpack.c.bf16 %v3859_v49, %v1346_v61  ;;  %v4504_v9 = vpack.c.bf16 %v5653_v51, %v5655_v0 }
 0x332   : > { %v3862_v10 = vpop.f32.mrb[26].mxu1  ;;  %v5659_v12 = vpop.f32.mrb[50].mxu0  ;;  %4469 = vmatpush1.bf16.msra.mxu1 %v4468_v8 }
 0x333   : > { %v1356_v13 = vpop.f32.mrb[27].mxu1  ;;  %v5661_v14 = vpop.f32.mrb[51].mxu0  ;;  %4470 = vmatprep.subr.bf16.mxu1 %v4754_v1 }
 0x334   : > { %v4471_v16 = vpack.c.bf16 %v3862_v10, %v1356_v13  ;;  %v4507_v17 = vpack.c.bf16 %v5659_v12, %v5661_v14 }
 0x336   : > { %v3865_v18 = vpop.f32.mrb[28].mxu1  ;;  %v5666_v19 = vpop.f32.mrb[52].mxu0  ;;  %4472 = vmatpush1.bf16.msra.mxu1 %v4471_v16 }
 0x337   : > { %v1366_v20 = vpop.f32.mrb[29].mxu1  ;;  %v5668_v21 = vpop.f32.mrb[53].mxu0  ;;  %4473 = vmatprep.subr.bf16.mxu1 %v4754_v1 }
 0x338   : > { %v4474_v22 = vpack.c.bf16 %v3865_v18, %v1366_v20  ;;  %v4510_v23 = vpack.c.bf16 %v5666_v19, %v5668_v21  ;;  %v1977_v21 = vld [vmem:[%s6370_s5 + $0x20] sm:$0xff] }
 0x33a   : > { %v3868_v24 = vpop.f32.mrb[30].mxu1  ;;  %v5673_v25 = vpop.f32.mrb[54].mxu0  ;;  %4475 = vmatpush1.bf16.msra.mxu1 %v4474_v22 }
 0x33b   : > { %v1376_v27 = vpop.f32.mrb[31].mxu1  ;;  %v5675_v28 = vpop.f32.mrb[55].mxu0  ;;  %4476 = vmatprep.subr.bf16.mxu1 %v4754_v1 }
 0x33c   : > { %v4477_v29 = vpack.c.bf16 %v3868_v24, %v1376_v27  ;;  %v4513_v30 = vpack.c.bf16 %v5673_v25, %v5675_v28  ;;  %v1982_v28 = vld [vmem:[%s6370_s5 + $0x48] sm:$0xff] }
 0x33e   : > { %v3871_v31 = vpop.f32.mrb[32].mxu1  ;;  %v3971_v32 = vpop.f32.mrb[56].mxu0  ;;  %4478 = vmatpush1.bf16.msra.mxu1 %v4477_v29 }
 0x33f   : > { %v1386_v33 = vpop.f32.mrb[33].mxu1  ;;  %v1670_v35 = vpop.f32.mrb[57].mxu0  ;;  %4479 = vmatprep.subr.bf16.mxu1 %v4754_v1 }
 0x340   : > { %v4480_v63 = vpack.c.bf16 %v3871_v31, %v1386_v33  ;;  %v5681_v15 = vpack.c.bf16 %v3971_v32, %v1670_v35  ;;  %v1981_v35 = vld [vmem:[%s6370_s5 + $0x40] sm:$0xff] }
 0x342   : > { %v3874_v34 = vpop.f32.mrb[34].mxu1  ;;  %v3974_v11 = vpop.f32.mrb[58].mxu0  ;;  %4481 = vmatpush1.bf16.msra.mxu1 %v4480_v63  ;;  %4517 = vmatpush1.bf16.msra.mxu0 %v5681_v15 }
 0x343   : > { %v1396_v53 = vpop.f32.mrb[35].mxu1  ;;  %v1680_v26 = vpop.f32.mrb[59].mxu0  ;;  %4482 = vmatprep.subr.bf16.mxu1 %v4754_v1  ;;  %4518 = vmatprep.subr.bf16.mxu0 %v4754_v1 }
 0x344   : > { %v4483_v36 = vpack.c.bf16 %v3874_v34, %v1396_v53  ;;  %v5686_v37 = vpack.c.bf16 %v3974_v11, %v1680_v26  ;;  %v1986_v34 = vld [vmem:[%s6370_s5 + $0x68] sm:$0xff]  ;;  %v1985_v53 = vld [vmem:[%s6370_s5 + $0x60] sm:$0xff] }
 0x346   : > { %4484 = vmatpush1.bf16.msra.mxu1 %v4483_v36  ;;  %4520 = vmatpush1.bf16.msra.mxu0 %v5686_v37 }
 0x347   : > { %4485 = vmatprep.subr.bf16.mxu1 %v4754_v1  ;;  %4521 = vmatprep.subr.bf16.mxu0 %v4754_v1 }
 0x34e   : > { %v3909_v38 = vpop.f32.mrb[36].mxu1  ;;  %v4059_v40 = vpop.f32.mrb[60].mxu0 }
 0x34f   : > { %v1488_v42 = vpop.f32.mrb[37].mxu1  ;;  %v1914_v43 = vpop.f32.mrb[61].mxu0 }
 0x350   : > { %v4486_v44 = vpack.c.bf16 %v3909_v38, %v1488_v42  ;;  %v5691_v45 = vpack.c.bf16 %v4059_v40, %v1914_v43  ;;  %v1989_v38 = vld [vmem:[%s6370_s5 + $0x80] sm:$0xff]  ;;  %v1994_v40 = vld [vmem:[%s6370_s5 + $0xa8] sm:$0xff] }
 0x351   : > { %v1993_v42 = vld [vmem:[%s6370_s5 + $0xa0] sm:$0xff]  ;;  %v1998_v43 = vld [vmem:[%s6370_s5 + $0xc8] sm:$0xff] }
 0x352   : > { %v3912_v46 = vpop.f32.mrb[38].mxu1  ;;  %v4062_v47 = vpop.f32.mrb[62].mxu0  ;;  %4487 = vmatpush1.bf16.msra.mxu1 %v4486_v44  ;;  %v1997_v44 = vld [vmem:[%s6370_s5 + $0xc0] sm:$0xff] }
 0x353   : > { %v1498_v48 = vpop.f32.mrb[39].mxu1  ;;  %v1924_v50 = vpop.f32.mrb[63].mxu0  ;;  %4488 = vmatprep.subr.bf16.mxu1 %v4754_v1 }
 0x354   : > { %v4489_v52 = vpack.c.bf16 %v3912_v46, %v1498_v48  ;;  %v5694_v54 = vpack.c.bf16 %v4062_v47, %v1924_v50  ;;  %v2002_v46 = vld [vmem:[%s6370_s5 + $0xe8] sm:$0xff]  ;;  %v2001_v47 = vld [vmem:[%s6370_s5 + $0xe0] sm:$0xff] }
 0x355   : > { %v2006_v48 = vld [vmem:[%s6370_s5 + $0x108] sm:$0xff]  ;;  %v2005_v50 = vld [vmem:[%s6370_s5 + $0x100] sm:$0xff] }
 0x356   : > { %v3915_v55 = vpop.f32.mrb[40].mxu1  ;;  %v4065_v57 = vpop.f32.mrb[64].mxu0  ;;  %4490 = vmatpush1.bf16.msra.mxu1 %v4489_v52  ;;  %v2010_v52 = vld [vmem:[%s6370_s5 + $0x128] sm:$0xff] }
 0x357   : > { %v1508_v58 = vpop.f32.mrb[41].mxu1  ;;  %v1934_v59 = vpop.f32.mrb[65].mxu0  ;;  %4491 = vmatprep.subr.bf16.mxu1 %v4754_v1 }
 0x358   : > { %v4492_v60 = vpack.c.bf16 %v3915_v55, %v1508_v58  ;;  %v5697_v62 = vpack.c.bf16 %v4065_v57, %v1934_v59  ;;  %v2009_v55 = vld [vmem:[%s6370_s5 + $0x120] sm:$0xff]  ;;  %v2014_v57 = vld [vmem:[%s6370_s5 + $0x148] sm:$0xff]  ;;  %v1975_v58 = vld [vmem:[%s6370_s5 + $0x10] sm:$0xff] }
 0x359   : > { %v2018_v59 = vld [vmem:[%s6370_s5 + $0x168] sm:$0xff] }
 0x35a   : > { %v3918_v2 = vpop.f32.mrb[42].mxu1  ;;  %v4068_v3 = vpop.f32.mrb[66].mxu0  ;;  %4493 = vmatpush1.bf16.msra.mxu1 %v4492_v60  ;;  %v2017_v60 = vld [vmem:[%s6370_s5 + $0x160] sm:$0xff] }
 0x35b   : > { %v1518_v4 = vpop.f32.mrb[43].mxu1  ;;  %v1944_v5 = vpop.f32.mrb[67].mxu0  ;;  %4494 = vmatprep.subr.bf16.mxu1 %v4754_v1 }
 0x35c   : > { %v4495_v6 = vpack.c.bf16 %v3918_v2, %v1518_v4  ;;  %v5700_v7 = vpack.c.bf16 %v4068_v3, %v1944_v5  ;;  %v1979_v2 = vld [vmem:[%s6370_s5 + $0x30] sm:$0xff]  ;;  %v2022_v3 = vld [vmem:[%s6370_s5 + $0x188] sm:$0xff]  ;;  %v2021_v4 = vld [vmem:[%s6370_s5 + $0x180] sm:$0xff] }
 0x35d   : > { %v1983_v5 = vld [vmem:[%s6370_s5 + $0x50] sm:$0xff] }
 0x35e   : > { %v3921_v39 = vpop.f32.mrb[44].mxu1  ;;  %v4071_v41 = vpop.f32.mrb[68].mxu0  ;;  %4496 = vmatpush1.bf16.msra.mxu1 %v4495_v6  ;;  %v2026_v6 = vld [vmem:[%s6370_s5 + $0x1a8] sm:$0xff] }
 0x35f   : > { %v1528_v49 = vpop.f32.mrb[45].mxu1  ;;  %v1954_v61 = vpop.f32.mrb[69].mxu0  ;;  %4497 = vmatprep.subr.bf16.mxu1 %v4754_v1 }
 0x360   : > { %v4498_v8 = vpack.c.bf16 %v3921_v39, %v1528_v49  ;;  %v5703_v10 = vpack.c.bf16 %v4071_v41, %v1954_v61  ;;  %v2025_v39 = vld [vmem:[%s6370_s5 + $0x1a0] sm:$0xff]  ;;  %v1987_v41 = vld [vmem:[%s6370_s5 + $0x70] sm:$0xff]  ;;  %v2030_v49 = vld [vmem:[%s6370_s5 + $0x1c8] sm:$0xff] }
 0x361   : > { %v1992_v61 = vld [vmem:[%s6370_s5 + $0x98] sm:$0xff] }
 0x362   : > { %v3924_v13 = vpop.f32.mrb[46].mxu1  ;;  %v4074_v16 = vpop.f32.mrb[70].mxu0  ;;  %4499 = vmatpush1.bf16.msra.mxu1 %v4498_v8  ;;  %v2029_v8 = vld [vmem:[%s6370_s5 + $0x1c0] sm:$0xff] }
 0x363   : > { %v1538_v18 = vpop.f32.mrb[47].mxu1  ;;  %v1964_v20 = vpop.f32.mrb[71].mxu0  ;;  %4500 = vmatprep.subr.bf16.mxu1 %v4754_v1 }
 0x364   : > { %v4501_v22 = vpack.c.bf16 %v3924_v13, %v1538_v18  ;;  %v5706_v24 = vpack.c.bf16 %v4074_v16, %v1964_v20  ;;  %v2034_v13 = vld [vmem:[%s6370_s5 + $0x1e8] sm:$0xff]  ;;  %v1996_v16 = vld [vmem:[%s6370_s5 + $0xb8] sm:$0xff]  ;;  %v2033_v18 = vld [vmem:[%s6370_s5 + $0x1e0] sm:$0xff] }
 0x365   : > { %v1995_v20 = vld [vmem:[%s6370_s5 + $0xb0] sm:$0xff] }
 0x366   : > { %4502 = vmatpush1.bf16.msra.mxu1 %v4501_v22  ;;  %v2038_v22 = vld [vmem:[%s6370_s5 + $0x208] sm:$0xff] }
 0x367   : > { %4503 = vmatprep.subr.bf16.mxu1 %v4754_v1 }
 0x36a   : > { %4505 = vmatpush1.bf16.msra.mxu1 %v4504_v9  ;;  %v1973_v9 = vld [vmem:[%s6370_s5] sm:$0xff] }
 0x36b   : > { %4506 = vmatprep.subr.bf16.mxu1 %v4754_v1 }
 0x36e   : > { %v4009_v27 = vpop.f32.mrb[48].mxu1  ;;  %4508 = vmatpush1.bf16.msra.mxu1 %v4507_v17  ;;  %v1978_v17 = vld [vmem:[%s6370_s5 + $0x28] sm:$0xff] }
 0x36f   : > { %v1772_v29 = vpop.f32.mrb[49].mxu1  ;;  %4509 = vmatprep.subr.bf16.mxu1 %v4754_v1 }
 0x370   : > { %v4522_v31 = vpack.c.bf16 %v4009_v27, %v1772_v29  ;;  %v2037_v27 = vld [vmem:[%s6370_s5 + $0x200] sm:$0xff]  ;;  %v1999_v29 = vld [vmem:[%s6370_s5 + $0xd0] sm:$0xff] }
 0x372   : > { %v4012_v32 = vpop.f32.mrb[50].mxu1  ;;  %4511 = vmatpush1.bf16.msra.mxu1 %v4510_v23  ;;  %4523 = vmatpush1.bf16.msra.mxu0 %v4522_v31 }
 0x373   : > { %v1782_v33 = vpop.f32.mrb[51].mxu1  ;;  %4512 = vmatprep.subr.bf16.mxu1 %v4754_v1  ;;  %4524 = vmatprep.subr.bf16.mxu0 %v4754_v1 }
 0x374   : > { %v4525_v51 = vpack.c.bf16 %v4012_v32, %v1782_v33  ;;  %v2004_v32 = vld [vmem:[%s6370_s5 + $0xf8] sm:$0xff]  ;;  %v2041_v33 = vld [vmem:[%s6370_s5 + $0x220] sm:$0xff] }
 0x376   : > { %v4015_v0 = vpop.f32.mrb[52].mxu1  ;;  %4514 = vmatpush1.bf16.msra.mxu1 %v4513_v30  ;;  %4526 = vmatpush1.bf16.msra.mxu0 %v4525_v51 }
 0x377   : > { %v1792_v12 = vpop.f32.mrb[53].mxu1  ;;  %4645 = vmatprep.subr.bf16.mxu1 %v4754_v1  ;;  %4527 = vmatprep.subr.bf16.mxu0 %v4754_v1 }
 0x378   : > { %v4528_v14 = vpack.c.bf16 %v4015_v0, %v1792_v12  ;;  %v2046_v0 = vld [vmem:[%s6370_s5 + $0x248] sm:$0xff]  ;;  %v2045_v12 = vld [vmem:[%s6370_s5 + $0x240] sm:$0xff] }
 0x379   : > { %2351 = vmatmul.mubr.f32.vlgmr.msra.gmra.mrb[60].mxu1 %v1973_v9  ;;  %v2008_v9 = vld [vmem:[%s6370_s5 + $0x118] sm:$0xff] }
 0x37a   : > { %v4018_v19 = vpop.f32.mrb[54].mxu1  ;;  %4659 = vmatpush1.bf16.msra.mxu1 %v5681_v15  ;;  %4529 = vmatpush1.bf16.msra.mxu0 %v4528_v14 }
 0x37b   : > { %v1802_v23 = vpop.f32.mrb[55].mxu1  ;;  %2355 = vmatprep.mubr.f32.mxu1 %v1978_v17  ;;  %4646 = vmatprep.subr.bf16.mxu1 %v4754_v1  ;;  %v2050_v17 = vld [vmem:[%s6370_s5 + $0x268] sm:$0xff] }
 0x37c   : > { %v4531_v25 = vpack.c.bf16 %v4018_v19, %v1802_v23  ;;  %4530 = vmatprep.subr.bf16.mxu0 %v4754_v1  ;;  %v2012_v19 = vld [vmem:[%s6370_s5 + $0x138] sm:$0xff]  ;;  %v2011_v23 = vld [vmem:[%s6370_s5 + $0x130] sm:$0xff] }
 0x37d   : > { %2356 = vmatmul.mubr.f32.gmra.mrb[62].mxu1 %v1977_v21  ;;  %v2049_v21 = vld [vmem:[%s6370_s5 + $0x260] sm:$0xff] }
 0x37e   : > { %v4021_v30 = vpop.f32.mrb[56].mxu1  ;;  %4660 = vmatpush1.bf16.msra.mxu1 %v5686_v37  ;;  %4532 = vmatpush1.bf16.msra.mxu0 %v4531_v25  ;;  %v1990_v37 = vld [vmem:[%s6370_s5 + $0x88] sm:$0xff] }
 0x37f   : > { %v1812_v63 = vpop.f32.mrb[57].mxu1  ;;  %2360 = vmatprep.mubr.f32.mxu1 %v1982_v28  ;;  %4647 = vmatprep.subr.bf16.mxu1 %v4754_v1  ;;  %v2016_v28 = vld [vmem:[%s6370_s5 + $0x158] sm:$0xff] }
 0x380   : > { %v4534_v15 = vpack.c.bf16 %v4021_v30, %v1812_v63  ;;  %4533 = vmatprep.subr.bf16.mxu0 %v4754_v1  ;;  %v2053_v30 = vld [vmem:[%s6370_s5 + $0x280] sm:$0xff]  ;;  %v2058_v63 = vld [vmem:[%s6370_s5 + $0x2a8] sm:$0xff] }
 0x381   : > { %2361 = vmatmul.mubr.f32.gmra.mrb[64].mxu1 %v1981_v35  ;;  %v2015_v35 = vld [vmem:[%s6370_s5 + $0x150] sm:$0xff] }
 0x382   : > { %v4024_v11 = vpop.f32.mrb[58].mxu1  ;;  %4661 = vmatpush1.bf16.msra.mxu1 %v4522_v31  ;;  %4535 = vmatpush1.bf16.msra.mxu0 %v4534_v15  ;;  %v2042_v31 = vld [vmem:[%s6370_s5 + $0x228] sm:$0xff] }
 0x383   : > { %v1822_v26 = vpop.f32.mrb[59].mxu1  ;;  %2365 = vmatprep.mubr.f32.mxu1 %v1986_v34  ;;  %4648 = vmatprep.subr.bf16.mxu1 %v4754_v1  ;;  %v2057_v34 = vld [vmem:[%s6370_s5 + $0x2a0] sm:$0xff] }
 0x384   : > { %v4537_v36 = vpack.c.bf16 %v4024_v11, %v1822_v26  ;;  %4536 = vmatprep.subr.bf16.mxu0 %v4754_v1  ;;  %v2019_v11 = vld [vmem:[%s6370_s5 + $0x170] sm:$0xff]  ;;  %v2024_v26 = vld [vmem:[%s6370_s5 + $0x198] sm:$0xff] }
 0x385   : > { %2366 = vmatmul.mubr.f32.gmra.mrb[66].mxu1 %v1985_v53  ;;  %v2062_v53 = vld [vmem:[%s6370_s5 + $0x2c8] sm:$0xff] }
 0x386   : > { %4662 = vmatpush1.bf16.msra.mxu1 %v4525_v51  ;;  %4538 = vmatpush1.bf16.msra.mxu0 %v4537_v36  ;;  %v2003_v51 = vld [vmem:[%s6370_s5 + $0xf0] sm:$0xff] }
 0x387   : > { %2370 = vmatprep.mubr.f32.mxu1 %v1990_v37  ;;  %4649 = vmatprep.subr.bf16.mxu1 %v4754_v1  ;;  %v2023_v37 = vld [vmem:[%s6370_s5 + $0x190] sm:$0xff] }
 0x388   : > { %4539 = vmatprep.subr.bf16.mxu0 %v4754_v1 }
 0x389   : > { %2371 = vmatmul.mubr.f32.gmra.mrb[68].mxu1 %v1989_v38  ;;  %v2066_v38 = vld [vmem:[%s6370_s5 + $0x2e8] sm:$0xff] }
 0x38a   : > { %4663 = vmatpush1.bf16.msra.mxu1 %v4528_v14  ;;  %4541 = vmatpush1.bf16.msra.mxu0 %v5691_v45  ;;  %v2007_v14 = vld [vmem:[%s6370_s5 + $0x110] sm:$0xff] }
 0x38b   : > { %2375 = vmatprep.mubr.f32.mxu1 %v1994_v40  ;;  %4650 = vmatprep.subr.bf16.mxu1 %v4754_v1  ;;  %v2028_v40 = vld [vmem:[%s6370_s5 + $0x1b8] sm:$0xff] }
 0x38c   : > { %4542 = vmatprep.subr.bf16.mxu0 %v4754_v1 }
 0x38d   : > { %2376 = vmatmul.mubr.f32.gmra.mrb[70].mxu1 %v1993_v42  ;;  %v2065_v42 = vld [vmem:[%s6370_s5 + $0x2e0] sm:$0xff] }
 0x38e   : > { %4664 = vmatpush1.bf16.msra.mxu1 %v4531_v25  ;;  %4544 = vmatpush1.bf16.msra.mxu0 %v5694_v54  ;;  %v2054_v25 = vld [vmem:[%s6370_s5 + $0x288] sm:$0xff] }
 0x38f   : > { %2380 = vmatprep.mubr.f32.mxu1 %v1998_v43  ;;  %4651 = vmatprep.subr.bf16.mxu1 %v4754_v1  ;;  %v2027_v43 = vld [vmem:[%s6370_s5 + $0x1b0] sm:$0xff] }
 0x390   : > { %4545 = vmatprep.subr.bf16.mxu0 %v4754_v1 }
 0x391   : > { %2381 = vmatmul.mubr.f32.gmra.mrb[72].mxu1 %v1997_v44  ;;  %v2032_v44 = vld [vmem:[%s6370_s5 + $0x1d8] sm:$0xff] }
 0x392   : > { %4665 = vmatpush1.bf16.msra.mxu1 %v4534_v15  ;;  %4547 = vmatpush1.bf16.msra.mxu0 %v5697_v62  ;;  %v2020_v15 = vld [vmem:[%s6370_s5 + $0x178] sm:$0xff] }
 0x393   : > { %2385 = vmatprep.mubr.f32.mxu1 %v2002_v46  ;;  %4652 = vmatprep.subr.bf16.mxu1 %v4754_v1  ;;  %v2031_v46 = vld [vmem:[%s6370_s5 + $0x1d0] sm:$0xff] }
 0x394   : > { %4548 = vmatprep.subr.bf16.mxu0 %v4754_v1 }
 0x395   : > { %2386 = vmatmul.mubr.f32.gmra.mrb[74].mxu1 %v2001_v47  ;;  %v2036_v47 = vld [vmem:[%s6370_s5 + $0x1f8] sm:$0xff] }
 0x396   : > { %4666 = vmatpush1.bf16.msra.mxu1 %v4537_v36  ;;  %4550 = vmatpush1.bf16.msra.mxu0 %v5700_v7  ;;  %v2061_v36 = vld [vmem:[%s6370_s5 + $0x2c0] sm:$0xff] }
 0x397   : > { %2390 = vmatprep.mubr.f32.mxu1 %v2006_v48  ;;  %4653 = vmatprep.subr.bf16.mxu1 %v4754_v1  ;;  %v2035_v48 = vld [vmem:[%s6370_s5 + $0x1f0] sm:$0xff] }
 0x398   : > { %4551 = vmatprep.subr.bf16.mxu0 %v4754_v1 }
 0x399   : > { %2391 = vmatmul.mubr.f32.gmra.mrb[76].mxu1 %v2005_v50  ;;  %v2040_v50 = vld [vmem:[%s6370_s5 + $0x218] sm:$0xff] }
 0x39a   : > { %4667 = vmatpush1.bf16.msra.mxu1 %v5691_v45  ;;  %4553 = vmatpush1.bf16.msra.mxu0 %v5703_v10  ;;  %v2013_v45 = vld [vmem:[%s6370_s5 + $0x140] sm:$0xff] }
 0x39b   : > { %2395 = vmatprep.mubr.f32.mxu1 %v2010_v52  ;;  %4654 = vmatprep.subr.bf16.mxu1 %v4754_v1  ;;  %v2039_v52 = vld [vmem:[%s6370_s5 + $0x210] sm:$0xff] }
 0x39c   : > { %4554 = vmatprep.subr.bf16.mxu0 %v4754_v1 }
 0x39d   : > { %2396 = vmatmul.mubr.f32.gmra.mrb[78].mxu1 %v2009_v55  ;;  %v2044_v55 = vld [vmem:[%s6370_s5 + $0x238] sm:$0xff] }
 0x39e   : > { %4668 = vmatpush1.bf16.msra.mxu1 %v5694_v54  ;;  %4556 = vmatpush1.bf16.msra.mxu0 %v5706_v24  ;;  %v1980_v54 = vld [vmem:[%s6370_s5 + $0x38] sm:$0xff] }
 0x39f   : > { %2400 = vmatprep.mubr.f32.mxu1 %v2014_v57  ;;  %4655 = vmatprep.subr.bf16.mxu1 %v4754_v1  ;;  %v2043_v57 = vld [vmem:[%s6370_s5 + $0x230] sm:$0xff] }
 0x3a1   : > { %2401 = vmatmul.mubr.f32.gmra.mrb[80].mxu1 %v2013_v45  ;;  %2536 = vmatmul.mubr.f32.vlgmr.msra.gmra.mrb[72].mxu0 %v1975_v58  ;;  %v2048_v45 = vld [vmem:[%s6370_s5 + $0x258] sm:$0xff]  ;;  %v2047_v58 = vld [vmem:[%s6370_s5 + $0x250] sm:$0xff] }
 0x3a2   : > { %4669 = vmatpush1.bf16.msra.mxu1 %v5697_v62  ;;  %2405 = vmatprep.mubr.f32.mxu1 %v2018_v59  ;;  %v1984_v62 = vld [vmem:[%s6370_s5 + $0x58] sm:$0xff] }
 0x3a3   : > { %3403 = vmatprep.mubr.msk.f32.mxu0 %vm2213_vm2, %v1980_v54  ;;  %4656 = vmatprep.subr.bf16.mxu1 %v4754_v1  ;;  %v2052_v59 = vld [vmem:[%s6370_s5 + $0x278] sm:$0xff]  ;;  %v2051_v54 = vld [vmem:[%s6370_s5 + $0x270] sm:$0xff] }
 0x3a5   : > { %2406 = vmatmul.mubr.f32.gmra.mrb[82].mxu1 %v2017_v60  ;;  %2541 = vmatmul.mubr.f32.gmra.mrb[74].mxu0 %v1979_v2  ;;  %v2056_v60 = vld [vmem:[%s6370_s5 + $0x298] sm:$0xff]  ;;  %v2763_v2 = vld [vmem:[%s6372_s7] sm:$0xff] }
 0x3a6   : > { %4670 = vmatpush1.bf16.msra.mxu1 %v5700_v7  ;;  %2410 = vmatprep.mubr.f32.mxu1 %v2022_v3  ;;  %v1988_v7 = vld [vmem:[%s6370_s5 + $0x78] sm:$0xff]  ;;  %v2764_v3 = vld [vmem:[%s6372_s7 + $0x8] sm:$0xff] }
 0x3a7   : > { %3404 = vmatprep.mubr.msk.f32.mxu0 %vm2213_vm2, %v1984_v62  ;;  %4657 = vmatprep.subr.bf16.mxu1 %v4754_v1  ;;  %v2055_v62 = vld [vmem:[%s6370_s5 + $0x290] sm:$0xff] }
 0x3a9   : > { %2411 = vmatmul.mubr.f32.gmra.mrb[84].mxu1 %v2021_v4  ;;  %2546 = vmatmul.mubr.f32.gmra.mrb[76].mxu0 %v1983_v5  ;;  %v4557_v4 = vpack.c.bf16 %v2764_v3, %v2763_v2  ;;  %v2060_v5 = vld [vmem:[%s6370_s5 + $0x2b8] sm:$0xff] }
 0x3aa   : > { %4671 = vmatpush1.bf16.msra.mxu1 %v5703_v10  ;;  %2415 = vmatprep.mubr.f32.mxu1 %v2026_v6  ;;  %v1991_v10 = vld [vmem:[%s6370_s5 + $0x90] sm:$0xff] }
 0x3ab   : > { %3405 = vmatprep.mubr.msk.f32.mxu0 %vm2213_vm2, %v1988_v7  ;;  %4658 = vmatprep.subr.bf16.mxu1 %v4754_v1  ;;  %v2765_v6 = vld [vmem:[%s6372_s7 + $0x10] sm:$0xff]  ;;  %v2766_v7 = vld [vmem:[%s6372_s7 + $0x18] sm:$0xff] }
 0x3ac   : > { %4558 = vmatprep.subr.bf16.mxu0 %v4557_v4 }
 0x3ad   : > { %2416 = vmatmul.mubr.f32.gmra.mrb[86].mxu1 %v2025_v39  ;;  %2551 = vmatmul.mubr.f32.gmra.mrb[78].mxu0 %v1987_v41  ;;  %v2059_v39 = vld [vmem:[%s6370_s5 + $0x2b0] sm:$0xff]  ;;  %v4561_v41 = vpack.c.bf16 %v2766_v7, %v2765_v6 }
 0x3ae   : > { %4672 = vmatpush1.bf16.msra.mxu1 %v5706_v24  ;;  %2420 = vmatprep.mubr.f32.mxu1 %v2030_v49  ;;  %v2000_v24 = vld [vmem:[%s6370_s5 + $0xd8] sm:$0xff] }
 0x3af   : > { %3406 = vmatprep.mubr.msk.f32.mxu0 %vm2213_vm2, %v1992_v61  ;;  %4560 = vmatpush3.bf16.msra.mxu0 %v4557_v4  ;;  %v2064_v49 = vld [vmem:[%s6370_s5 + $0x2d8] sm:$0xff]  ;;  %v2767_v61 = vld [vmem:[%s6372_s7 + $0x20] sm:$0xff] }
 0x3b0   : > { %4562 = vmatprep.subr.bf16.mxu0 %v4561_v41 }
 0x3b1   : > { %2421 = vmatmul.mubr.f32.gmra.mrb[88].mxu1 %v2029_v8  ;;  %2556 = vmatmul.mubr.f32.gmra.mrb[80].mxu0 %v1991_v10  ;;  %v2768_v8 = vld [vmem:[%s6372_s7 + $0x28] sm:$0xff]  ;;  %v2063_v10 = vld [vmem:[%s6370_s5 + $0x2d0] sm:$0xff] }
 0x3b2   : > { %2425 = vmatprep.mubr.f32.mxu1 %v2034_v13  ;;  %3407 = vmatprep.mubr.msk.f32.mxu0 %vm2213_vm2, %v1996_v16  ;;  %v4565_v13 = vpack.c.bf16 %v2768_v8, %v2767_v61  ;;  %v2068_v16 = vld [vmem:[%s6370_s5 + $0x2f8] sm:$0xff] }
 0x3b3   : > { %4564 = vmatpush3.bf16.msra.mxu0 %v4561_v41 }
 0x3b4   : > { %4566 = vmatprep.subr.bf16.mxu0 %v4565_v13 }
 0x3b5   : > { %2426 = vmatmul.mubr.f32.gmra.mrb[90].mxu1 %v2033_v18  ;;  %2561 = vmatmul.mubr.f32.gmra.mrb[82].mxu0 %v1995_v20  ;;  %v2769_v18 = vld [vmem:[%s6372_s7 + $0x30] sm:$0xff]  ;;  %v2770_v20 = vld [vmem:[%s6372_s7 + $0x38] sm:$0xff] }
 0x3b6   : > { %2430 = vmatprep.mubr.f32.mxu1 %v2038_v22  ;;  %3408 = vmatprep.mubr.msk.f32.mxu0 %vm2213_vm2, %v2000_v24  ;;  %v2067_v22 = vld [vmem:[%s6370_s5 + $0x2f0] sm:$0xff]  ;;  %v4569_v24 = vpack.c.bf16 %v2770_v20, %v2769_v18 }
 0x3b7   : > { %4568 = vmatpush3.bf16.msra.mxu0 %v4565_v13 }
 0x3b8   : > { %4570 = vmatprep.subr.bf16.mxu0 %v4569_v24 }
 0x3b9   : > { %2431 = vmatmul.mubr.f32.gmra.mrb[92].mxu1 %v2037_v27  ;;  %2566 = vmatmul.mubr.f32.gmra.mrb[84].mxu0 %v1999_v29  ;;  %v2771_v27 = vld [vmem:[%s6372_s7 + $0x40] sm:$0xff]  ;;  %v2772_v29 = vld [vmem:[%s6372_s7 + $0x48] sm:$0xff] }
 0x3ba   : > { %2435 = vmatprep.mubr.f32.mxu1 %v2042_v31  ;;  %3409 = vmatprep.mubr.msk.f32.mxu0 %vm2213_vm2, %v2004_v32  ;;  %v4573_v31 = vpack.c.bf16 %v2772_v29, %v2771_v27  ;;  %v2773_v32 = vld [vmem:[%s6372_s7 + $0x50] sm:$0xff] }
 0x3bb   : > { %4572 = vmatpush3.bf16.msra.mxu0 %v4569_v24 }
 0x3bc   : > { %4574 = vmatprep.subr.bf16.mxu0 %v4573_v31 }
 0x3bd   : > { %2436 = vmatmul.mubr.f32.gmra.mrb[94].mxu1 %v2041_v33  ;;  %2571 = vmatmul.mubr.f32.gmra.mrb[86].mxu0 %v2003_v51  ;;  %v2774_v33 = vld [vmem:[%s6372_s7 + $0x58] sm:$0xff] }
 0x3be   : > { %2440 = vmatprep.mubr.f32.mxu1 %v2046_v0  ;;  %3410 = vmatprep.mubr.msk.f32.mxu0 %vm2213_vm2, %v2008_v9  ;;  %v4577_v51 = vpack.c.bf16 %v2774_v33, %v2773_v32  ;;  %v2775_v0 = vld [vmem:[%s6372_s7 + $0x60] sm:$0xff]  ;;  %v2776_v9 = vld [vmem:[%s6372_s7 + $0x68] sm:$0xff] }
 0x3bf   : > { %4576 = vmatpush3.bf16.msra.mxu0 %v4573_v31 }
 0x3c0   : > { %4578 = vmatprep.subr.bf16.mxu0 %v4577_v51 }
 0x3c1   : > { %2441 = vmatmul.mubr.f32.gmra.mrb[96].mxu1 %v2045_v12  ;;  %2576 = vmatmul.mubr.f32.gmra.mrb[88].mxu0 %v2007_v14  ;;  %v4581_v12 = vpack.c.bf16 %v2776_v9, %v2775_v0  ;;  %v2777_v14 = vld [vmem:[%s6372_s7 + $0x70] sm:$0xff] }
 0x3c2   : > { %2445 = vmatprep.mubr.f32.mxu1 %v2050_v17  ;;  %3411 = vmatprep.mubr.msk.f32.mxu0 %vm2213_vm2, %v2012_v19  ;;  %v2778_v17 = vld [vmem:[%s6372_s7 + $0x78] sm:$0xff] }
 0x3c3   : > { %4580 = vmatpush3.bf16.msra.mxu0 %v4577_v51  ;;  %v4585_v19 = vpack.c.bf16 %v2778_v17, %v2777_v14 }
 0x3c4   : > { %4582 = vmatprep.subr.bf16.mxu0 %v4581_v12 }
 0x3c5   : > { %2446 = vmatmul.mubr.f32.gmra.mrb[98].mxu1 %v2049_v21  ;;  %2581 = vmatmul.mubr.f32.gmra.mrb[90].mxu0 %v2011_v23  ;;  %v3426_v21 = vld [vmem:[%s6372_s7 + $0x80] sm:$0xff]  ;;  %v3427_v23 = vld [vmem:[%s6372_s7 + $0x88] sm:$0xff] }
 0x3c6   : > { %2450 = vmatprep.mubr.f32.mxu1 %v2054_v25  ;;  %3412 = vmatprep.mubr.msk.f32.mxu0 %vm2213_vm2, %v2016_v28  ;;  %v6122_v25 = vpack.c.bf16 %v3427_v23, %v3426_v21 }
 0x3c7   : > { %4584 = vmatpush3.bf16.msra.mxu0 %v4581_v12 }
 0x3c8   : > { %4586 = vmatprep.subr.bf16.mxu0 %v4585_v19 }
 0x3c9   : > { %2451 = vmatmul.mubr.f32.gmra.mrb[100].mxu1 %v2053_v30  ;;  %2586 = vmatmul.mubr.f32.gmra.mrb[92].mxu0 %v2015_v35 }
 0x3ca   : > { %2455 = vmatprep.mubr.f32.mxu1 %v2058_v63  ;;  %3413 = vmatprep.mubr.msk.f32.mxu0 %vm2213_vm2, %v2020_v15 }
 0x3cb   : > { %4588 = vmatpush3.bf16.msra.mxu0 %v4585_v19 }
 0x3cc   : > { %4590 = vmatprep.subr.bf16.mxu0 %v6122_v25 }
 0x3cd   : > { %2456 = vmatmul.mubr.f32.gmra.mrb[102].mxu1 %v2057_v34  ;;  %2591 = vmatmul.mubr.f32.gmra.mrb[94].mxu0 %v2019_v11 }
 0x3ce   : > { %2460 = vmatprep.mubr.f32.mxu1 %v2062_v53  ;;  %3414 = vmatprep.mubr.msk.f32.mxu0 %vm2213_vm2, %v2024_v26 }
 0x3d1   : > { %2461 = vmatmul.mubr.f32.gmra.mrb[104].mxu1 %v2061_v36  ;;  %2596 = vmatmul.mubr.f32.gmra.mrb[96].mxu0 %v2023_v37 }
 0x3d2   : > { %2465 = vmatprep.mubr.f32.mxu1 %v2066_v38  ;;  %3415 = vmatprep.mubr.msk.f32.mxu0 %vm2213_vm2, %v2028_v40 }
 0x3d5   : > { %2466 = vmatmul.mubr.f32.gmra.mrb[106].mxu1 %v2065_v42  ;;  %2601 = vmatmul.mubr.f32.gmra.mrb[98].mxu0 %v2027_v43 }
 0x3d6   : > { %3416 = vmatprep.mubr.msk.f32.mxu1 %vm2213_vm2, %v2032_v44 }
 0x3d9   : > { %2606 = vmatmul.mubr.f32.vlgmr.msra.gmra.mrb[88].mxu1 %v2031_v46 }
 0x3da   : > { %3417 = vmatprep.mubr.msk.f32.mxu1 %vm2213_vm2, %v2036_v47 }
 0x3dd   : > { %2611 = vmatmul.mubr.f32.gmra.mrb[90].mxu1 %v2035_v48 }
 0x3de   : > { %3418 = vmatprep.mubr.msk.f32.mxu1 %vm2213_vm2, %v2040_v50 }
 0x3e1   : > { %2616 = vmatmul.mubr.f32.gmra.mrb[92].mxu1 %v2039_v52  ;;  %v2096_v52 = vpop.permute.xlu0 %2095 }
 0x3e2   : > { %3419 = vmatprep.mubr.msk.f32.mxu1 %vm2213_vm2, %v2044_v55 }
 0x3e5   : > { %2621 = vmatmul.mubr.f32.gmra.mrb[94].mxu1 %v2043_v57 }
 0x3e6   : > { %3420 = vmatprep.mubr.msk.f32.mxu1 %vm2213_vm2, %v2048_v45 }
 0x3e9   : > { %2626 = vmatmul.mubr.f32.gmra.mrb[96].mxu1 %v2047_v58 }
 0x3ea   : > { %3421 = vmatprep.mubr.msk.f32.mxu1 %vm2213_vm2, %v2052_v59 }
 0x3ed   : > { %2631 = vmatmul.mubr.f32.gmra.mrb[98].mxu1 %v2051_v54 }
 0x3ee   : > { %3422 = vmatprep.mubr.msk.f32.mxu1 %vm2213_vm2, %v2056_v60  ;;  %v2101_v60 = vpop.permute.xlu1 %2100 }
 0x3f1   : > { %2636 = vmatmul.mubr.f32.gmra.mrb[100].mxu1 %v2055_v62 }
 0x3f2   : > { %3423 = vmatprep.mubr.msk.f32.mxu1 %vm2213_vm2, %v2060_v5  ;;  %v2111_v18 = vpop.permute.xlu1 %2110 }
 0x3f5   : > { %2641 = vmatmul.mubr.f32.gmra.mrb[102].mxu1 %v2059_v39  ;;  %v2106_v39 = vpop.permute.xlu0 %2105 }
 0x3f6   : > { %3424 = vmatprep.mubr.msk.f32.mxu1 %vm2213_vm2, %v2064_v49  ;;  %v2121_v23 = vpop.permute.xlu1 %2120 }
 0x3f9   : > { %2646 = vmatmul.mubr.f32.gmra.mrb[104].mxu1 %v2063_v10  ;;  %v2116_v33 = vpop.permute.xlu0 %2115 }
 0x3fa   : > { %3425 = vmatprep.mubr.msk.f32.mxu1 %vm2213_vm2, %v2068_v16 }
 0x3fd   : > { %2651 = vmatmul.mubr.f32.gmra.mrb[106].mxu1 %v2067_v22 }
 0x44c   : > { %v2352_v28 = vpop.f32.mrb[60].mxu1 }
 0x44d   : > { %v2354_v30 = vpop.f32.mrb[61].mxu1  ;;  %v2353_v55 = vadd.f32 %v2352_v28, %v2096_v52 }
 0x450   : > { %v2357_v35 = vpop.f32.mrb[62].mxu1 }
 0x451   : > { %v2359_v63 = vpop.f32.mrb[63].mxu1  ;;  %v2358_v2 = vadd.f32 %v2357_v35, %v2101_v60 }
 0x454   : > { %v2362_v15 = vpop.f32.mrb[64].mxu1 }
 0x455   : > { %v2364_v34 = vpop.f32.mrb[65].mxu1  ;;  %v2363_v41 = vadd.f32 %v2362_v15, %v2106_v39 }
 0x456   : > { %v2126_v34 = vpop.permute.xlu0 %2125 }
 0x458   : > { %v2367_v11 = vpop.f32.mrb[66].mxu1 }
 0x459   : > { %v2369_v53 = vpop.f32.mrb[67].mxu1  ;;  %v2368_v20 = vadd.f32 %v2367_v11, %v2111_v18  ;;  %v3428_v11 = vld [vmem:[%s6372_s7 + $0x90] sm:$0xff]  ;;  %v3434_v18 = vld [vmem:[%s6372_s7 + $0xc0] sm:$0xff] }
 0x45a   : > { %v3429_v53 = vld [vmem:[%s6372_s7 + $0x98] sm:$0xff] }
 0x45b   : > { %v4593_v52 = vpack.c.bf16 %v3429_v53, %v3428_v11 }
 0x45c   : > { %v2372_v26 = vpop.f32.mrb[68].mxu1 }
 0x45d   : > { %v2374_v36 = vpop.f32.mrb[69].mxu1  ;;  %v2373_v51 = vadd.f32 %v2372_v26, %v2116_v33 }
 0x460   : > { %v2377_v37 = vpop.f32.mrb[70].mxu1 }
 0x461   : > { %v2379_v38 = vpop.f32.mrb[71].mxu1  ;;  %v2378_v28 = vadd.f32 %v2377_v37, %v2121_v23 }
 0x464   : > { %v6125_v40 = vpop.f32.mrb[72].mxu1 }
 0x465   : > { %v2384_v42 = vpop.f32.mrb[73].mxu1  ;;  %v2383_v26 = vadd.f32 %v6125_v40, %v2126_v34 }
 0x468   : > { %v6127_v43 = vpop.f32.mrb[74].mxu1 }
 0x469   : > { %v2389_v44 = vpop.f32.mrb[75].mxu1 }
 0x46c   : > { %v6129_v46 = vpop.f32.mrb[76].mxu1 }
 0x46d   : > { %v2394_v47 = vpop.f32.mrb[77].mxu1 }
 0x470   : > { %v6131_v48 = vpop.f32.mrb[78].mxu1 }
 0x471   : > { %v2399_v50 = vpop.f32.mrb[79].mxu1 }
 0x474   : > { %v6133_v57 = vpop.f32.mrb[80].mxu1  ;;  %v2537_v45 = vpop.f32.mrb[72].mxu0 }
 0x475   : > { %v2538_v58 = vadd.f32 %v2537_v45, %v2353_v55  ;;  %v2404_v59 = vpop.f32.mrb[81].mxu1  ;;  %v2539_v54 = vpop.f32.mrb[73].mxu0  ;;  %v3430_v45 = vld [vmem:[%s6372_s7 + $0xa0] sm:$0xff] }
 0x476   : > { %v2131_v55 = vpop.permute.xlu1 %2130 }
 0x477   : > { %v2656_v3 = vmax.f32 %v2538_v58, 0.0  ;;  %v3431_v58 = vld [vmem:[%s6372_s7 + $0xa8] sm:$0xff]  ;;  %v2388_v40 = vadd.f32 %v6127_v43, %v2131_v55  ;;  %v3433_v43 = vld [vmem:[%s6372_s7 + $0xb8] sm:$0xff] }
 0x478   : > { %v6135_v62 = vpop.f32.mrb[82].mxu1  ;;  %v2542_v4 = vpop.f32.mrb[74].mxu0 }
 0x479   : > { %2680 = vst [vmem:[#allocation3] sm:$0xff] %v2656_v3  ;;  %v2543_v5 = vadd.f32 %v2542_v4, %v2358_v2  ;;  %v2409_v6 = vpop.f32.mrb[83].mxu1  ;;  %v2544_v7 = vpop.f32.mrb[75].mxu0  ;;  %v4597_v3 = vpack.c.bf16 %v3431_v58, %v3430_v45 }
 0x47a   : > { %v2136_v4 = vpop.permute.xlu0 %2135 }
 0x47b   : > { %v2657_v49 = vmax.f32 %v2543_v5, 0.0  ;;  %v3432_v5 = vld [vmem:[%s6372_s7 + $0xb0] sm:$0xff]  ;;  %v2393_v6 = vadd.f32 %v6129_v46, %v2136_v4  ;;  %v3435_v46 = vld [vmem:[%s6372_s7 + $0xc8] sm:$0xff] }
 0x47c   : > { %v6137_v61 = vpop.f32.mrb[84].mxu1  ;;  %v2547_v8 = vpop.f32.mrb[76].mxu0 }
 0x47d   : > { %2681 = vst [vmem:[#allocation3 + $0x8] sm:$0xff] %v2657_v49  ;;  %v2548_v10 = vadd.f32 %v2547_v8, %v2363_v41  ;;  %v2414_v13 = vpop.f32.mrb[85].mxu1  ;;  %v2549_v16 = vpop.f32.mrb[77].mxu0 }
 0x47e   : > { %v4601_v13 = vpack.c.bf16 %v3433_v43, %v3432_v5  ;;  %v2141_v16 = vpop.permute.xlu1 %2140  ;;  %v2146_v33 = vpop.permute.xlu0 %2145 }
 0x47f   : > { %v2658_v22 = vmax.f32 %v2548_v10, 0.0 }
 0x480   : > { %v6139_v24 = vpop.f32.mrb[86].mxu1  ;;  %v2552_v27 = vpop.f32.mrb[78].mxu0 }
 0x481   : > { %2682 = vst [vmem:[#allocation3 + $0x10] sm:$0xff] %v2658_v22  ;;  %v2553_v29 = vadd.f32 %v2552_v27, %v2368_v20  ;;  %v2419_v31 = vpop.f32.mrb[87].mxu1  ;;  %v2554_v32 = vpop.f32.mrb[79].mxu0  ;;  %v2398_v20 = vadd.f32 %v6131_v48, %v2141_v16  ;;  %v2403_v48 = vadd.f32 %v6133_v57, %v2146_v33  ;;  %v3439_v57 = vld [vmem:[%s6372_s7 + $0xe8] sm:$0xff] }
 0x482   : > { %v4605_v32 = vpack.c.bf16 %v3435_v46, %v3434_v18 }
 0x483   : > { %v2659_v0 = vmax.f32 %v2553_v29, 0.0 }
 0x484   : > { %v2557_v9 = vpop.f32.mrb[80].mxu0  ;;  %v2704_v12 = vld [vmem:[#allocation3] ss:$2 sm:$0xff]  ;;  %v2728_v14 = vld [vmem:[#allocation3 + $0x1] ss:$2 sm:$0xff] }
 0x485   : > { %2683 = vst [vmem:[#allocation3 + $0x18] sm:$0xff] %v2659_v0  ;;  %v2558_v17 = vadd.f32 %v2557_v9, %v2373_v51  ;;  %v2559_v19 = vpop.f32.mrb[81].mxu0  ;;  %v6141_v21 = vmax.f32 %v2704_v12, %v2728_v14  ;;  %v3436_v51 = vld [vmem:[%s6372_s7 + $0xd0] sm:$0xff]  ;;  %v3437_v0 = vld [vmem:[%s6372_s7 + $0xd8] sm:$0xff] }
 0x487   : > { %v2660_v30 = vmax.f32 %v2558_v17, 0.0  ;;  %4107 = vmatprep.mubr.f32.mxu0 %v6141_v21 }
 0x488   : > { %v2562_v35 = vpop.f32.mrb[82].mxu0 }
 0x489   : > { %2684 = vst [vmem:[#allocation3 + $0x20] sm:$0xff] %v2660_v30  ;;  %v2563_v63 = vadd.f32 %v2562_v35, %v2378_v28  ;;  %v2564_v15 = vpop.f32.mrb[83].mxu0  ;;  %v4609_v30 = vpack.c.bf16 %v3437_v0, %v3436_v51  ;;  %v2151_v35 = vpop.permute.xlu1 %2150 }
 0x48a   : > { %v2408_v15 = vadd.f32 %v6135_v62, %v2151_v35 }
 0x48b   : > { %v2661_v36 = vmax.f32 %v2563_v63, 0.0  ;;  %v3438_v63 = vld [vmem:[%s6372_s7 + $0xe0] sm:$0xff] }
 0x48c   : > { %v2567_v37 = vpop.f32.mrb[84].mxu0  ;;  %v2706_v38 = vld [vmem:[#allocation3 + $0x10] ss:$2 sm:$0xff]  ;;  %v2730_v42 = vld [vmem:[#allocation3 + $0x11] ss:$2 sm:$0xff] }
 0x48d   : > { %2685 = vst [vmem:[#allocation3 + $0x28] sm:$0xff] %v2661_v36  ;;  %v2568_v44 = vadd.f32 %v2567_v37, %v2383_v26  ;;  %v2569_v47 = vpop.f32.mrb[85].mxu0  ;;  %v6151_v50 = vmax.f32 %v2706_v38, %v2730_v42  ;;  %v4613_v36 = vpack.c.bf16 %v3439_v57, %v3438_v63  ;;  %v2156_v37 = vpop.permute.xlu0 %2155  ;;  %v3440_v38 = vld [vmem:[%s6372_s7 + $0xf0] sm:$0xff]  ;;  %v3441_v42 = vld [vmem:[%s6372_s7 + $0xf8] sm:$0xff] }
 0x48e   : > { %v2413_v62 = vadd.f32 %v6137_v61, %v2156_v37 }
 0x48f   : > { %v2662_v59 = vmax.f32 %v2568_v44, 0.0  ;;  %4108 = vmatmul.mubr.f32.vlgmr.msra.gmra.mrb[100].mxu0 %v6151_v50 }
 0x490   : > { %v2572_v54 = vpop.f32.mrb[86].mxu0  ;;  %4592 = vmatpush3.bf16.msra.mxu0 %v6122_v25 }
 0x491   : > { %2686 = vst [vmem:[#allocation3 + $0x30] sm:$0xff] %v2662_v59  ;;  %v2573_v60 = vadd.f32 %v2572_v54, %v2388_v40  ;;  %v2574_v2 = vpop.f32.mrb[87].mxu0  ;;  %4594 = vmatprep.subr.bf16.mxu0 %v4593_v52  ;;  %v4617_v59 = vpack.c.bf16 %v3441_v42, %v3440_v38  ;;  %v2161_v54 = vpop.permute.xlu1 %2160 }
 0x492   : > { %v2166_v43 = vpop.permute.xlu0 %2165 }
 0x493   : > { %v2663_v7 = vmax.f32 %v2573_v60, 0.0  ;;  %v2418_v60 = vadd.f32 %v6139_v24, %v2161_v54 }
 0x494   : > { %v2577_v39 = vpop.f32.mrb[88].mxu0  ;;  %v2708_v41 = vld [vmem:[#allocation3 + $0x20] ss:$2 sm:$0xff]  ;;  %v2732_v25 = vld [vmem:[#allocation3 + $0x21] ss:$2 sm:$0xff]  ;;  %4596 = vmatpush3.bf16.msra.mxu0 %v4593_v52 }
 0x495   : > { %2687 = vst [vmem:[#allocation3 + $0x38] sm:$0xff] %v2663_v7  ;;  %v2578_v49 = vadd.f32 %v2577_v39, %v2393_v6  ;;  %v2579_v8 = vpop.f32.mrb[89].mxu0  ;;  %v6169_v10 = vmax.f32 %v2708_v41, %v2732_v25  ;;  %4598 = vmatprep.subr.bf16.mxu0 %v4597_v3 }
 0x496   : > { %v2171_v8 = vpop.permute.xlu1 %2170 }
 0x497   : > { %v2664_v22 = vmax.f32 %v2578_v49, 0.0  ;;  %4110 = vmatprep.mubr.f32.mxu0 %v6169_v10 }
 0x498   : > { %v2582_v27 = vpop.f32.mrb[90].mxu0  ;;  %4600 = vmatpush3.bf16.msra.mxu0 %v4597_v3 }
 0x499   : > { %2688 = vst [vmem:[#allocation3 + $0x40] sm:$0xff] %v2664_v22  ;;  %v2583_v29 = vadd.f32 %v2582_v27, %v2398_v20  ;;  %v2584_v31 = vpop.f32.mrb[91].mxu0  ;;  %4602 = vmatprep.subr.bf16.mxu0 %v4601_v13  ;;  %v2176_v20 = vpop.permute.xlu0 %2175 }
 0x49a   : > { %v2181_v0 = vpop.permute.xlu1 %2180 }
 0x49b   : > { %v2665_v9 = vmax.f32 %v2583_v29, 0.0 }
 0x49c   : > { %v2587_v12 = vpop.f32.mrb[92].mxu0  ;;  %v2710_v14 = vld [vmem:[#allocation3 + $0x30] ss:$2 sm:$0xff]  ;;  %v2734_v17 = vld [vmem:[#allocation3 + $0x31] ss:$2 sm:$0xff]  ;;  %4604 = vmatpush3.bf16.msra.mxu0 %v4601_v13 }
 0x49d   : > { %2689 = vst [vmem:[#allocation3 + $0x48] sm:$0xff] %v2665_v9  ;;  %v2588_v19 = vadd.f32 %v2587_v12, %v2403_v48  ;;  %v2589_v23 = vpop.f32.mrb[93].mxu0  ;;  %v6186_v28 = vmax.f32 %v2710_v14, %v2734_v17  ;;  %4606 = vmatprep.subr.bf16.mxu0 %v4605_v32  ;;  %v2186_v17 = vpop.permute.xlu0 %2185 }
 0x49f   : > { %v2666_v34 = vmax.f32 %v2588_v19, 0.0  ;;  %4111 = vmatmul.mubr.f32.gmra.mrb[102].mxu0 %v6186_v28 }
 0x4a0   : > { %v2592_v11 = vpop.f32.mrb[94].mxu0  ;;  %4608 = vmatpush3.bf16.msra.mxu0 %v4605_v32 }
 0x4a1   : > { %2690 = vst [vmem:[#allocation3 + $0x50] sm:$0xff] %v2666_v34  ;;  %v2593_v53 = vadd.f32 %v2592_v11, %v2408_v15  ;;  %v2594_v26 = vpop.f32.mrb[95].mxu0  ;;  %4610 = vmatprep.subr.bf16.mxu0 %v4609_v30  ;;  %v2191_v34 = vpop.permute.xlu1 %2190 }
 0x4a2   : > { %v2196_v37 = vpop.permute.xlu0 %2195 }
 0x4a3   : > { %v2667_v44 = vmax.f32 %v2593_v53, 0.0 }
 0x4a4   : > { %v2597_v47 = vpop.f32.mrb[96].mxu0  ;;  %v2712_v52 = vld [vmem:[#allocation3 + $0x40] ss:$2 sm:$0xff]  ;;  %v2736_v55 = vld [vmem:[#allocation3 + $0x41] ss:$2 sm:$0xff]  ;;  %4612 = vmatpush3.bf16.msra.mxu0 %v4609_v30 }
 0x4a5   : > { %2691 = vst [vmem:[#allocation3 + $0x58] sm:$0xff] %v2667_v44  ;;  %v2598_v45 = vadd.f32 %v2597_v47, %v2413_v62  ;;  %v2599_v58 = vpop.f32.mrb[97].mxu0  ;;  %v6203_v40 = vmax.f32 %v2712_v52, %v2736_v55  ;;  %4614 = vmatprep.subr.bf16.mxu0 %v4613_v36 }
 0x4a7   : > { %v2668_v2 = vmax.f32 %v2598_v45, 0.0  ;;  %4113 = vmatprep.mubr.f32.mxu0 %v6203_v40  ;;  %v2201_v45 = vpop.permute.xlu1 %2200 }
 0x4a8   : > { %v2602_v3 = vpop.f32.mrb[98].mxu0  ;;  %4616 = vmatpush3.bf16.msra.mxu0 %v4613_v36 }
 0x4a9   : > { %2692 = vst [vmem:[#allocation3 + $0x60] sm:$0xff] %v2668_v2  ;;  %v2603_v61 = vadd.f32 %v2602_v3, %v2418_v60  ;;  %v2604_v4 = vpop.f32.mrb[99].mxu0  ;;  %4618 = vmatprep.subr.bf16.mxu0 %v4617_v59  ;;  %v2206_v2 = vpop.permute.xlu0 %2205 }
 0x4ab   : > { %v2669_v5 = vmax.f32 %v2603_v61, 0.0 }
 0x4ac   : > { %v2607_v6 = vpop.f32.mrb[88].mxu1  ;;  %v2714_v7 = vld [vmem:[#allocation3 + $0x50] ss:$2 sm:$0xff]  ;;  %v2738_v39 = vld [vmem:[#allocation3 + $0x51] ss:$2 sm:$0xff]  ;;  %4620 = vmatpush3.bf16.msra.mxu0 %v4617_v59 }
 0x4ad   : > { %2693 = vst [vmem:[#allocation3 + $0x68] sm:$0xff] %v2669_v5  ;;  %v4701_v41 = vadd.f32 %v2607_v6, %v2166_v43  ;;  %v2609_v25 = vpop.f32.mrb[89].mxu1  ;;  %v6207_v49 = vmax.f32 %v2714_v7, %v2738_v39  ;;  %4621 = vmatprep.subr.bf16.mxu0 %v4754_v1  ;;  %v2211_v39 = vpop.permute.xlu1 %2210 }
 0x4af   : > { %v2670_v24 = vmax.f32 %v4701_v41, 0.0  ;;  %4114 = vmatmul.mubr.f32.gmra.mrb[104].mxu0 %v6207_v49 }
 0x4b0   : > { %v2612_v13 = vpop.f32.mrb[90].mxu1 }
 0x4b1   : > { %2694 = vst [vmem:[#allocation3 + $0x70] sm:$0xff] %v2670_v24  ;;  %v4702_v16 = vadd.f32 %v2612_v13, %v2171_v8  ;;  %v2614_v18 = vpop.f32.mrb[91].mxu1 }
 0x4b3   : > { %v2671_v46 = vmax.f32 %v4702_v16, 0.0 }
 0x4b4   : > { %v2617_v22 = vpop.f32.mrb[92].mxu1  ;;  %v2716_v27 = vld [vmem:[#allocation3 + $0x60] ss:$2 sm:$0xff]  ;;  %v2740_v29 = vld [vmem:[#allocation3 + $0x61] ss:$2 sm:$0xff] }
 0x4b5   : > { %2695 = vst [vmem:[#allocation3 + $0x78] sm:$0xff] %v2671_v46  ;;  %v4703_v31 = vadd.f32 %v2617_v22, %v2176_v20  ;;  %v2619_v32 = vpop.f32.mrb[93].mxu1  ;;  %v6211_v33 = vmax.f32 %v2716_v27, %v2740_v29  ;;  %v3147_v27 = vld [vmem:[%s6374_s9 + $0x20] sm:$0xff]  ;;  %v3148_v29 = vld [vmem:[%s6374_s9 + $0x28] sm:$0xff] }
 0x4b6   : > { %v3149_v32 = vld [vmem:[%s6374_s9 + $0x30] sm:$0xff] }
 0x4b7   : > { %v2672_v51 = vmax.f32 %v4703_v31, 0.0  ;;  %4116 = vmatprep.mubr.f32.mxu0 %v6211_v33  ;;  %v4628_v31 = vpack.c.bf16 %v3148_v29, %v3147_v27  ;;  %v3447_v29 = vld [vmem:[%s6373_s8 + $0x88] sm:$0xff] }
 0x4b8   : > { %v2622_v48 = vpop.f32.mrb[94].mxu1 }
 0x4b9   : > { %2696 = vst [vmem:[#allocation3 + $0x80] sm:$0xff] %v2672_v51  ;;  %v4704_v9 = vadd.f32 %v2622_v48, %v2181_v0  ;;  %v2624_v12 = vpop.f32.mrb[95].mxu1  ;;  %v3151_v0 = vld [vmem:[%s6374_s9 + $0x40] sm:$0xff]  ;;  %v3152_v48 = vld [vmem:[%s6374_s9 + $0x48] sm:$0xff] }
 0x4ba   : > { %v3153_v12 = vld [vmem:[%s6374_s9 + $0x50] sm:$0xff] }
 0x4bb   : > { %v2673_v14 = vmax.f32 %v4704_v9, 0.0  ;;  %v4634_v9 = vpack.c.bf16 %v3152_v48, %v3151_v0 }
 0x4bc   : > { %v2627_v19 = vpop.f32.mrb[96].mxu1  ;;  %v2718_v23 = vld [vmem:[#allocation3 + $0x70] ss:$2 sm:$0xff]  ;;  %v2742_v30 = vld [vmem:[#allocation3 + $0x71] ss:$2 sm:$0xff] }
 0x4bd   : > { %2697 = vst [vmem:[#allocation3 + $0x88] sm:$0xff] %v2673_v14  ;;  %v4705_v35 = vadd.f32 %v2627_v19, %v2186_v17  ;;  %v2629_v63 = vpop.f32.mrb[97].mxu1  ;;  %v2758_v57 = vmax.f32 %v2718_v23, %v2742_v30  ;;  %v3154_v14 = vld [vmem:[%s6374_s9 + $0x58] sm:$0xff]  ;;  %v3155_v19 = vld [vmem:[%s6374_s9 + $0x60] sm:$0xff]  ;;  %v3156_v23 = vld [vmem:[%s6374_s9 + $0x68] sm:$0xff] }
 0x4be   : > { %v4637_v17 = vpack.c.bf16 %v3154_v14, %v3153_v12  ;;  %v4640_v30 = vpack.c.bf16 %v3156_v23, %v3155_v19  ;;  %v3158_v63 = vld [vmem:[%s6374_s9 + $0x78] sm:$0xff]  ;;  %v3064_v14 = vld [vmem:[%s6373_s8 + $0x30] sm:$0xff] }
 0x4bf   : > { %v2674_v15 = vmax.f32 %v4705_v35, 0.0  ;;  %4117 = vmatmul.mubr.f32.gmra.mrb[106].mxu0 %v2758_v57  ;;  %v3157_v35 = vld [vmem:[%s6374_s9 + $0x70] sm:$0xff] }
 0x4c0   : > { %v2632_v11 = vpop.f32.mrb[98].mxu1 }
 0x4c1   : > { %2698 = vst [vmem:[#allocation3 + $0x90] sm:$0xff] %v2674_v15  ;;  %v4706_v53 = vadd.f32 %v2632_v11, %v2191_v34  ;;  %v2634_v26 = vpop.f32.mrb[99].mxu1 }
 0x4c3   : > { %v2675_v36 = vmax.f32 %v4706_v53, 0.0 }
 0x4c4   : > { %v2637_v38 = vpop.f32.mrb[100].mxu1  ;;  %v2720_v42 = vld [vmem:[#allocation3 + $0x80] ss:$2 sm:$0xff]  ;;  %v2744_v62 = vld [vmem:[#allocation3 + $0x81] ss:$2 sm:$0xff] }
 0x4c5   : > { %2699 = vst [vmem:[#allocation3 + $0x98] sm:$0xff] %v2675_v36  ;;  %v4707_v44 = vadd.f32 %v2637_v38, %v2196_v37  ;;  %v2639_v47 = vpop.f32.mrb[101].mxu1  ;;  %v2759_v52 = vmax.f32 %v2720_v42, %v2744_v62 }
 0x4c7   : > { %v2676_v55 = vmax.f32 %v4707_v44, 0.0  ;;  %4119 = vmatprep.mubr.f32.mxu0 %v2759_v52 }
 0x4c8   : > { %v2642_v58 = vpop.f32.mrb[102].mxu1 }
 0x4c9   : > { %2700 = vst [vmem:[#allocation3 + $0xa0] sm:$0xff] %v2676_v55  ;;  %v4708_v59 = vadd.f32 %v2642_v58, %v2201_v45  ;;  %v2644_v54 = vpop.f32.mrb[103].mxu1  ;;  %v3058_v58 = vld [vmem:[%s6373_s8] sm:$0xff] }
 0x4cb   : > { %v2677_v60 = vmax.f32 %v4708_v59, 0.0  ;;  %v3442_v59 = vld [vmem:[%s6373_s8 + $0x60] sm:$0xff] }
 0x4cc   : > { %v2647_v3 = vpop.f32.mrb[104].mxu1  ;;  %v2722_v61 = vld [vmem:[#allocation3 + $0x90] ss:$2 sm:$0xff]  ;;  %v2746_v4 = vld [vmem:[#allocation3 + $0x91] ss:$2 sm:$0xff] }
 0x4cd   : > { %2701 = vst [vmem:[#allocation3 + $0xa8] sm:$0xff] %v2677_v60  ;;  %v4709_v5 = vadd.f32 %v2647_v3, %v2206_v2  ;;  %v2649_v43 = vpop.f32.mrb[105].mxu1  ;;  %v2760_v6 = vmax.f32 %v2722_v61, %v2746_v4 }
 0x4cf   : > { %v2678_v7 = vmax.f32 %v4709_v5, 0.0  ;;  %4120 = vmatmul.mubr.f32.gmra.mrb[108].mxu0 %v2760_v6 }
 0x4d0   : > { %v2652_v41 = vpop.f32.mrb[106].mxu1 }
 0x4d1   : > { %2702 = vst [vmem:[#allocation3 + $0xb0] sm:$0xff] %v2678_v7  ;;  %v4710_v25 = vadd.f32 %v2652_v41, %v2211_v39  ;;  %v2654_v24 = vpop.f32.mrb[107].mxu1  ;;  %v3444_v7 = vld [vmem:[%s6373_s8 + $0x70] sm:$0xff] }
 0x4d3   : > { %v2679_v8 = vmax.f32 %v4710_v25, 0.0  ;;  %v3061_v25 = vld [vmem:[%s6373_s8 + $0x18] sm:$0xff] }
 0x4d4   : > { %v2724_v13 = vld [vmem:[#allocation3 + $0xa0] ss:$2 sm:$0xff]  ;;  %v2748_v16 = vld [vmem:[#allocation3 + $0xa1] ss:$2 sm:$0xff] }
 0x4d5   : > { %2703 = vst [vmem:[#allocation3 + $0xb8] sm:$0xff] %v2679_v8  ;;  %v2761_v18 = vmax.f32 %v2724_v13, %v2748_v16  ;;  %v3445_v8 = vld [vmem:[%s6373_s8 + $0x78] sm:$0xff] }
 0x4d7   : > { %4122 = vmatprep.mubr.f32.mxu0 %v2761_v18 }
 0x4dc   : > { %v2726_v46 = vld [vmem:[#allocation3 + $0xb0] ss:$2 sm:$0xff]  ;;  %v2750_v20 = vld [vmem:[#allocation3 + $0xb1] ss:$2 sm:$0xff] }
 0x4dd   : > { %v2762_v22 = vmax.f32 %v2726_v46, %v2750_v20 }
 0x4df   : > { %4123 = vmatmul.mubr.f32.gmra.mrb[110].mxu0 %v2762_v22 }
 0x4e0   : > { %4157 = vmatprep.mubr.f32.mxu0 %v6141_v21  ;;  %v3143_v21 = vld [vmem:[%s6374_s9] sm:$0xff] }
 0x4e3   : > { %4158 = vmatmul.mubr.f32.vlgmr.msra.gmra.mrb[112].mxu0 %v6151_v50  ;;  %v3144_v50 = vld [vmem:[%s6374_s9 + $0x8] sm:$0xff] }
 0x4e4   : > { %4160 = vmatprep.mubr.f32.mxu0 %v6169_v10  ;;  %v4622_v10 = vpack.c.bf16 %v3144_v50, %v3143_v21  ;;  %v3062_v21 = vld [vmem:[%s6373_s8 + $0x20] sm:$0xff] }
 0x4e5   : > { %v3446_v50 = vld [vmem:[%s6373_s8 + $0x80] sm:$0xff] }
 0x4e6   : > { %4623 = vmatpush3.bf16.msra.mxu0 %v4622_v10 }
 0x4e7   : > { %4161 = vmatmul.mubr.f32.gmra.mrb[114].mxu0 %v6186_v28  ;;  %4624 = vmatprep.subr.bf16.mxu0 %v4754_v1  ;;  %v3145_v28 = vld [vmem:[%s6374_s9 + $0x10] sm:$0xff] }
 0x4e8   : > { %4163 = vmatprep.mubr.f32.mxu0 %v6203_v40  ;;  %v3146_v40 = vld [vmem:[%s6374_s9 + $0x18] sm:$0xff] }
 0x4eb   : > { %4164 = vmatmul.mubr.f32.gmra.mrb[116].mxu0 %v6207_v49  ;;  %v4625_v49 = vpack.c.bf16 %v3146_v40, %v3145_v28 }
 0x4ec   : > { %4166 = vmatprep.mubr.f32.mxu0 %v6211_v33  ;;  %v3150_v33 = vld [vmem:[%s6374_s9 + $0x38] sm:$0xff] }
 0x4ed   : > { %4626 = vmatpush3.bf16.msra.mxu0 %v4625_v49  ;;  %v4631_v51 = vpack.c.bf16 %v3150_v33, %v3149_v32  ;;  %v3063_v49 = vld [vmem:[%s6373_s8 + $0x28] sm:$0xff] }
 0x4ee   : > { %4627 = vmatprep.subr.bf16.mxu0 %v4754_v1 }
 0x4ef   : > { %4167 = vmatmul.mubr.f32.gmra.mrb[118].mxu0 %v2758_v57  ;;  %v4643_v57 = vpack.c.bf16 %v3158_v63, %v3157_v35  ;;  %v3065_v35 = vld [vmem:[%s6373_s8 + $0x38] sm:$0xff] }
 0x4f0   : > { %4169 = vmatprep.mubr.f32.mxu0 %v2759_v52 }
 0x4f1   : > { %4629 = vmatpush3.bf16.msra.mxu0 %v4628_v31 }
 0x4f2   : > { %4630 = vmatprep.subr.bf16.mxu0 %v4754_v1 }
 0x4f3   : > { %4170 = vmatmul.mubr.f32.gmra.mrb[120].mxu0 %v2760_v6  ;;  %v3060_v6 = vld [vmem:[%s6373_s8 + $0x10] sm:$0xff] }
 0x4f4   : > { %4172 = vmatprep.mubr.f32.mxu0 %v2761_v18 }
 0x4f5   : > { %4632 = vmatpush3.bf16.msra.mxu0 %v4631_v51 }
 0x4f6   : > { %4633 = vmatprep.subr.bf16.mxu0 %v4754_v1 }
 0x4f7   : > { %4173 = vmatmul.mubr.f32.gmra.mrb[122].mxu0 %v2762_v22 }
 0x4f8   : > { %4207 = vmatprep.mubr.msk.f32.mxu0 %vm4757_vm3, %v4756_v56  ;;  %v3443_v56 = vld [vmem:[%s6373_s8 + $0x68] sm:$0xff] }
 0x4f9   : > { %4635 = vmatpush3.bf16.msra.mxu0 %v4634_v9 }
 0x4fa   : > { %4636 = vmatprep.subr.bf16.mxu0 %v4754_v1 }
 0x4fd   : > { %4638 = vmatpush3.bf16.msra.mxu0 %v4637_v17  ;;  %v3448_v17 = vld [vmem:[%s6373_s8 + $0x90] sm:$0xff] }
 0x4fe   : > { %4639 = vmatprep.subr.bf16.mxu0 %v4754_v1 }
 0x501   : > { %4641 = vmatpush3.bf16.msra.mxu0 %v4640_v30 }
 0x502   : > { %4642 = vmatprep.subr.bf16.mxu0 %v4754_v1  ;;  %v3059_v1 = vld [vmem:[%s6373_s8 + $0x8] sm:$0xff] }
 0x505   : > { %4644 = vmatpush3.bf16.msra.mxu0 %v4643_v57  ;;  %v3449_v57 = vld [vmem:[%s6373_s8 + $0x98] sm:$0xff] }
 0x562   : > { %v4109_v15 = vpop.f32.mrb[100].mxu0 }
 0x563   : > { %v2845_v34 = vpop.f32.mrb[101].mxu0 }
 0x572   : > { %v4112_v11 = vpop.f32.mrb[102].mxu0 }
 0x573   : > { %v2855_v53 = vpop.f32.mrb[103].mxu0 }
 0x582   : > { %v4115_v26 = vpop.f32.mrb[104].mxu0 }
 0x583   : > { %v2865_v36 = vpop.f32.mrb[105].mxu0 }
 0x592   : > { %v4118_v37 = vpop.f32.mrb[106].mxu0 }
 0x593   : > { %v2875_v38 = vpop.f32.mrb[107].mxu0 }
 0x5a2   : > { %v4121_v42 = vpop.f32.mrb[108].mxu0 }
 0x5a3   : > { %v6277_v62 = vpop.f32.mrb[109].mxu0 }
 0x5b2   : > { %v6279_v44 = vpop.f32.mrb[110].mxu0 }
 0x5b3   : > { %v6281_v47 = vpop.f32.mrb[111].mxu0 }
 0x5b6   : > { %v4159_v52 = vpop.f32.mrb[112].mxu0 }
 0x5b7   : > { %v3047_v55 = vmax.f32 %v4109_v15, %v4159_v52  ;;  %v2987_v45 = vpop.f32.mrb[113].mxu0 }
 0x5b8   : > { %v3046_v54 = vmax.f32 %v2845_v34, %v2987_v45 }
 0x5b9   : > { %v3071_v60 = vmul.f32 %v3059_v1, %v3047_v55  ;;  %v3113_v2 = vmul.f32 %v3443_v56, %v3047_v55  ;;  %v3066_v1 = vld [vmem:[%s6373_s8 + $0x40] sm:$0xff] }
 0x5ba   : > { %v3070_v3 = vmul.f32 %v3058_v58, %v3046_v54  ;;  %v3112_v61 = vmul.f32 %v3442_v59, %v3046_v54  ;;  %v4162_v4 = vpop.f32.mrb[114].mxu0  ;;  %v3067_v58 = vld [vmem:[%s6373_s8 + $0x48] sm:$0xff] }
 0x5bb   : > { %v3049_v5 = vmax.f32 %v4112_v11, %v4162_v4  ;;  %v2997_v43 = vpop.f32.mrb[115].mxu0 }
 0x5bc   : > { %v3082_v39 = vadd.f32 %v3071_v60, %v3070_v3  ;;  %v3124_v41 = vadd.f32 %v3113_v2, %v3112_v61  ;;  %v3048_v24 = vmax.f32 %v2855_v53, %v2997_v43 }
 0x5bd   : > { %v3073_v46 = vmul.f32 %v3061_v25, %v3049_v5  ;;  %v3115_v10 = vmul.f32 %v3445_v8, %v3049_v5 }
 0x5be   : > { %v3072_v13 = vmul.f32 %v3060_v6, %v3048_v24  ;;  %v3114_v16 = vmul.f32 %v3444_v7, %v3048_v24  ;;  %v4165_v18 = vpop.f32.mrb[116].mxu0  ;;  %v3068_v6 = vld [vmem:[%s6373_s8 + $0x50] sm:$0xff]  ;;  %v3069_v24 = vld [vmem:[%s6373_s8 + $0x58] sm:$0xff] }
 0x5bf   : > { %v3051_v20 = vmax.f32 %v4115_v26, %v4165_v18  ;;  %v3007_v22 = vpop.f32.mrb[117].mxu0 }
 0x5c0   : > { %v3083_v28 = vadd.f32 %v3082_v39, %v3072_v13  ;;  %v3125_v40 = vadd.f32 %v3124_v41, %v3114_v16  ;;  %v3050_v27 = vmax.f32 %v2865_v36, %v3007_v22 }
 0x5c1   : > { %v3075_v48 = vmul.f32 %v3063_v49, %v3051_v20  ;;  %v3117_v19 = vmul.f32 %v3447_v29, %v3051_v20 }
 0x5c2   : > { %v3074_v31 = vmul.f32 %v3062_v21, %v3050_v27  ;;  %v3084_v32 = vadd.f32 %v3083_v28, %v3073_v46  ;;  %v3116_v33 = vmul.f32 %v3446_v50, %v3050_v27  ;;  %v3126_v51 = vadd.f32 %v3125_v40, %v3115_v10  ;;  %v4168_v0 = vpop.f32.mrb[118].mxu0 }
 0x5c3   : > { %v3053_v9 = vmax.f32 %v4118_v37, %v4168_v0  ;;  %v3017_v12 = vpop.f32.mrb[119].mxu0 }
 0x5c4   : > { %v3085_v23 = vadd.f32 %v3084_v32, %v3074_v31  ;;  %v3127_v30 = vadd.f32 %v3126_v51, %v3116_v33  ;;  %v3052_v63 = vmax.f32 %v2875_v38, %v3017_v12  ;;  %v3450_v38 = vld [vmem:[%s6373_s8 + $0xa0] sm:$0xff]  ;;  %v3163_v12 = vpop.permute.xlu0 %3162 }
 0x5c5   : > { %v3077_v36 = vmul.f32 %v3065_v35, %v3053_v9  ;;  %v3119_v56 = vmul.f32 %v3449_v57, %v3053_v9 }
 0x5c6   : > { %v3076_v15 = vmul.f32 %v3064_v14, %v3052_v63  ;;  %v3086_v34 = vadd.f32 %v3085_v23, %v3075_v48  ;;  %v3118_v11 = vmul.f32 %v3448_v17, %v3052_v63  ;;  %v3128_v53 = vadd.f32 %v3127_v30, %v3117_v19  ;;  %v4171_v26 = vpop.f32.mrb[120].mxu0 }
 0x5c7   : > { %v3055_v37 = vmax.f32 %v4121_v42, %v4171_v26  ;;  %v3027_v52 = vpop.f32.mrb[121].mxu0  ;;  %v3451_v42 = vld [vmem:[%s6373_s8 + $0xa8] sm:$0xff] }
 0x5c8   : > { %v3087_v55 = vadd.f32 %v3086_v34, %v3076_v15  ;;  %v3129_v45 = vadd.f32 %v3128_v53, %v3118_v11  ;;  %v3054_v59 = vmax.f32 %v6277_v62, %v3027_v52  ;;  %v3452_v62 = vld [vmem:[%s6373_s8 + $0xb0] sm:$0xff] }
 0x5c9   : > { %v3079_v4 = vmul.f32 %v3067_v58, %v3055_v37  ;;  %v3121_v7 = vmul.f32 %v3451_v42, %v3055_v37 }
 0x5ca   : > { %v3078_v54 = vmul.f32 %v3066_v1, %v3054_v59  ;;  %v3088_v60 = vadd.f32 %v3087_v55, %v3077_v36  ;;  %v3120_v2 = vmul.f32 %v3450_v38, %v3054_v59  ;;  %v3130_v3 = vadd.f32 %v3129_v45, %v3119_v56  ;;  %v4174_v61 = vpop.f32.mrb[122].mxu0 }
 0x5cb   : > { %v3057_v5 = vmax.f32 %v6279_v44, %v4174_v61  ;;  %v3037_v43 = vpop.f32.mrb[123].mxu0  ;;  %v3453_v44 = vld [vmem:[%s6373_s8 + $0xb8] sm:$0xff] }
 0x5cc   : > { %v3089_v39 = vadd.f32 %v3088_v60, %v3078_v54  ;;  %v3131_v41 = vadd.f32 %v3130_v3, %v3120_v2  ;;  %v3056_v25 = vmax.f32 %v6281_v47, %v3037_v43 }
 0x5cd   : > { %v3081_v46 = vmul.f32 %v3069_v24, %v3057_v5  ;;  %v3123_v20 = vmul.f32 %v3453_v44, %v3057_v5 }
 0x5ce   : > { %v3080_v8 = vmul.f32 %v3068_v6, %v3056_v25  ;;  %v3090_v13 = vadd.f32 %v3089_v39, %v3079_v4  ;;  %v3122_v16 = vmul.f32 %v3452_v62, %v3056_v25  ;;  %v3132_v18 = vadd.f32 %v3131_v41, %v3121_v7 }
 0x5d0   : > { %v3091_v22 = vadd.f32 %v3090_v13, %v3080_v8  ;;  %v3133_v21 = vadd.f32 %v3132_v18, %v3122_v16 }
 0x5d2   : > { %v3092_v50 = vadd.f32 %v3091_v22, %v3081_v46  ;;  %v3134_v10 = vadd.f32 %v3133_v21, %v3123_v20 }
 0x5d4   : > { %v3093_v47 = vrot.slane %v3092_v50, 4  ;;  %v3135_v28 = vrot.slane %v3134_v10, 4 }
 0x5d6   : > { %v3094_v40 = vadd.f32 %v3093_v47, %v3092_v50  ;;  %v3136_v49 = vadd.f32 %v3135_v28, %v3134_v10 }
 0x5d8   : > { %v3095_v27 = vrot.slane %v3094_v40, 2  ;;  %v3137_v29 = vrot.slane %v3136_v49, 2 }
 0x5da   : > { %v3096_v31 = vadd.f32 %v3095_v27, %v3094_v40  ;;  %v3138_v32 = vadd.f32 %v3137_v29, %v3136_v49 }
 0x5dc   : > { %v3097_v33 = vrot.slane %v3096_v31, 1  ;;  %v3139_v51 = vrot.slane %v3138_v32, 1 }
 0x5de   : > { %v3098_v0 = vadd.f32 %v3097_v33, %v3096_v31  ;;  %v3140_v48 = vadd.f32 %v3139_v51, %v3138_v32 }
 0x5e0   : > { %v3142_v9 = vsel %vm3141_vm4, %v3098_v0, %v3140_v48 }
 0x5e1   : > { %4208 = vmatmul.mubr.f32.vlgmr.msra.gmra.mrb[124].mxu0 %v3142_v9 }
 0x6b4   : > { %v3231_v14 = vpop.f32.mrb[124].mxu0 }
 0x6b5   : > { %v3232_v17 = vadd.f32 %v3231_v14, %v3163_v12  ;;  %v4209_v19 = vpop.f32.mrb[125].mxu0 }
 0x6b7   : > { %3236 = vst.msk [vmem:[%s384_s15] sm:$0x3] %vm3235_vm5, %v3232_v17 }
 0x6b8 PF: > { %s21_s17 = sadd.s32 1, %s4752_s17  }
 0x6b9   : > { %p18_p4 = scmp.ge.s32.totalorder %s21_s17, 4  }
 0x6bb   :  { %20 = sbr.rel (!%p18_p4) target bundleno = 1 (0x1), region = 147 }

</bundles_post_ra>
